<compile_context>
chip_gen: v7x
topology: tpu7x:2x2x1
jax: 0.10.0
libtpu: 0.0.40
codegen_flags: <defaults>
</compile_context>

<pallas_src>
import functools

import jax
import jax.numpy as jnp
from jax.experimental import pallas as pl
from jax.experimental.pallas import tpu as pltpu


# ----------------------------- helpers --------------------------------------


def _leaky(x):
    return jnp.where(x > 0, x, 0.2 * x)


def _pick_tile_h(H, cap=16):
    th = min(H, cap)
    while H % th:
        th -= 1
    return th


# ------------------------------ kernel --------------------------------------


def make_fill_conv_kernel(H, W, TH):
    """Fused FillConv forward for one (batch, row-tile) grid step.

    x_ref     : (1, TH+6, W+2, 4)  rgb|dep window, 3-row / 1-col zero halo
    w_in_ref  : (9, 4, 64)   block-diag [conv_rgb | conv_dep] weights
    w_tr_ref  : (48, 16)     1x1 _trans weights
    w_f12_ref : (9, 32, 32)  [fuse_conv1 | fuse_conv2] weights (Cout-concat)
    w_f34_ref : (9, 64, 128) [fuse_conv3 | fuse_conv4] weights (Cout-concat)
    out_ref   : (1, TH, W, 64) NHWC output tile
    fd_ref    : VMEM (TH+4, W+2, 32) scratch -- concat(_trans(f_rgb), f_dep)
    f_ref     : VMEM (TH+2, W+2, 64) scratch -- concat(f_rgb, gated f_dep)
    """
    H4 = TH + 4                 # image rows r0-2 .. r0+TH+1  (halo for fuse1/2)
    H2 = TH + 2                 # image rows r0-1 .. r0+TH    (halo for fuse3/4)
    N4, N2, N0 = H4 * W, H2 * W, TH * W

    def kernel(x_ref, w_in_ref, b_in_ref, w_tr_ref, b_tr_ref,
               w_f12_ref, b_f12_ref, w_f34_ref, b_f34_ref,
               out_ref, fd_ref, f_ref):
        r0 = pl.program_id(1) * TH          # first output image-row of this tile

        # ---- stage 1: conv_rgb ‖ conv_dep (4 -> 48+16) over rows r0-2..r0+TH+1
        acc = jnp.zeros((N4, 64), jnp.float32)
        for dy in range(3):
            for dx in range(3):
                patch = x_ref[0, dy:dy + H4, dx:dx + W, :].reshape(N4, 4)
                acc = acc + jnp.dot(patch, w_in_ref[dy * 3 + dx],
                                    preferred_element_type=jnp.float32)
        f_in = _leaky(acc + b_in_ref[...])      # (N4,64): [:, :48]=f_rgb, [:, 48:]=f_dep

        # ---- stage 2: 1x1 _trans (48 -> 16); fd = [trans | f_dep] (32 ch)
        trans = jnp.dot(f_in[:, :48], w_tr_ref[...],
                        preferred_element_type=jnp.float32) + b_tr_ref[...]
        fd = jnp.concatenate([trans, f_in[:, 48:]], axis=-1).reshape(H4, W, 32)
        # rows outside the image are "same"-conv zero padding, not conv(0)+bias
        row4 = r0 - 2 + jax.lax.broadcasted_iota(jnp.int32, (H4, W, 32), 0)
        fd = jnp.where((row4 >= 0) & (row4 < H), fd, 0.0)
        fd_ref[:, 1:W + 1, :] = fd
        fd_ref[:, 0:1, :] = jnp.zeros((H4, 1, 32), jnp.float32)          # col -1
        fd_ref[:, W + 1:W + 2, :] = jnp.zeros((H4, 1, 32), jnp.float32)  # col W

        # ---- stage 3: gated fuse1*fuse2 (32 -> 16) over rows r0-1..r0+TH
        acc12 = jnp.zeros((N2, 32), jnp.float32)
        for dy in range(3):
            for dx in range(3):
                patch = fd_ref[dy:dy + H2, dx:dx + W, :].reshape(N2, 32)
                acc12 = acc12 + jnp.dot(patch, w_f12_ref[dy * 3 + dx],
                                        preferred_element_type=jnp.float32)
        acc12 = acc12 + b_f12_ref[...]
        f_dep2 = _leaky(acc12[:, :16]) * jax.nn.sigmoid(acc12[:, 16:])   # (N2,16)

        # ---- assemble f = [f_rgb | f_dep2] (64 ch) for rows r0-1..r0+TH
        f_val = jnp.concatenate([f_in[W:(TH + 3) * W, :48], f_dep2], axis=-1)
        f_val = f_val.reshape(H2, W, 64)
        row2 = r0 - 1 + jax.lax.broadcasted_iota(jnp.int32, (H2, W, 64), 0)
        f_val = jnp.where((row2 >= 0) & (row2 < H), f_val, 0.0)
        f_ref[:, 1:W + 1, :] = f_val
        f_ref[:, 0:1, :] = jnp.zeros((H2, 1, 64), jnp.float32)
        f_ref[:, W + 1:W + 2, :] = jnp.zeros((H2, 1, 64), jnp.float32)

        # ---- stage 4: gated fuse3*fuse4 (64 -> 64‖64=128) + residual
        acc34 = jnp.zeros((N0, 128), jnp.float32)
        for dy in range(3):
            for dx in range(3):
                patch = f_ref[dy:dy + TH, dx:dx + W, :].reshape(N0, 64)
                acc34 = acc34 + jnp.dot(patch, w_f34_ref[dy * 3 + dx],
                                        preferred_element_type=jnp.float32)
        acc34 = acc34 + b_f34_ref[...]
        gate = _leaky(acc34[:, :64]) * jax.nn.sigmoid(acc34[:, 64:])     # (N0,64)
        center = f_ref[1:TH + 1, 1:W + 1, :].reshape(N0, 64)             # residual
        out_ref[...] = (center + gate).reshape(1, TH, W, 64).astype(out_ref.dtype)

    return kernel


# ----------------------------- wrapper --------------------------------------


@functools.partial(jax.jit, static_argnames=("tile_h",))
def fill_conv_forward(params, rgb, dep, tile_h=None):
    """rgb: (B,3,H,W), dep: (B,1,H,W) NCHW -> (B,64,H,W) NCHW (float32)."""
    B, _, H, W = rgb.shape
    if tile_h is None:
        tile_h = _pick_tile_h(H)        # keep TH*W modest so accumulators stay small
    assert H % tile_h == 0, (H, tile_h)
    nt = H // tile_h

    # --- input prep: NCHW -> NHWC, rgb|dep concat, 3-row / 1-col zero halo,
    #     pre-windowed per row tile (cheap: only 4 channels).
    x = jnp.concatenate([jnp.transpose(rgb, (0, 2, 3, 1)),
                         jnp.transpose(dep, (0, 2, 3, 1))], axis=-1)      # (B,H,W,4)
    xp = jnp.pad(x, ((0, 0), (3, 3), (1, 1), (0, 0)))                     # (B,H+6,W+2,4)
    tiles = jnp.stack(
        [xp[:, t * tile_h:t * tile_h + tile_h + 6] for t in range(nt)], axis=1)
    tiles = tiles.reshape(B * nt, tile_h + 6, W + 2, 4)

    # --- weight packing (done once per call; tiny tensors)
    w_in = jnp.zeros((3, 3, 4, 64), jnp.float32)
    w_in = w_in.at[:, :, 0:3, 0:48].set(params["w_rgb"])
    w_in = w_in.at[:, :, 3:4, 48:64].set(params["w_dep"])
    w_in = w_in.reshape(9, 4, 64)
    b_in = jnp.concatenate([params["b_rgb"], params["b_dep"]]).reshape(1, 64)
    w_tr = params["w_tr"].reshape(48, 16)
    b_tr = params["b_tr"].reshape(1, 16)
    w_f12 = jnp.concatenate([params["w_f1"], params["w_f2"]], axis=-1).reshape(9, 32, 32)
    b_f12 = jnp.concatenate([params["b_f1"], params["b_f2"]]).reshape(1, 32)
    w_f34 = jnp.concatenate([params["w_f3"], params["w_f4"]], axis=-1).reshape(9, 64, 128)
    b_f34 = jnp.concatenate([params["b_f3"], params["b_f4"]]).reshape(1, 128)

    out_nhwc = pl.pallas_call(
        make_fill_conv_kernel(H, W, tile_h),
        out_shape=jax.ShapeDtypeStruct((B, H, W, 64), jnp.float32),
        grid=(B, nt),
        in_specs=[
            pl.BlockSpec((1, tile_h + 6, W + 2, 4),
                         lambda b, t: (b * nt + t, 0, 0, 0)),
            pl.BlockSpec((9, 4, 64), lambda b, t: (0, 0, 0)),
            pl.BlockSpec((1, 64), lambda b, t: (0, 0)),
            pl.BlockSpec((48, 16), lambda b, t: (0, 0)),
            pl.BlockSpec((1, 16), lambda b, t: (0, 0)),
            pl.BlockSpec((9, 32, 32), lambda b, t: (0, 0, 0)),
            pl.BlockSpec((1, 32), lambda b, t: (0, 0)),
            pl.BlockSpec((9, 64, 128), lambda b, t: (0, 0, 0)),
            pl.BlockSpec((1, 128), lambda b, t: (0, 0)),
        ],
        out_specs=pl.BlockSpec((1, tile_h, W, 64), lambda b, t: (b, t, 0, 0)),
        scratch_shapes=[
            pltpu.VMEM((tile_h + 4, W + 2, 32), jnp.float32),   # fd buffer
            pltpu.VMEM((tile_h + 2, W + 2, 64), jnp.float32),   # f buffer
        ],
        compiler_params=pltpu.CompilerParams(
            dimension_semantics=("parallel", "parallel")),
    )(tiles, w_in, b_in, w_tr, b_tr, w_f12, b_f12, w_f34, b_f34)

    # TODO(synk): fold this NHWC->NCHW transpose into the kernel's output store.
    return jnp.transpose(out_nhwc, (0, 3, 1, 2))


# ----------------------------- parameters -----------------------------------


def xavier_normal(key, K, Cin, Cout):
    fan_in = Cin * K * K
    fan_out = Cout * K * K
    std = (2.0 / (fan_in + fan_out)) ** 0.5
    return std * jax.random.normal(key, (K, K, Cin, Cout), jnp.float32)


def init_fill_conv_params(key):
    ks = jax.random.split(key, 7)
    p = {}
    p["w_rgb"] = xavier_normal(ks[0], 3, 3, 48)     # conv_rgb: 3->48, 3x3, pad 1
    p["b_rgb"] = jnp.full((48,), 0.3, jnp.float32)
    p["w_dep"] = xavier_normal(ks[1], 3, 1, 16)     # conv_dep: 1->16, 3x3, pad 1
    p["b_dep"] = jnp.full((16,), 0.3, jnp.float32)
    p["w_tr"] = xavier_normal(ks[2], 1, 48, 16)     # _trans: 48->16, 1x1
    p["b_tr"] = jnp.full((16,), 0.3, jnp.float32)
    p["w_f1"] = xavier_normal(ks[3], 3, 32, 16)     # fuse_conv1
    p["b_f1"] = jnp.full((16,), 0.3, jnp.float32)
    p["w_f2"] = xavier_normal(ks[4], 3, 32, 16)     # fuse_conv2
    p["b_f2"] = jnp.full((16,), 0.3, jnp.float32)
    p["w_f3"] = xavier_normal(ks[5], 3, 64, 64)     # fuse_conv3
    p["b_f3"] = jnp.full((64,), 0.3, jnp.float32)
    p["w_f4"] = xavier_normal(ks[6], 3, 64, 64)     # fuse_conv4
    p["b_f4"] = jnp.full((64,), 0.3, jnp.float32)
    return p


# ------------------------- pure-JAX reference --------------------------------


def _ref_conv(x, w, b, act):
    y = jax.lax.conv_general_dilated(
        x, w, window_strides=(1, 1), padding="SAME",
        dimension_numbers=("NHWC", "HWIO", "NHWC")) + b
    if act == "leaky":
        return _leaky(y)
    if act == "sigmoid":
        return jax.nn.sigmoid(y)
    return y


def fill_conv_reference(params, rgb, dep):
    rgb = jnp.transpose(rgb, (0, 2, 3, 1))
    dep = jnp.transpose(dep, (0, 2, 3, 1))
    f_rgb = _ref_conv(rgb, params["w_rgb"], params["b_rgb"], "leaky")
    f_dep = _ref_conv(dep, params["w_dep"], params["b_dep"], "leaky")
    trans = _ref_conv(f_rgb, params["w_tr"], params["b_tr"], "none")
    fd = jnp.concatenate([trans, f_dep], axis=-1)
    f_dep = _ref_conv(fd, params["w_f1"], params["b_f1"], "leaky") * _ref_conv(
        fd, params["w_f2"], params["b_f2"], "sigmoid")
    f = jnp.concatenate([f_rgb, f_dep], axis=-1)
    f = f + _ref_conv(f, params["w_f3"], params["b_f3"], "leaky") * _ref_conv(
        f, params["w_f4"], params["b_f4"], "sigmoid")
    return jnp.transpose(f, (0, 3, 1, 2))


# ------------------------------- main ----------------------------------------


if __name__ == "__main__":
    key = jax.random.PRNGKey(0)
    k_params, k_rgb, k_dep = jax.random.split(key, 3)

    B, H, W = 2, 16, 16
    params = init_fill_conv_params(k_params)
    rgb = jax.random.normal(k_rgb, (B, 3, H, W), jnp.float32)
    dep = jax.random.normal(k_dep, (B, 1, H, W), jnp.float32)

    # tile_h=8 -> 2 row tiles per image: exercises both edge and interior halos.
    out = jax.block_until_ready(fill_conv_forward(params, rgb, dep, tile_h=8))
    ref = jax.block_until_ready(fill_conv_reference(params, rgb, dep))

    assert out.shape == (B, 64, H, W), out.shape
    max_err = float(jnp.max(jnp.abs(out - ref)))
    assert jnp.allclose(out, ref, atol=2e-4, rtol=2e-4), max_err

    print("KERNEL_OK")
</pallas_src>

<mosaic_0001>
module attributes {stable_mosaic.version = 11 : i64} {
  func.func @kernel(%arg0: i32, %arg1: i32, %arg2: memref<1x14x18x4xf32, #tpu.memory_space<vmem>>, %arg3: memref<9x4x64xf32, #tpu.memory_space<vmem>>, %arg4: memref<1x64xf32, #tpu.memory_space<vmem>>, %arg5: memref<48x16xf32, #tpu.memory_space<vmem>>, %arg6: memref<1x16xf32, #tpu.memory_space<vmem>>, %arg7: memref<9x32x32xf32, #tpu.memory_space<vmem>>, %arg8: memref<1x32xf32, #tpu.memory_space<vmem>>, %arg9: memref<9x64x128xf32, #tpu.memory_space<vmem>>, %arg10: memref<1x128xf32, #tpu.memory_space<vmem>>, %arg11: memref<1x8x16x64xf32, #tpu.memory_space<vmem>>, %arg12: memref<12x18x32xf32, #tpu.memory_space<vmem>>, %arg13: memref<10x18x64xf32, #tpu.memory_space<vmem>>) attributes {dimension_semantics = [#tpu.dimension_semantics<parallel>, #tpu.dimension_semantics<parallel>], iteration_bounds = array<i64: 2, 2>, scalar_prefetch = 0 : i64, scratch_operands = 2 : i64, tpu.core_type = #tpu.core_type<tc>, window_params = [{transform_indices = @transform_0, window_bounds = array<i64: 1, 14, 18, 4>}, {pipeline_mode = #tpu.pipeline_mode<synchronous>, transform_indices = @transform_1, window_bounds = array<i64: 9, 4, 64>}, {pipeline_mode = #tpu.pipeline_mode<synchronous>, transform_indices = @transform_2, window_bounds = array<i64: 1, 64>}, {pipeline_mode = #tpu.pipeline_mode<synchronous>, transform_indices = @transform_3, window_bounds = array<i64: 48, 16>}, {pipeline_mode = #tpu.pipeline_mode<synchronous>, transform_indices = @transform_4, window_bounds = array<i64: 1, 16>}, {pipeline_mode = #tpu.pipeline_mode<synchronous>, transform_indices = @transform_5, window_bounds = array<i64: 9, 32, 32>}, {pipeline_mode = #tpu.pipeline_mode<synchronous>, transform_indices = @transform_6, window_bounds = array<i64: 1, 32>}, {pipeline_mode = #tpu.pipeline_mode<synchronous>, transform_indices = @transform_7, window_bounds = array<i64: 9, 64, 128>}, {pipeline_mode = #tpu.pipeline_mode<synchronous>, transform_indices = @transform_8, window_bounds = array<i64: 1, 128>}, {transform_indices = @transform_9, window_bounds = array<i64: 1, 8, 16, 64>}]} {
    %c8_i32 = arith.constant 8 : i32
    %0 = arith.muli %arg1, %c8_i32 : i32
    %cst = arith.constant 0.000000e+00 : f32
    %1 = vector.broadcast %cst : f32 to vector<192x64xf32>
    %c0 = arith.constant 0 : index
    %c0_0 = arith.constant 0 : index
    %c0_1 = arith.constant 0 : index
    %c0_2 = arith.constant 0 : index
    %2 = vector.load %arg2[%c0, %c0_0, %c0_1, %c0_2] : memref<1x14x18x4xf32, #tpu.memory_space<vmem>>, vector<1x12x16x4xf32>
    %3 = vector.shape_cast %2 : vector<1x12x16x4xf32> to vector<12x16x4xf32>
    %4 = vector.shape_cast %3 : vector<12x16x4xf32> to vector<192x4xf32>
    %c0_3 = arith.constant 0 : index
    %c0_4 = arith.constant 0 : index
    %c0_5 = arith.constant 0 : index
    %5 = vector.load %arg3[%c0_3, %c0_4, %c0_5] : memref<9x4x64xf32, #tpu.memory_space<vmem>>, vector<1x4x64xf32>
    %6 = vector.shape_cast %5 : vector<1x4x64xf32> to vector<4x64xf32>
    %cst_6 = arith.constant dense<0.000000e+00> : vector<192x64xf32>
    %7 = tpu.matmul %4, %6, %cst_6 {dimension_numbers = #tpu.dot_dimension_numbers<[1], [0], [0], [1], [0, 0, 1, 1], [], []>} : vector<192x4xf32>, vector<4x64xf32>, vector<192x64xf32> -> vector<192x64xf32>
    %8 = arith.addf %1, %7 : vector<192x64xf32>
    %c0_7 = arith.constant 0 : index
    %c0_8 = arith.constant 0 : index
    %c1 = arith.constant 1 : index
    %c0_9 = arith.constant 0 : index
    %9 = vector.load %arg2[%c0_7, %c0_8, %c1, %c0_9] : memref<1x14x18x4xf32, #tpu.memory_space<vmem>>, vector<1x12x16x4xf32>
    %10 = vector.shape_cast %9 : vector<1x12x16x4xf32> to vector<12x16x4xf32>
    %11 = vector.shape_cast %10 : vector<12x16x4xf32> to vector<192x4xf32>
    %c1_10 = arith.constant 1 : index
    %c0_11 = arith.constant 0 : index
    %c0_12 = arith.constant 0 : index
    %12 = vector.load %arg3[%c1_10, %c0_11, %c0_12] : memref<9x4x64xf32, #tpu.memory_space<vmem>>, vector<1x4x64xf32>
    %13 = vector.shape_cast %12 : vector<1x4x64xf32> to vector<4x64xf32>
    %cst_13 = arith.constant dense<0.000000e+00> : vector<192x64xf32>
    %14 = tpu.matmul %11, %13, %cst_13 {dimension_numbers = #tpu.dot_dimension_numbers<[1], [0], [0], [1], [0, 0, 1, 1], [], []>} : vector<192x4xf32>, vector<4x64xf32>, vector<192x64xf32> -> vector<192x64xf32>
    %15 = arith.addf %8, %14 : vector<192x64xf32>
    %c0_14 = arith.constant 0 : index
    %c0_15 = arith.constant 0 : index
    %c2 = arith.constant 2 : index
    %c0_16 = arith.constant 0 : index
    %16 = vector.load %arg2[%c0_14, %c0_15, %c2, %c0_16] : memref<1x14x18x4xf32, #tpu.memory_space<vmem>>, vector<1x12x16x4xf32>
    %17 = vector.shape_cast %16 : vector<1x12x16x4xf32> to vector<12x16x4xf32>
    %18 = vector.shape_cast %17 : vector<12x16x4xf32> to vector<192x4xf32>
    %c2_17 = arith.constant 2 : index
    %c0_18 = arith.constant 0 : index
    %c0_19 = arith.constant 0 : index
    %19 = vector.load %arg3[%c2_17, %c0_18, %c0_19] : memref<9x4x64xf32, #tpu.memory_space<vmem>>, vector<1x4x64xf32>
    %20 = vector.shape_cast %19 : vector<1x4x64xf32> to vector<4x64xf32>
    %cst_20 = arith.constant dense<0.000000e+00> : vector<192x64xf32>
    %21 = tpu.matmul %18, %20, %cst_20 {dimension_numbers = #tpu.dot_dimension_numbers<[1], [0], [0], [1], [0, 0, 1, 1], [], []>} : vector<192x4xf32>, vector<4x64xf32>, vector<192x64xf32> -> vector<192x64xf32>
    %22 = arith.addf %15, %21 : vector<192x64xf32>
    %c0_21 = arith.constant 0 : index
    %c1_22 = arith.constant 1 : index
    %c0_23 = arith.constant 0 : index
    %c0_24 = arith.constant 0 : index
    %23 = vector.load %arg2[%c0_21, %c1_22, %c0_23, %c0_24] : memref<1x14x18x4xf32, #tpu.memory_space<vmem>>, vector<1x12x16x4xf32>
    %24 = vector.shape_cast %23 : vector<1x12x16x4xf32> to vector<12x16x4xf32>
    %25 = vector.shape_cast %24 : vector<12x16x4xf32> to vector<192x4xf32>
    %c3 = arith.constant 3 : index
    %c0_25 = arith.constant 0 : index
    %c0_26 = arith.constant 0 : index
    %26 = vector.load %arg3[%c3, %c0_25, %c0_26] : memref<9x4x64xf32, #tpu.memory_space<vmem>>, vector<1x4x64xf32>
    %27 = vector.shape_cast %26 : vector<1x4x64xf32> to vector<4x64xf32>
    %cst_27 = arith.constant dense<0.000000e+00> : vector<192x64xf32>
    %28 = tpu.matmul %25, %27, %cst_27 {dimension_numbers = #tpu.dot_dimension_numbers<[1], [0], [0], [1], [0, 0, 1, 1], [], []>} : vector<192x4xf32>, vector<4x64xf32>, vector<192x64xf32> -> vector<192x64xf32>
    %29 = arith.addf %22, %28 : vector<192x64xf32>
    %c0_28 = arith.constant 0 : index
    %c1_29 = arith.constant 1 : index
    %c1_30 = arith.constant 1 : index
    %c0_31 = arith.constant 0 : index
    %30 = vector.load %arg2[%c0_28, %c1_29, %c1_30, %c0_31] : memref<1x14x18x4xf32, #tpu.memory_space<vmem>>, vector<1x12x16x4xf32>
    %31 = vector.shape_cast %30 : vector<1x12x16x4xf32> to vector<12x16x4xf32>
    %32 = vector.shape_cast %31 : vector<12x16x4xf32> to vector<192x4xf32>
    %c4 = arith.constant 4 : index
    %c0_32 = arith.constant 0 : index
    %c0_33 = arith.constant 0 : index
    %33 = vector.load %arg3[%c4, %c0_32, %c0_33] : memref<9x4x64xf32, #tpu.memory_space<vmem>>, vector<1x4x64xf32>
    %34 = vector.shape_cast %33 : vector<1x4x64xf32> to vector<4x64xf32>
    %cst_34 = arith.constant dense<0.000000e+00> : vector<192x64xf32>
    %35 = tpu.matmul %32, %34, %cst_34 {dimension_numbers = #tpu.dot_dimension_numbers<[1], [0], [0], [1], [0, 0, 1, 1], [], []>} : vector<192x4xf32>, vector<4x64xf32>, vector<192x64xf32> -> vector<192x64xf32>
    %36 = arith.addf %29, %35 : vector<192x64xf32>
    %c0_35 = arith.constant 0 : index
    %c1_36 = arith.constant 1 : index
    %c2_37 = arith.constant 2 : index
    %c0_38 = arith.constant 0 : index
    %37 = vector.load %arg2[%c0_35, %c1_36, %c2_37, %c0_38] : memref<1x14x18x4xf32, #tpu.memory_space<vmem>>, vector<1x12x16x4xf32>
    %38 = vector.shape_cast %37 : vector<1x12x16x4xf32> to vector<12x16x4xf32>
    %39 = vector.shape_cast %38 : vector<12x16x4xf32> to vector<192x4xf32>
    %c5 = arith.constant 5 : index
    %c0_39 = arith.constant 0 : index
    %c0_40 = arith.constant 0 : index
    %40 = vector.load %arg3[%c5, %c0_39, %c0_40] : memref<9x4x64xf32, #tpu.memory_space<vmem>>, vector<1x4x64xf32>
    %41 = vector.shape_cast %40 : vector<1x4x64xf32> to vector<4x64xf32>
    %cst_41 = arith.constant dense<0.000000e+00> : vector<192x64xf32>
    %42 = tpu.matmul %39, %41, %cst_41 {dimension_numbers = #tpu.dot_dimension_numbers<[1], [0], [0], [1], [0, 0, 1, 1], [], []>} : vector<192x4xf32>, vector<4x64xf32>, vector<192x64xf32> -> vector<192x64xf32>
    %43 = arith.addf %36, %42 : vector<192x64xf32>
    %c0_42 = arith.constant 0 : index
    %c2_43 = arith.constant 2 : index
    %c0_44 = arith.constant 0 : index
    %c0_45 = arith.constant 0 : index
    %44 = vector.load %arg2[%c0_42, %c2_43, %c0_44, %c0_45] : memref<1x14x18x4xf32, #tpu.memory_space<vmem>>, vector<1x12x16x4xf32>
    %45 = vector.shape_cast %44 : vector<1x12x16x4xf32> to vector<12x16x4xf32>
    %46 = vector.shape_cast %45 : vector<12x16x4xf32> to vector<192x4xf32>
    %c6 = arith.constant 6 : index
    %c0_46 = arith.constant 0 : index
    %c0_47 = arith.constant 0 : index
    %47 = vector.load %arg3[%c6, %c0_46, %c0_47] : memref<9x4x64xf32, #tpu.memory_space<vmem>>, vector<1x4x64xf32>
    %48 = vector.shape_cast %47 : vector<1x4x64xf32> to vector<4x64xf32>
    %cst_48 = arith.constant dense<0.000000e+00> : vector<192x64xf32>
    %49 = tpu.matmul %46, %48, %cst_48 {dimension_numbers = #tpu.dot_dimension_numbers<[1], [0], [0], [1], [0, 0, 1, 1], [], []>} : vector<192x4xf32>, vector<4x64xf32>, vector<192x64xf32> -> vector<192x64xf32>
    %50 = arith.addf %43, %49 : vector<192x64xf32>
    %c0_49 = arith.constant 0 : index
    %c2_50 = arith.constant 2 : index
    %c1_51 = arith.constant 1 : index
    %c0_52 = arith.constant 0 : index
    %51 = vector.load %arg2[%c0_49, %c2_50, %c1_51, %c0_52] : memref<1x14x18x4xf32, #tpu.memory_space<vmem>>, vector<1x12x16x4xf32>
    %52 = vector.shape_cast %51 : vector<1x12x16x4xf32> to vector<12x16x4xf32>
    %53 = vector.shape_cast %52 : vector<12x16x4xf32> to vector<192x4xf32>
    %c7 = arith.constant 7 : index
    %c0_53 = arith.constant 0 : index
    %c0_54 = arith.constant 0 : index
    %54 = vector.load %arg3[%c7, %c0_53, %c0_54] : memref<9x4x64xf32, #tpu.memory_space<vmem>>, vector<1x4x64xf32>
    %55 = vector.shape_cast %54 : vector<1x4x64xf32> to vector<4x64xf32>
    %cst_55 = arith.constant dense<0.000000e+00> : vector<192x64xf32>
    %56 = tpu.matmul %53, %55, %cst_55 {dimension_numbers = #tpu.dot_dimension_numbers<[1], [0], [0], [1], [0, 0, 1, 1], [], []>} : vector<192x4xf32>, vector<4x64xf32>, vector<192x64xf32> -> vector<192x64xf32>
    %57 = arith.addf %50, %56 : vector<192x64xf32>
    %c0_56 = arith.constant 0 : index
    %c2_57 = arith.constant 2 : index
    %c2_58 = arith.constant 2 : index
    %c0_59 = arith.constant 0 : index
    %58 = vector.load %arg2[%c0_56, %c2_57, %c2_58, %c0_59] : memref<1x14x18x4xf32, #tpu.memory_space<vmem>>, vector<1x12x16x4xf32>
    %59 = vector.shape_cast %58 : vector<1x12x16x4xf32> to vector<12x16x4xf32>
    %60 = vector.shape_cast %59 : vector<12x16x4xf32> to vector<192x4xf32>
    %c8 = arith.constant 8 : index
    %c0_60 = arith.constant 0 : index
    %c0_61 = arith.constant 0 : index
    %61 = vector.load %arg3[%c8, %c0_60, %c0_61] : memref<9x4x64xf32, #tpu.memory_space<vmem>>, vector<1x4x64xf32>
    %62 = vector.shape_cast %61 : vector<1x4x64xf32> to vector<4x64xf32>
    %cst_62 = arith.constant dense<0.000000e+00> : vector<192x64xf32>
    %63 = tpu.matmul %60, %62, %cst_62 {dimension_numbers = #tpu.dot_dimension_numbers<[1], [0], [0], [1], [0, 0, 1, 1], [], []>} : vector<192x4xf32>, vector<4x64xf32>, vector<192x64xf32> -> vector<192x64xf32>
    %64 = arith.addf %57, %63 : vector<192x64xf32>
    %c0_63 = arith.constant 0 : index
    %c0_64 = arith.constant 0 : index
    %65 = vector.load %arg4[%c0_63, %c0_64] : memref<1x64xf32, #tpu.memory_space<vmem>>, vector<1x64xf32>
    %66 = vector.broadcast %65 : vector<1x64xf32> to vector<192x64xf32>
    %67 = arith.addf %64, %66 : vector<192x64xf32>
    %cst_65 = arith.constant 0.000000e+00 : f32
    %68 = vector.broadcast %cst_65 : f32 to vector<192x64xf32>
    %69 = arith.cmpf ogt, %67, %68 : vector<192x64xf32>
    %cst_66 = arith.constant 2.000000e-01 : f32
    %70 = vector.broadcast %cst_66 : f32 to vector<192x64xf32>
    %71 = arith.mulf %70, %67 : vector<192x64xf32>
    %72 = arith.select %69, %67, %71 : vector<192x64xi1>, vector<192x64xf32>
    %73 = vector.extract_strided_slice %72 {offsets = [0, 0], sizes = [192, 48], strides = [1, 1]} : vector<192x64xf32> to vector<192x48xf32>
    %c0_67 = arith.constant 0 : index
    %c0_68 = arith.constant 0 : index
    %74 = vector.load %arg5[%c0_67, %c0_68] : memref<48x16xf32, #tpu.memory_space<vmem>>, vector<48x16xf32>
    %cst_69 = arith.constant dense<0.000000e+00> : vector<192x16xf32>
    %75 = tpu.matmul %73, %74, %cst_69 {dimension_numbers = #tpu.dot_dimension_numbers<[1], [0], [0], [1], [0, 0, 1, 1], [], []>} : vector<192x48xf32>, vector<48x16xf32>, vector<192x16xf32> -> vector<192x16xf32>
    %c0_70 = arith.constant 0 : index
    %c0_71 = arith.constant 0 : index
    %76 = vector.load %arg6[%c0_70, %c0_71] : memref<1x16xf32, #tpu.memory_space<vmem>>, vector<1x16xf32>
    %77 = vector.broadcast %76 : vector<1x16xf32> to vector<192x16xf32>
    %78 = arith.addf %75, %77 : vector<192x16xf32>
    %79 = vector.extract_strided_slice %72 {offsets = [0, 48], sizes = [192, 16], strides = [1, 1]} : vector<192x64xf32> to vector<192x16xf32>
    %80 = tpu.concatenate %78, %79 in 1 : vector<192x16xf32>, vector<192x16xf32> -> vector<192x32xf32>
    %81 = vector.shape_cast %80 : vector<192x32xf32> to vector<12x16x32xf32>
    %c2_i32 = arith.constant 2 : i32
    %82 = arith.subi %0, %c2_i32 : i32
    %83 = tpu.iota {dimensions = array<i32: 0>} : vector<12x16x32xi32>
    %84 = vector.broadcast %82 : i32 to vector<12x16x32xi32>
    %85 = arith.addi %84, %83 : vector<12x16x32xi32>
    %c0_i32 = arith.constant 0 : i32
    %86 = vector.broadcast %c0_i32 : i32 to vector<12x16x32xi32>
    %87 = arith.cmpi sge, %85, %86 : vector<12x16x32xi32>
    %c16_i32 = arith.constant 16 : i32
    %88 = vector.broadcast %c16_i32 : i32 to vector<12x16x32xi32>
    %89 = arith.cmpi slt, %85, %88 : vector<12x16x32xi32>
    %90 = arith.andi %87, %89 : vector<12x16x32xi1>
    %cst_72 = arith.constant 0.000000e+00 : f32
    %91 = vector.broadcast %cst_72 : f32 to vector<12x16x32xf32>
    %92 = arith.select %90, %81, %91 : vector<12x16x32xi1>, vector<12x16x32xf32>
    %c0_73 = arith.constant 0 : index
    %c1_74 = arith.constant 1 : index
    %c0_75 = arith.constant 0 : index
    %93 = vector.load %arg12[%c0_73, %c1_74, %c0_75] : memref<12x18x32xf32, #tpu.memory_space<vmem>>, vector<12x16x32xf32>
    tpu.vector_store %arg12[%c0_73, %c1_74, %c0_75], %92 {strides = array<i32>} : memref<12x18x32xf32, #tpu.memory_space<vmem>>, vector<12x16x32xf32>,
    %cst_76 = arith.constant 0.000000e+00 : f32
    %94 = vector.broadcast %cst_76 : f32 to vector<12x1x32xf32>
    %c0_77 = arith.constant 0 : index
    %c0_78 = arith.constant 0 : index
    %c0_79 = arith.constant 0 : index
    %95 = vector.load %arg12[%c0_77, %c0_78, %c0_79] : memref<12x18x32xf32, #tpu.memory_space<vmem>>, vector<12x1x32xf32>
    tpu.vector_store %arg12[%c0_77, %c0_78, %c0_79], %94 {strides = array<i32>} : memref<12x18x32xf32, #tpu.memory_space<vmem>>, vector<12x1x32xf32>,
    %cst_80 = arith.constant 0.000000e+00 : f32
    %96 = vector.broadcast %cst_80 : f32 to vector<12x1x32xf32>
    %c0_81 = arith.constant 0 : index
    %c17 = arith.constant 17 : index
    %c0_82 = arith.constant 0 : index
    %97 = vector.load %arg12[%c0_81, %c17, %c0_82] : memref<12x18x32xf32, #tpu.memory_space<vmem>>, vector<12x1x32xf32>
    tpu.vector_store %arg12[%c0_81, %c17, %c0_82], %96 {strides = array<i32>} : memref<12x18x32xf32, #tpu.memory_space<vmem>>, vector<12x1x32xf32>,
    %cst_83 = arith.constant 0.000000e+00 : f32
    %98 = vector.broadcast %cst_83 : f32 to vector<160x32xf32>
    %c0_84 = arith.constant 0 : index
    %c0_85 = arith.constant 0 : index
    %c0_86 = arith.constant 0 : index
    %99 = vector.load %arg12[%c0_84, %c0_85, %c0_86] : memref<12x18x32xf32, #tpu.memory_space<vmem>>, vector<10x16x32xf32>
    %100 = vector.shape_cast %99 : vector<10x16x32xf32> to vector<160x32xf32>
    %c0_87 = arith.constant 0 : index
    %c0_88 = arith.constant 0 : index
    %c0_89 = arith.constant 0 : index
    %101 = vector.load %arg7[%c0_87, %c0_88, %c0_89] : memref<9x32x32xf32, #tpu.memory_space<vmem>>, vector<1x32x32xf32>
    %102 = vector.shape_cast %101 : vector<1x32x32xf32> to vector<32x32xf32>
    %cst_90 = arith.constant dense<0.000000e+00> : vector<160x32xf32>
    %103 = tpu.matmul %100, %102, %cst_90 {dimension_numbers = #tpu.dot_dimension_numbers<[1], [0], [0], [1], [0, 0, 1, 1], [], []>} : vector<160x32xf32>, vector<32x32xf32>, vector<160x32xf32> -> vector<160x32xf32>
    %104 = arith.addf %98, %103 : vector<160x32xf32>
    %c0_91 = arith.constant 0 : index
    %c1_92 = arith.constant 1 : index
    %c0_93 = arith.constant 0 : index
    %105 = vector.load %arg12[%c0_91, %c1_92, %c0_93] : memref<12x18x32xf32, #tpu.memory_space<vmem>>, vector<10x16x32xf32>
    %106 = vector.shape_cast %105 : vector<10x16x32xf32> to vector<160x32xf32>
    %c1_94 = arith.constant 1 : index
    %c0_95 = arith.constant 0 : index
    %c0_96 = arith.constant 0 : index
    %107 = vector.load %arg7[%c1_94, %c0_95, %c0_96] : memref<9x32x32xf32, #tpu.memory_space<vmem>>, vector<1x32x32xf32>
    %108 = vector.shape_cast %107 : vector<1x32x32xf32> to vector<32x32xf32>
    %cst_97 = arith.constant dense<0.000000e+00> : vector<160x32xf32>
    %109 = tpu.matmul %106, %108, %cst_97 {dimension_numbers = #tpu.dot_dimension_numbers<[1], [0], [0], [1], [0, 0, 1, 1], [], []>} : vector<160x32xf32>, vector<32x32xf32>, vector<160x32xf32> -> vector<160x32xf32>
    %110 = arith.addf %104, %109 : vector<160x32xf32>
    %c0_98 = arith.constant 0 : index
    %c2_99 = arith.constant 2 : index
    %c0_100 = arith.constant 0 : index
    %111 = vector.load %arg12[%c0_98, %c2_99, %c0_100] : memref<12x18x32xf32, #tpu.memory_space<vmem>>, vector<10x16x32xf32>
    %112 = vector.shape_cast %111 : vector<10x16x32xf32> to vector<160x32xf32>
    %c2_101 = arith.constant 2 : index
    %c0_102 = arith.constant 0 : index
    %c0_103 = arith.constant 0 : index
    %113 = vector.load %arg7[%c2_101, %c0_102, %c0_103] : memref<9x32x32xf32, #tpu.memory_space<vmem>>, vector<1x32x32xf32>
    %114 = vector.shape_cast %113 : vector<1x32x32xf32> to vector<32x32xf32>
    %cst_104 = arith.constant dense<0.000000e+00> : vector<160x32xf32>
    %115 = tpu.matmul %112, %114, %cst_104 {dimension_numbers = #tpu.dot_dimension_numbers<[1], [0], [0], [1], [0, 0, 1, 1], [], []>} : vector<160x32xf32>, vector<32x32xf32>, vector<160x32xf32> -> vector<160x32xf32>
    %116 = arith.addf %110, %115 : vector<160x32xf32>
    %c1_105 = arith.constant 1 : index
    %c0_106 = arith.constant 0 : index
    %c0_107 = arith.constant 0 : index
    %117 = vector.load %arg12[%c1_105, %c0_106, %c0_107] : memref<12x18x32xf32, #tpu.memory_space<vmem>>, vector<10x16x32xf32>
    %118 = vector.shape_cast %117 : vector<10x16x32xf32> to vector<160x32xf32>
    %c3_108 = arith.constant 3 : index
    %c0_109 = arith.constant 0 : index
    %c0_110 = arith.constant 0 : index
    %119 = vector.load %arg7[%c3_108, %c0_109, %c0_110] : memref<9x32x32xf32, #tpu.memory_space<vmem>>, vector<1x32x32xf32>
    %120 = vector.shape_cast %119 : vector<1x32x32xf32> to vector<32x32xf32>
    %cst_111 = arith.constant dense<0.000000e+00> : vector<160x32xf32>
    %121 = tpu.matmul %118, %120, %cst_111 {dimension_numbers = #tpu.dot_dimension_numbers<[1], [0], [0], [1], [0, 0, 1, 1], [], []>} : vector<160x32xf32>, vector<32x32xf32>, vector<160x32xf32> -> vector<160x32xf32>
    %122 = arith.addf %116, %121 : vector<160x32xf32>
    %c1_112 = arith.constant 1 : index
    %c1_113 = arith.constant 1 : index
    %c0_114 = arith.constant 0 : index
    %123 = vector.load %arg12[%c1_112, %c1_113, %c0_114] : memref<12x18x32xf32, #tpu.memory_space<vmem>>, vector<10x16x32xf32>
    %124 = vector.shape_cast %123 : vector<10x16x32xf32> to vector<160x32xf32>
    %c4_115 = arith.constant 4 : index
    %c0_116 = arith.constant 0 : index
    %c0_117 = arith.constant 0 : index
    %125 = vector.load %arg7[%c4_115, %c0_116, %c0_117] : memref<9x32x32xf32, #tpu.memory_space<vmem>>, vector<1x32x32xf32>
    %126 = vector.shape_cast %125 : vector<1x32x32xf32> to vector<32x32xf32>
    %cst_118 = arith.constant dense<0.000000e+00> : vector<160x32xf32>
    %127 = tpu.matmul %124, %126, %cst_118 {dimension_numbers = #tpu.dot_dimension_numbers<[1], [0], [0], [1], [0, 0, 1, 1], [], []>} : vector<160x32xf32>, vector<32x32xf32>, vector<160x32xf32> -> vector<160x32xf32>
    %128 = arith.addf %122, %127 : vector<160x32xf32>
    %c1_119 = arith.constant 1 : index
    %c2_120 = arith.constant 2 : index
    %c0_121 = arith.constant 0 : index
    %129 = vector.load %arg12[%c1_119, %c2_120, %c0_121] : memref<12x18x32xf32, #tpu.memory_space<vmem>>, vector<10x16x32xf32>
    %130 = vector.shape_cast %129 : vector<10x16x32xf32> to vector<160x32xf32>
    %c5_122 = arith.constant 5 : index
    %c0_123 = arith.constant 0 : index
    %c0_124 = arith.constant 0 : index
    %131 = vector.load %arg7[%c5_122, %c0_123, %c0_124] : memref<9x32x32xf32, #tpu.memory_space<vmem>>, vector<1x32x32xf32>
    %132 = vector.shape_cast %131 : vector<1x32x32xf32> to vector<32x32xf32>
    %cst_125 = arith.constant dense<0.000000e+00> : vector<160x32xf32>
    %133 = tpu.matmul %130, %132, %cst_125 {dimension_numbers = #tpu.dot_dimension_numbers<[1], [0], [0], [1], [0, 0, 1, 1], [], []>} : vector<160x32xf32>, vector<32x32xf32>, vector<160x32xf32> -> vector<160x32xf32>
    %134 = arith.addf %128, %133 : vector<160x32xf32>
    %c2_126 = arith.constant 2 : index
    %c0_127 = arith.constant 0 : index
    %c0_128 = arith.constant 0 : index
    %135 = vector.load %arg12[%c2_126, %c0_127, %c0_128] : memref<12x18x32xf32, #tpu.memory_space<vmem>>, vector<10x16x32xf32>
    %136 = vector.shape_cast %135 : vector<10x16x32xf32> to vector<160x32xf32>
    %c6_129 = arith.constant 6 : index
    %c0_130 = arith.constant 0 : index
    %c0_131 = arith.constant 0 : index
    %137 = vector.load %arg7[%c6_129, %c0_130, %c0_131] : memref<9x32x32xf32, #tpu.memory_space<vmem>>, vector<1x32x32xf32>
    %138 = vector.shape_cast %137 : vector<1x32x32xf32> to vector<32x32xf32>
    %cst_132 = arith.constant dense<0.000000e+00> : vector<160x32xf32>
    %139 = tpu.matmul %136, %138, %cst_132 {dimension_numbers = #tpu.dot_dimension_numbers<[1], [0], [0], [1], [0, 0, 1, 1], [], []>} : vector<160x32xf32>, vector<32x32xf32>, vector<160x32xf32> -> vector<160x32xf32>
    %140 = arith.addf %134, %139 : vector<160x32xf32>
    %c2_133 = arith.constant 2 : index
    %c1_134 = arith.constant 1 : index
    %c0_135 = arith.constant 0 : index
    %141 = vector.load %arg12[%c2_133, %c1_134, %c0_135] : memref<12x18x32xf32, #tpu.memory_space<vmem>>, vector<10x16x32xf32>
    %142 = vector.shape_cast %141 : vector<10x16x32xf32> to vector<160x32xf32>
    %c7_136 = arith.constant 7 : index
    %c0_137 = arith.constant 0 : index
    %c0_138 = arith.constant 0 : index
    %143 = vector.load %arg7[%c7_136, %c0_137, %c0_138] : memref<9x32x32xf32, #tpu.memory_space<vmem>>, vector<1x32x32xf32>
    %144 = vector.shape_cast %143 : vector<1x32x32xf32> to vector<32x32xf32>
    %cst_139 = arith.constant dense<0.000000e+00> : vector<160x32xf32>
    %145 = tpu.matmul %142, %144, %cst_139 {dimension_numbers = #tpu.dot_dimension_numbers<[1], [0], [0], [1], [0, 0, 1, 1], [], []>} : vector<160x32xf32>, vector<32x32xf32>, vector<160x32xf32> -> vector<160x32xf32>
    %146 = arith.addf %140, %145 : vector<160x32xf32>
    %c2_140 = arith.constant 2 : index
    %c2_141 = arith.constant 2 : index
    %c0_142 = arith.constant 0 : index
    %147 = vector.load %arg12[%c2_140, %c2_141, %c0_142] : memref<12x18x32xf32, #tpu.memory_space<vmem>>, vector<10x16x32xf32>
    %148 = vector.shape_cast %147 : vector<10x16x32xf32> to vector<160x32xf32>
    %c8_143 = arith.constant 8 : index
    %c0_144 = arith.constant 0 : index
    %c0_145 = arith.constant 0 : index
    %149 = vector.load %arg7[%c8_143, %c0_144, %c0_145] : memref<9x32x32xf32, #tpu.memory_space<vmem>>, vector<1x32x32xf32>
    %150 = vector.shape_cast %149 : vector<1x32x32xf32> to vector<32x32xf32>
    %cst_146 = arith.constant dense<0.000000e+00> : vector<160x32xf32>
    %151 = tpu.matmul %148, %150, %cst_146 {dimension_numbers = #tpu.dot_dimension_numbers<[1], [0], [0], [1], [0, 0, 1, 1], [], []>} : vector<160x32xf32>, vector<32x32xf32>, vector<160x32xf32> -> vector<160x32xf32>
    %152 = arith.addf %146, %151 : vector<160x32xf32>
    %c0_147 = arith.constant 0 : index
    %c0_148 = arith.constant 0 : index
    %153 = vector.load %arg8[%c0_147, %c0_148] : memref<1x32xf32, #tpu.memory_space<vmem>>, vector<1x32xf32>
    %154 = vector.broadcast %153 : vector<1x32xf32> to vector<160x32xf32>
    %155 = arith.addf %152, %154 : vector<160x32xf32>
    %156 = vector.extract_strided_slice %155 {offsets = [0, 0], sizes = [160, 16], strides = [1, 1]} : vector<160x32xf32> to vector<160x16xf32>
    %cst_149 = arith.constant 0.000000e+00 : f32
    %157 = vector.broadcast %cst_149 : f32 to vector<160x16xf32>
    %158 = arith.cmpf ogt, %156, %157 : vector<160x16xf32>
    %cst_150 = arith.constant 2.000000e-01 : f32
    %159 = vector.broadcast %cst_150 : f32 to vector<160x16xf32>
    %160 = arith.mulf %159, %156 : vector<160x16xf32>
    %161 = arith.select %158, %156, %160 : vector<160x16xi1>, vector<160x16xf32>
    %162 = vector.extract_strided_slice %155 {offsets = [0, 16], sizes = [160, 16], strides = [1, 1]} : vector<160x32xf32> to vector<160x16xf32>
    %163 = arith.negf %162 : vector<160x16xf32>
    %164 = math.exp %163 : vector<160x16xf32>
    %cst_151 = arith.constant 1.000000e+00 : f32
    %165 = vector.broadcast %cst_151 : f32 to vector<160x16xf32>
    %166 = arith.addf %165, %164 : vector<160x16xf32>
    %167 = arith.divf %165, %166 : vector<160x16xf32>
    %168 = arith.mulf %161, %167 : vector<160x16xf32>
    %169 = vector.extract_strided_slice %72 {offsets = [16, 0], sizes = [160, 48], strides = [1, 1]} : vector<192x64xf32> to vector<160x48xf32>
    %170 = tpu.concatenate %169, %168 in 1 : vector<160x48xf32>, vector<160x16xf32> -> vector<160x64xf32>
    %171 = vector.shape_cast %170 : vector<160x64xf32> to vector<10x16x64xf32>
    %c1_i32 = arith.constant 1 : i32
    %172 = arith.subi %0, %c1_i32 : i32
    %173 = tpu.iota {dimensions = array<i32: 0>} : vector<10x16x64xi32>
    %174 = vector.broadcast %172 : i32 to vector<10x16x64xi32>
    %175 = arith.addi %174, %173 : vector<10x16x64xi32>
    %c0_i32_152 = arith.constant 0 : i32
    %176 = vector.broadcast %c0_i32_152 : i32 to vector<10x16x64xi32>
    %177 = arith.cmpi sge, %175, %176 : vector<10x16x64xi32>
    %c16_i32_153 = arith.constant 16 : i32
    %178 = vector.broadcast %c16_i32_153 : i32 to vector<10x16x64xi32>
    %179 = arith.cmpi slt, %175, %178 : vector<10x16x64xi32>
    %180 = arith.andi %177, %179 : vector<10x16x64xi1>
    %cst_154 = arith.constant 0.000000e+00 : f32
    %181 = vector.broadcast %cst_154 : f32 to vector<10x16x64xf32>
    %182 = arith.select %180, %171, %181 : vector<10x16x64xi1>, vector<10x16x64xf32>
    %c0_155 = arith.constant 0 : index
    %c1_156 = arith.constant 1 : index
    %c0_157 = arith.constant 0 : index
    %183 = vector.load %arg13[%c0_155, %c1_156, %c0_157] : memref<10x18x64xf32, #tpu.memory_space<vmem>>, vector<10x16x64xf32>
    tpu.vector_store %arg13[%c0_155, %c1_156, %c0_157], %182 {strides = array<i32>} : memref<10x18x64xf32, #tpu.memory_space<vmem>>, vector<10x16x64xf32>,
    %cst_158 = arith.constant 0.000000e+00 : f32
    %184 = vector.broadcast %cst_158 : f32 to vector<10x1x64xf32>
    %c0_159 = arith.constant 0 : index
    %c0_160 = arith.constant 0 : index
    %c0_161 = arith.constant 0 : index
    %185 = vector.load %arg13[%c0_159, %c0_160, %c0_161] : memref<10x18x64xf32, #tpu.memory_space<vmem>>, vector<10x1x64xf32>
    tpu.vector_store %arg13[%c0_159, %c0_160, %c0_161], %184 {strides = array<i32>} : memref<10x18x64xf32, #tpu.memory_space<vmem>>, vector<10x1x64xf32>,
    %cst_162 = arith.constant 0.000000e+00 : f32
    %186 = vector.broadcast %cst_162 : f32 to vector<10x1x64xf32>
    %c0_163 = arith.constant 0 : index
    %c17_164 = arith.constant 17 : index
    %c0_165 = arith.constant 0 : index
    %187 = vector.load %arg13[%c0_163, %c17_164, %c0_165] : memref<10x18x64xf32, #tpu.memory_space<vmem>>, vector<10x1x64xf32>
    tpu.vector_store %arg13[%c0_163, %c17_164, %c0_165], %186 {strides = array<i32>} : memref<10x18x64xf32, #tpu.memory_space<vmem>>, vector<10x1x64xf32>,
    %cst_166 = arith.constant 0.000000e+00 : f32
    %188 = vector.broadcast %cst_166 : f32 to vector<128x128xf32>
    %c0_167 = arith.constant 0 : index
    %c0_168 = arith.constant 0 : index
    %c0_169 = arith.constant 0 : index
    %189 = vector.load %arg13[%c0_167, %c0_168, %c0_169] : memref<10x18x64xf32, #tpu.memory_space<vmem>>, vector<8x16x64xf32>
    %190 = vector.shape_cast %189 : vector<8x16x64xf32> to vector<128x64xf32>
    %c0_170 = arith.constant 0 : index
    %c0_171 = arith.constant 0 : index
    %c0_172 = arith.constant 0 : index
    %191 = vector.load %arg9[%c0_170, %c0_171, %c0_172] : memref<9x64x128xf32, #tpu.memory_space<vmem>>, vector<1x64x128xf32>
    %192 = vector.shape_cast %191 : vector<1x64x128xf32> to vector<64x128xf32>
    %cst_173 = arith.constant dense<0.000000e+00> : vector<128x128xf32>
    %193 = tpu.matmul %190, %192, %cst_173 {dimension_numbers = #tpu.dot_dimension_numbers<[1], [0], [0], [1], [0, 0, 1, 1], [], []>} : vector<128x64xf32>, vector<64x128xf32>, vector<128x128xf32> -> vector<128x128xf32>
    %194 = arith.addf %188, %193 : vector<128x128xf32>
    %c0_174 = arith.constant 0 : index
    %c1_175 = arith.constant 1 : index
    %c0_176 = arith.constant 0 : index
    %195 = vector.load %arg13[%c0_174, %c1_175, %c0_176] : memref<10x18x64xf32, #tpu.memory_space<vmem>>, vector<8x16x64xf32>
    %196 = vector.shape_cast %195 : vector<8x16x64xf32> to vector<128x64xf32>
    %c1_177 = arith.constant 1 : index
    %c0_178 = arith.constant 0 : index
    %c0_179 = arith.constant 0 : index
    %197 = vector.load %arg9[%c1_177, %c0_178, %c0_179] : memref<9x64x128xf32, #tpu.memory_space<vmem>>, vector<1x64x128xf32>
    %198 = vector.shape_cast %197 : vector<1x64x128xf32> to vector<64x128xf32>
    %cst_180 = arith.constant dense<0.000000e+00> : vector<128x128xf32>
    %199 = tpu.matmul %196, %198, %cst_180 {dimension_numbers = #tpu.dot_dimension_numbers<[1], [0], [0], [1], [0, 0, 1, 1], [], []>} : vector<128x64xf32>, vector<64x128xf32>, vector<128x128xf32> -> vector<128x128xf32>
    %200 = arith.addf %194, %199 : vector<128x128xf32>
    %c0_181 = arith.constant 0 : index
    %c2_182 = arith.constant 2 : index
    %c0_183 = arith.constant 0 : index
    %201 = vector.load %arg13[%c0_181, %c2_182, %c0_183] : memref<10x18x64xf32, #tpu.memory_space<vmem>>, vector<8x16x64xf32>
    %202 = vector.shape_cast %201 : vector<8x16x64xf32> to vector<128x64xf32>
    %c2_184 = arith.constant 2 : index
    %c0_185 = arith.constant 0 : index
    %c0_186 = arith.constant 0 : index
    %203 = vector.load %arg9[%c2_184, %c0_185, %c0_186] : memref<9x64x128xf32, #tpu.memory_space<vmem>>, vector<1x64x128xf32>
    %204 = vector.shape_cast %203 : vector<1x64x128xf32> to vector<64x128xf32>
    %cst_187 = arith.constant dense<0.000000e+00> : vector<128x128xf32>
    %205 = tpu.matmul %202, %204, %cst_187 {dimension_numbers = #tpu.dot_dimension_numbers<[1], [0], [0], [1], [0, 0, 1, 1], [], []>} : vector<128x64xf32>, vector<64x128xf32>, vector<128x128xf32> -> vector<128x128xf32>
    %206 = arith.addf %200, %205 : vector<128x128xf32>
    %c1_188 = arith.constant 1 : index
    %c0_189 = arith.constant 0 : index
    %c0_190 = arith.constant 0 : index
    %207 = vector.load %arg13[%c1_188, %c0_189, %c0_190] : memref<10x18x64xf32, #tpu.memory_space<vmem>>, vector<8x16x64xf32>
    %208 = vector.shape_cast %207 : vector<8x16x64xf32> to vector<128x64xf32>
    %c3_191 = arith.constant 3 : index
    %c0_192 = arith.constant 0 : index
    %c0_193 = arith.constant 0 : index
    %209 = vector.load %arg9[%c3_191, %c0_192, %c0_193] : memref<9x64x128xf32, #tpu.memory_space<vmem>>, vector<1x64x128xf32>
    %210 = vector.shape_cast %209 : vector<1x64x128xf32> to vector<64x128xf32>
    %cst_194 = arith.constant dense<0.000000e+00> : vector<128x128xf32>
    %211 = tpu.matmul %208, %210, %cst_194 {dimension_numbers = #tpu.dot_dimension_numbers<[1], [0], [0], [1], [0, 0, 1, 1], [], []>} : vector<128x64xf32>, vector<64x128xf32>, vector<128x128xf32> -> vector<128x128xf32>
    %212 = arith.addf %206, %211 : vector<128x128xf32>
    %c1_195 = arith.constant 1 : index
    %c1_196 = arith.constant 1 : index
    %c0_197 = arith.constant 0 : index
    %213 = vector.load %arg13[%c1_195, %c1_196, %c0_197] : memref<10x18x64xf32, #tpu.memory_space<vmem>>, vector<8x16x64xf32>
    %214 = vector.shape_cast %213 : vector<8x16x64xf32> to vector<128x64xf32>
    %c4_198 = arith.constant 4 : index
    %c0_199 = arith.constant 0 : index
    %c0_200 = arith.constant 0 : index
    %215 = vector.load %arg9[%c4_198, %c0_199, %c0_200] : memref<9x64x128xf32, #tpu.memory_space<vmem>>, vector<1x64x128xf32>
    %216 = vector.shape_cast %215 : vector<1x64x128xf32> to vector<64x128xf32>
    %cst_201 = arith.constant dense<0.000000e+00> : vector<128x128xf32>
    %217 = tpu.matmul %214, %216, %cst_201 {dimension_numbers = #tpu.dot_dimension_numbers<[1], [0], [0], [1], [0, 0, 1, 1], [], []>} : vector<128x64xf32>, vector<64x128xf32>, vector<128x128xf32> -> vector<128x128xf32>
    %218 = arith.addf %212, %217 : vector<128x128xf32>
    %c1_202 = arith.constant 1 : index
    %c2_203 = arith.constant 2 : index
    %c0_204 = arith.constant 0 : index
    %219 = vector.load %arg13[%c1_202, %c2_203, %c0_204] : memref<10x18x64xf32, #tpu.memory_space<vmem>>, vector<8x16x64xf32>
    %220 = vector.shape_cast %219 : vector<8x16x64xf32> to vector<128x64xf32>
    %c5_205 = arith.constant 5 : index
    %c0_206 = arith.constant 0 : index
    %c0_207 = arith.constant 0 : index
    %221 = vector.load %arg9[%c5_205, %c0_206, %c0_207] : memref<9x64x128xf32, #tpu.memory_space<vmem>>, vector<1x64x128xf32>
    %222 = vector.shape_cast %221 : vector<1x64x128xf32> to vector<64x128xf32>
    %cst_208 = arith.constant dense<0.000000e+00> : vector<128x128xf32>
    %223 = tpu.matmul %220, %222, %cst_208 {dimension_numbers = #tpu.dot_dimension_numbers<[1], [0], [0], [1], [0, 0, 1, 1], [], []>} : vector<128x64xf32>, vector<64x128xf32>, vector<128x128xf32> -> vector<128x128xf32>
    %224 = arith.addf %218, %223 : vector<128x128xf32>
    %c2_209 = arith.constant 2 : index
    %c0_210 = arith.constant 0 : index
    %c0_211 = arith.constant 0 : index
    %225 = vector.load %arg13[%c2_209, %c0_210, %c0_211] : memref<10x18x64xf32, #tpu.memory_space<vmem>>, vector<8x16x64xf32>
    %226 = vector.shape_cast %225 : vector<8x16x64xf32> to vector<128x64xf32>
    %c6_212 = arith.constant 6 : index
    %c0_213 = arith.constant 0 : index
    %c0_214 = arith.constant 0 : index
    %227 = vector.load %arg9[%c6_212, %c0_213, %c0_214] : memref<9x64x128xf32, #tpu.memory_space<vmem>>, vector<1x64x128xf32>
    %228 = vector.shape_cast %227 : vector<1x64x128xf32> to vector<64x128xf32>
    %cst_215 = arith.constant dense<0.000000e+00> : vector<128x128xf32>
    %229 = tpu.matmul %226, %228, %cst_215 {dimension_numbers = #tpu.dot_dimension_numbers<[1], [0], [0], [1], [0, 0, 1, 1], [], []>} : vector<128x64xf32>, vector<64x128xf32>, vector<128x128xf32> -> vector<128x128xf32>
    %230 = arith.addf %224, %229 : vector<128x128xf32>
    %c2_216 = arith.constant 2 : index
    %c1_217 = arith.constant 1 : index
    %c0_218 = arith.constant 0 : index
    %231 = vector.load %arg13[%c2_216, %c1_217, %c0_218] : memref<10x18x64xf32, #tpu.memory_space<vmem>>, vector<8x16x64xf32>
    %232 = vector.shape_cast %231 : vector<8x16x64xf32> to vector<128x64xf32>
    %c7_219 = arith.constant 7 : index
    %c0_220 = arith.constant 0 : index
    %c0_221 = arith.constant 0 : index
    %233 = vector.load %arg9[%c7_219, %c0_220, %c0_221] : memref<9x64x128xf32, #tpu.memory_space<vmem>>, vector<1x64x128xf32>
    %234 = vector.shape_cast %233 : vector<1x64x128xf32> to vector<64x128xf32>
    %cst_222 = arith.constant dense<0.000000e+00> : vector<128x128xf32>
    %235 = tpu.matmul %232, %234, %cst_222 {dimension_numbers = #tpu.dot_dimension_numbers<[1], [0], [0], [1], [0, 0, 1, 1], [], []>} : vector<128x64xf32>, vector<64x128xf32>, vector<128x128xf32> -> vector<128x128xf32>
    %236 = arith.addf %230, %235 : vector<128x128xf32>
    %c2_223 = arith.constant 2 : index
    %c2_224 = arith.constant 2 : index
    %c0_225 = arith.constant 0 : index
    %237 = vector.load %arg13[%c2_223, %c2_224, %c0_225] : memref<10x18x64xf32, #tpu.memory_space<vmem>>, vector<8x16x64xf32>
    %238 = vector.shape_cast %237 : vector<8x16x64xf32> to vector<128x64xf32>
    %c8_226 = arith.constant 8 : index
    %c0_227 = arith.constant 0 : index
    %c0_228 = arith.constant 0 : index
    %239 = vector.load %arg9[%c8_226, %c0_227, %c0_228] : memref<9x64x128xf32, #tpu.memory_space<vmem>>, vector<1x64x128xf32>
    %240 = vector.shape_cast %239 : vector<1x64x128xf32> to vector<64x128xf32>
    %cst_229 = arith.constant dense<0.000000e+00> : vector<128x128xf32>
    %241 = tpu.matmul %238, %240, %cst_229 {dimension_numbers = #tpu.dot_dimension_numbers<[1], [0], [0], [1], [0, 0, 1, 1], [], []>} : vector<128x64xf32>, vector<64x128xf32>, vector<128x128xf32> -> vector<128x128xf32>
    %242 = arith.addf %236, %241 : vector<128x128xf32>
    %c0_230 = arith.constant 0 : index
    %c0_231 = arith.constant 0 : index
    %243 = vector.load %arg10[%c0_230, %c0_231] : memref<1x128xf32, #tpu.memory_space<vmem>>, vector<1x128xf32>
    %244 = vector.broadcast %243 : vector<1x128xf32> to vector<128x128xf32>
    %245 = arith.addf %242, %244 : vector<128x128xf32>
    %246 = vector.extract_strided_slice %245 {offsets = [0, 0], sizes = [128, 64], strides = [1, 1]} : vector<128x128xf32> to vector<128x64xf32>
    %cst_232 = arith.constant 0.000000e+00 : f32
    %247 = vector.broadcast %cst_232 : f32 to vector<128x64xf32>
    %248 = arith.cmpf ogt, %246, %247 : vector<128x64xf32>
    %cst_233 = arith.constant 2.000000e-01 : f32
    %249 = vector.broadcast %cst_233 : f32 to vector<128x64xf32>
    %250 = arith.mulf %249, %246 : vector<128x64xf32>
    %251 = arith.select %248, %246, %250 : vector<128x64xi1>, vector<128x64xf32>
    %252 = vector.extract_strided_slice %245 {offsets = [0, 64], sizes = [128, 64], strides = [1, 1]} : vector<128x128xf32> to vector<128x64xf32>
    %253 = arith.negf %252 : vector<128x64xf32>
    %254 = math.exp %253 : vector<128x64xf32>
    %cst_234 = arith.constant 1.000000e+00 : f32
    %255 = vector.broadcast %cst_234 : f32 to vector<128x64xf32>
    %256 = arith.addf %255, %254 : vector<128x64xf32>
    %257 = arith.divf %255, %256 : vector<128x64xf32>
    %258 = arith.mulf %251, %257 : vector<128x64xf32>
    %c1_235 = arith.constant 1 : index
    %c1_236 = arith.constant 1 : index
    %c0_237 = arith.constant 0 : index
    %259 = vector.load %arg13[%c1_235, %c1_236, %c0_237] : memref<10x18x64xf32, #tpu.memory_space<vmem>>, vector<8x16x64xf32>
    %260 = vector.shape_cast %259 : vector<8x16x64xf32> to vector<128x64xf32>
    %261 = arith.addf %260, %258 : vector<128x64xf32>
    %262 = vector.shape_cast %261 : vector<128x64xf32> to vector<1x8x16x64xf32>
    %c0_238 = arith.constant 0 : index
    %c0_239 = arith.constant 0 : index
    %c0_240 = arith.constant 0 : index
    %c0_241 = arith.constant 0 : index
    %263 = vector.load %arg11[%c0_238, %c0_239, %c0_240, %c0_241] : memref<1x8x16x64xf32, #tpu.memory_space<vmem>>, vector<1x8x16x64xf32>
    tpu.vector_store %arg11[%c0_238, %c0_239, %c0_240, %c0_241], %262 {strides = array<i32>} : memref<1x8x16x64xf32, #tpu.memory_space<vmem>>, vector<1x8x16x64xf32>,
    return
  }
  func.func @transform_0(%arg0: i32, %arg1: i32) -> (i32, i32, i32, i32) {
    %c2_i32 = arith.constant 2 : i32
    %0 = arith.muli %arg0, %c2_i32 : i32
    %1 = arith.addi %0, %arg1 : i32
    %c0_i32 = arith.constant 0 : i32
    %c0_i32_0 = arith.constant 0 : i32
    %c0_i32_1 = arith.constant 0 : i32
    %c0_i32_2 = arith.constant 0 : i32
    return %1, %c0_i32, %c0_i32_0, %c0_i32_1 : i32, i32, i32, i32
  }
  func.func @transform_1(%arg0: i32, %arg1: i32) -> (i32, i32, i32) {
    %c0_i32 = arith.constant 0 : i32
    %c0_i32_0 = arith.constant 0 : i32
    %c0_i32_1 = arith.constant 0 : i32
    %c0_i32_2 = arith.constant 0 : i32
    return %c0_i32, %c0_i32_0, %c0_i32_1 : i32, i32, i32
  }
  func.func @transform_2(%arg0: i32, %arg1: i32) -> (i32, i32) {
    %c0_i32 = arith.constant 0 : i32
    %c0_i32_0 = arith.constant 0 : i32
    %c0_i32_1 = arith.constant 0 : i32
    return %c0_i32, %c0_i32_0 : i32, i32
  }
  func.func @transform_3(%arg0: i32, %arg1: i32) -> (i32, i32) {
    %c0_i32 = arith.constant 0 : i32
    %c0_i32_0 = arith.constant 0 : i32
    %c0_i32_1 = arith.constant 0 : i32
    return %c0_i32, %c0_i32_0 : i32, i32
  }
  func.func @transform_4(%arg0: i32, %arg1: i32) -> (i32, i32) {
    %c0_i32 = arith.constant 0 : i32
    %c0_i32_0 = arith.constant 0 : i32
    %c0_i32_1 = arith.constant 0 : i32
    return %c0_i32, %c0_i32_0 : i32, i32
  }
  func.func @transform_5(%arg0: i32, %arg1: i32) -> (i32, i32, i32) {
    %c0_i32 = arith.constant 0 : i32
    %c0_i32_0 = arith.constant 0 : i32
    %c0_i32_1 = arith.constant 0 : i32
    %c0_i32_2 = arith.constant 0 : i32
    return %c0_i32, %c0_i32_0, %c0_i32_1 : i32, i32, i32
  }
  func.func @transform_6(%arg0: i32, %arg1: i32) -> (i32, i32) {
    %c0_i32 = arith.constant 0 : i32
    %c0_i32_0 = arith.constant 0 : i32
    %c0_i32_1 = arith.constant 0 : i32
    return %c0_i32, %c0_i32_0 : i32, i32
  }
  func.func @transform_7(%arg0: i32, %arg1: i32) -> (i32, i32, i32) {
    %c0_i32 = arith.constant 0 : i32
    %c0_i32_0 = arith.constant 0 : i32
    %c0_i32_1 = arith.constant 0 : i32
    %c0_i32_2 = arith.constant 0 : i32
    return %c0_i32, %c0_i32_0, %c0_i32_1 : i32, i32, i32
  }
  func.func @transform_8(%arg0: i32, %arg1: i32) -> (i32, i32) {
    %c0_i32 = arith.constant 0 : i32
    %c0_i32_0 = arith.constant 0 : i32
    %c0_i32_1 = arith.constant 0 : i32
    return %c0_i32, %c0_i32_0 : i32, i32
  }
  func.func @transform_9(%arg0: i32, %arg1: i32) -> (i32, i32, i32, i32) {
    %c0_i32 = arith.constant 0 : i32
    %c0_i32_0 = arith.constant 0 : i32
    %c0_i32_1 = arith.constant 0 : i32
    return %arg0, %arg1, %c0_i32, %c0_i32_0 : i32, i32, i32, i32
  }
}

</mosaic_0001>

<bundles_post_ra>
// kernel: fill_conv_forward.1
= control target key start
LH: loop header
LB: loop body
LE: loop exit
PB: predicated region body
PF: predicated region fallthrough
CT: control target
= control target key end

     0   :  { %14 = vsyncpa [#allocation5], 0  ;;  %s15870_s0 = inlined_call_operand.vmem [shape: f32[4,14,18,4], index: 0, kind: input, shape index: {}]   ;;  %s15871_s1 = inlined_call_operand.vmem [shape: f32[9,4,64], index: 1, kind: input, shape index: {}]   ;;  %s15872_s2 = inlined_call_operand.vmem [shape: f32[1,64], index: 2, kind: input, shape index: {}]   ;;  %s15873_s3 = inlined_call_operand.vmem [shape: f32[48,16], index: 3, kind: input, shape index: {}]   ;;  %s15874_s4 = inlined_call_operand.vmem [shape: f32[1,16], index: 4, kind: input, shape index: {}]   ;;  %s15875_s5 = inlined_call_operand.vmem [shape: f32[9,32,32], index: 5, kind: input, shape index: {}]   ;;  %s15876_s6 = inlined_call_operand.vmem [shape: f32[1,32], index: 6, kind: input, shape index: {}]   ;;  %s15877_s7 = inlined_call_operand.vmem [shape: f32[9,64,128], index: 7, kind: input, shape index: {}]   ;;  %s15878_s8 = inlined_call_operand.vmem [shape: f32[1,128], index: 8, kind: input, shape index: {}]   ;;  %s15879_s9 = inlined_call_operand.hbm [shape: f32[2,16,16,64], index: 9, kind: output, shape index: {}]  }
   0x1   :  { %16 = vsyncpa [#allocation5 + $0x1], 0  ;;  %s12812_s30 = smov 0   ;;  %s12814_s10 = smov 0  }
   0x2   :  { %s12816_s11 = smov 0   ;;  %s12818_s12 = smov 0  }
   0x3   :  { %s12820_s13 = smov 0   ;;  %s12822_s14 = smov 0  }
   0x4   :  { %s12824_s15 = smov 0   ;;  %s12826_s16 = smov 0  }
   0x5 LB: > { %s9048_s17 = sadd.s32 4294967295, %s12752_s16   ;;  %s9049_s18 = sadd.s32 4294967294, %s12752_s16   ;;  %s12752_s16 = sphi %s12826_s16, %s22_s16   ;;  %s12748_s15 = sphi %s12824_s15, %s16011_s15   ;;  %s12744_s14 = sphi %s12822_s14, %s16010_s14   ;;  %s12740_s13 = sphi %s12820_s13, %s16009_s13   ;;  %s12736_s12 = sphi %s12818_s12, %s16008_s12   ;;  %s12732_s11 = sphi %s12816_s11, %s16007_s11   ;;  %s12728_s10 = sphi %s12814_s10, %s16006_s10   ;;  %s12724_s30 = sphi %s12812_s30, %s16005_s30  }
   0x6   : > { %s31_s19 = sadd.s32 1, %s12744_s14  ;;  %s34_s20 = sadd.s32 1, %s12748_s15 }
   0x7   : > { %p32_p0 = scmp.ge.s32.totalorder %s31_s19, 2  ;;  %p251_p1 = scmp.ne.s32.totalorder %s12732_s11, %s12728_s10 }
   0x8   : > { %p252_p2 = scmp.eq.s32.totalorder %s9048_s17, 3  ;;  %p257_p5 = scmp.ne.s32.totalorder %s12728_s10, %s12724_s30 }
   0x9   : > { %s16013_s19 = smov (%p32_p0, %s31_s19), 0  ;;  %s16015_s20 = smov (!%p32_p0, %s34_s20), %s12748_s15 }
   0xa   : > { %15912 = sst [smem:[#allocation7_spill]] %s16013_s19  ;;  %s237_s21 = ssub.s32 %s12744_s14, %s16013_s19 }
   0xb   : > { %p12863_p3 = por %p252_p2, %p251_p1  ;;  %p36_p4 = scmp.ge.s32.totalorder %s16015_s20, 2 }
   0xc   : > { %p258_p6 = scmp.eq.s32.totalorder %s9049_s18, 3  ;;  %p9054_p7 = scmp.ge.s32.totalorder %s12752_s16, 1 }
   0xd   : > { %s16017_s20 = smov (%p36_p4, %s16015_s20), 0  ;;  %p312_p9 = scmp.lt.s32.totalorder %s12752_s16, 5 }
   0xe   : > { %15914 = sst [smem:[#allocation8_spill]] %s16017_s20  ;;  %p12872_p8 = por %p258_p6, %p257_p5 }
   0xf   : > { %s236_s24 = ssub.s32 %s12748_s15, %s16017_s20  ;;  %s241_s25 = sadd.s32 1, %s12732_s11 }
  0x10   : > { %s238_s26 = sor.u32 %s237_s21, %s236_s24  ;;  %p313_p10 = pnand %p9054_p7, %p312_p9 }
  0x11   : > { %p239_p11 = scmp.eq.s32.totalorder %s238_s26, 0 }
  0x12   : > { %316 = sbr.rel (%p313_p10) target bundleno = 2304 (0x900), region = 56 }
  0x13   : > { %s12881_s27 = scalar_select %p239_p11, %s12732_s11, %s241_s25  }
  0x19   : > { %v9059_v0 = vld [vmem:[%s15871_s1 + $0x4] sm:$0xf]  ;;  %vm485_vm0 = vcmask 1043456   ;;  %s9056_s17 = sshll.u32 %s12740_s13, 1  ;;  %v385_v1 = vld [vmem:[%s15871_s1] sm:$0xf] }
  0x1a   : > { %10617 = vmatprep.subr.msk.mxu0 %vm485_vm0, %v9059_v0  ;;  %s351_s18 = sadd.s32 %s12736_s12, %s9056_s17  ;;  %vm412_vm1 = vcmask 31744   ;;  %v9110_v5 = vld [vmem:[%s15871_s1 + $0x8] sm:$0xf]  ;;  %v9160_v30 = vld [vmem:[%s15871_s1 + $0xc] sm:$0xf]  ;;  %vm3222_vm4 = vcmask 392192  }
  0x1b   : > { %10618 = vmatpush3.msk.msra.mxu0 %vm485_vm0, %v9059_v0  ;;  %p352_p12 = scmp.lt.s32.totalorder %s351_s18, 3  ;;  %v9210_v55 = vld [vmem:[%s15871_s1 + $0x10] sm:$0xf]  ;;  %s12756_s17 = smov 112  }
  0x1c   : > { %10655 = vmatprep.subr.msk.mxu0 %vm485_vm0, %v385_v1  ;;  %s347_s19 = sand.u32 1, %s12728_s10  }
  0x1d   : > { %s16019_s18 = smov (!%p352_p12, %s351_s18), 3 }
  0x1e   : > { %s12421_s21 = smul.u32 336, %s16019_s18  ;;  %s9058_s18 = sshll.u32 %s12736_s12, 3 }
  0x1f   : > { %s9696_s20 = sadd.s32 4294967295, %s9058_s18 }
  0x20   : > { %s12897_s26 = scalar_lea.vmem %s15870_s0, %s12421_s21  ;;  %s9462_s21 = sadd.s32 4294967294, %s9058_s18 }
  0x21   : > { %v386_v2 = vld [vmem:[%s12897_s26 + $0x1] sm:$0xff]  ;;  %v387_v3 = vld [vmem:[%s12897_s26 + $0x9] sm:$0xff]  ;;  %v12902_v4 = vld [vmem:[%s12897_s26 + $0x19] sm:$0xff]  ;;  %s9925_s18 = sshll.u32 %s12740_s13, 5 }
  0x22   : > { %10619 = vmatprep.mubr.msk.f32.mxu0 %vm412_vm1, %v386_v2  ;;  %v12913_v6 = vld [vmem:[%s12897_s26 + $0x21] sm:$0xff]  ;;  %v12916_v7 = vld [vmem:[%s12897_s26 + $0x31] sm:$0xff]  ;;  %v12924_v8 = vld [vmem:[%s12897_s26 + $0x39] sm:$0xff] }
  0x23   : > { %10620 = vmatmul.mubr.msk.f32.vlgmr.msra.gmra.mrb[0].mxu0 %vm412_vm1, %v387_v3  ;;  %v12927_v9 = vld [vmem:[%s12897_s26 + $0x49] sm:$0xff]  ;;  %v12934_v10 = vld [vmem:[%s12897_s26 + $0x51] sm:$0xff]  ;;  %v12937_v11 = vld [vmem:[%s12897_s26 + $0x61] sm:$0xff] }
  0x24   : > { %10656 = vmatpush3.msk.msra.mxu0 %vm485_vm0, %v385_v1  ;;  %10622 = vmatprep.mubr.msk.f32.mxu0 %vm412_vm1, %v12902_v4  ;;  %v12944_v12 = vld [vmem:[%s12897_s26 + $0x69] sm:$0xff]  ;;  %v12947_v13 = vld [vmem:[%s12897_s26 + $0x79] sm:$0xff]  ;;  %v12954_v14 = vld [vmem:[%s12897_s26 + $0x81] sm:$0xff] }
  0x25   : > { %10693 = vmatprep.subr.msk.mxu0 %vm485_vm0, %v9110_v5  ;;  %v12957_v15 = vld [vmem:[%s12897_s26 + $0x91] sm:$0xff]  ;;  %v12964_v16 = vld [vmem:[%s12897_s26 + $0x99] sm:$0xff]  ;;  %v12967_v17 = vld [vmem:[%s12897_s26 + $0xa9] sm:$0xff] }
  0x26   : > { %v12974_v18 = vld [vmem:[%s12897_s26 + $0xb1] sm:$0xff]  ;;  %v12977_v19 = vld [vmem:[%s12897_s26 + $0xc1] sm:$0xff]  ;;  %v12984_v20 = vld [vmem:[%s12897_s26 + $0xc9] sm:$0xff] }
  0x27   : > { %10623 = vmatmul.mubr.msk.f32.gmra.mrb[2].mxu0 %vm412_vm1, %v12913_v6  ;;  %v12987_v21 = vld [vmem:[%s12897_s26 + $0xd9] sm:$0xff]  ;;  %v12994_v22 = vld [vmem:[%s12897_s26 + $0xe1] sm:$0xff]  ;;  %v12997_v23 = vld [vmem:[%s12897_s26 + $0xf1] sm:$0xff] }
  0x28   : > { %10625 = vmatprep.mubr.msk.f32.mxu0 %vm412_vm1, %v12916_v7  ;;  %v13004_v24 = vld [vmem:[%s12897_s26 + $0xf9] sm:$0xff]  ;;  %v13007_v25 = vld [vmem:[%s12897_s26 + $0x109] sm:$0xff]  ;;  %v13014_v26 = vld [vmem:[%s12897_s26 + $0x111] sm:$0xff] }
  0x29   : > { %v361_v27 = vld [vmem:[%s12897_s26] sm:$0xff]  ;;  %v362_v28 = vld [vmem:[%s12897_s26 + $0x8] sm:$0xff]  ;;  %v13022_v29 = vld [vmem:[%s12897_s26 + $0x18] sm:$0xff] }
  0x2a   : > { %v13032_v31 = vld [vmem:[%s12897_s26 + $0x20] sm:$0xff]  ;;  %v13035_v32 = vld [vmem:[%s12897_s26 + $0x30] sm:$0xff]  ;;  %v13043_v33 = vld [vmem:[%s12897_s26 + $0x38] sm:$0xff] }
  0x2b   : > { %10626 = vmatmul.mubr.msk.f32.gmra.mrb[4].mxu0 %vm412_vm1, %v12924_v8  ;;  %v13046_v34 = vld [vmem:[%s12897_s26 + $0x48] sm:$0xff]  ;;  %v13053_v35 = vld [vmem:[%s12897_s26 + $0x50] sm:$0xff]  ;;  %v13056_v36 = vld [vmem:[%s12897_s26 + $0x60] sm:$0xff] }
  0x2c   : > { %10628 = vmatprep.mubr.msk.f32.mxu0 %vm412_vm1, %v12927_v9  ;;  %v13063_v37 = vld [vmem:[%s12897_s26 + $0x68] sm:$0xff]  ;;  %v13066_v38 = vld [vmem:[%s12897_s26 + $0x78] sm:$0xff]  ;;  %v13073_v39 = vld [vmem:[%s12897_s26 + $0x80] sm:$0xff] }
  0x2d   : > { %v13076_v40 = vld [vmem:[%s12897_s26 + $0x90] sm:$0xff]  ;;  %v13083_v41 = vld [vmem:[%s12897_s26 + $0x98] sm:$0xff]  ;;  %v13086_v42 = vld [vmem:[%s12897_s26 + $0xa8] sm:$0xff] }
  0x2e   : > { %v13093_v43 = vld [vmem:[%s12897_s26 + $0xb0] sm:$0xff]  ;;  %v13096_v44 = vld [vmem:[%s12897_s26 + $0xc0] sm:$0xff]  ;;  %v13103_v45 = vld [vmem:[%s12897_s26 + $0xc8] sm:$0xff] }
  0x2f   : > { %10629 = vmatmul.mubr.msk.f32.gmra.mrb[6].mxu0 %vm412_vm1, %v12934_v10  ;;  %v13106_v46 = vld [vmem:[%s12897_s26 + $0xd8] sm:$0xff]  ;;  %v13113_v47 = vld [vmem:[%s12897_s26 + $0xe0] sm:$0xff]  ;;  %v13116_v48 = vld [vmem:[%s12897_s26 + $0xf0] sm:$0xff] }
  0x30   : > { %10631 = vmatprep.mubr.msk.f32.mxu0 %vm412_vm1, %v12937_v11  ;;  %v13123_v49 = vld [vmem:[%s12897_s26 + $0xf8] sm:$0xff]  ;;  %v13126_v50 = vld [vmem:[%s12897_s26 + $0x108] sm:$0xff]  ;;  %v13133_v51 = vld [vmem:[%s12897_s26 + $0x110] sm:$0xff] }
  0x31   : > { %v934_v52 = vld [vmem:[%s12897_s26 + $0x2] sm:$0xff]  ;;  %v935_v53 = vld [vmem:[%s12897_s26 + $0xa] sm:$0xff]  ;;  %v13141_v54 = vld [vmem:[%s12897_s26 + $0x1a] sm:$0xff] }
  0x32   : > { %v13151_v56 = vld [vmem:[%s12897_s26 + $0x22] sm:$0xff]  ;;  %v13154_v57 = vld [vmem:[%s12897_s26 + $0x32] sm:$0xff]  ;;  %v13162_v58 = vld [vmem:[%s12897_s26 + $0x3a] sm:$0xff] }
  0x33   : > { %10632 = vmatmul.mubr.msk.f32.gmra.mrb[8].mxu0 %vm412_vm1, %v12944_v12  ;;  %v13165_v59 = vld [vmem:[%s12897_s26 + $0x4a] sm:$0xff]  ;;  %v13172_v60 = vld [vmem:[%s12897_s26 + $0x52] sm:$0xff]  ;;  %v13175_v61 = vld [vmem:[%s12897_s26 + $0x62] sm:$0xff] }
  0x34   : > { %10634 = vmatprep.mubr.msk.f32.mxu0 %vm412_vm1, %v12947_v13  ;;  %v13182_v62 = vld [vmem:[%s12897_s26 + $0x6a] sm:$0xff]  ;;  %v13185_v63 = vld [vmem:[%s12897_s26 + $0x7a] sm:$0xff]  ;;  %v13192_v0 = vld [vmem:[%s12897_s26 + $0x82] sm:$0xff] }
  0x35   : > { %v13195_v1 = vld [vmem:[%s12897_s26 + $0x92] sm:$0xff]  ;;  %v13202_v2 = vld [vmem:[%s12897_s26 + $0x9a] sm:$0xff]  ;;  %v13205_v3 = vld [vmem:[%s12897_s26 + $0xaa] sm:$0xff] }
  0x36   : > { %15916 = vst [vmem:[#allocation9_spill] sm:$0xff] %v13195_v1 }
  0x37   : > { %10635 = vmatmul.mubr.msk.f32.gmra.mrb[10].mxu0 %vm412_vm1, %v12954_v14 }
  0x38   : > { %10637 = vmatprep.mubr.msk.f32.mxu0 %vm412_vm1, %v12957_v15 }
  0x3b   : > { %10638 = vmatmul.mubr.msk.f32.gmra.mrb[12].mxu0 %vm412_vm1, %v12964_v16 }
  0x3c   : > { %10640 = vmatprep.mubr.msk.f32.mxu0 %vm412_vm1, %v12967_v17 }
  0x3f   : > { %10641 = vmatmul.mubr.msk.f32.gmra.mrb[14].mxu0 %vm412_vm1, %v12974_v18 }
  0x40   : > { %10643 = vmatprep.mubr.msk.f32.mxu0 %vm412_vm1, %v12977_v19 }
  0x43   : > { %10644 = vmatmul.mubr.msk.f32.gmra.mrb[16].mxu0 %vm412_vm1, %v12984_v20 }
  0x44   : > { %10646 = vmatprep.mubr.msk.f32.mxu0 %vm412_vm1, %v12987_v21 }
  0x47   : > { %10647 = vmatmul.mubr.msk.f32.gmra.mrb[18].mxu0 %vm412_vm1, %v12994_v22 }
  0x48   : > { %10649 = vmatprep.mubr.msk.f32.mxu0 %vm412_vm1, %v12997_v23 }
  0x4b   : > { %10650 = vmatmul.mubr.msk.f32.gmra.mrb[20].mxu0 %vm412_vm1, %v13004_v24 }
  0x4c   : > { %10652 = vmatprep.mubr.msk.f32.mxu0 %vm412_vm1, %v13007_v25 }
  0x4f   : > { %10653 = vmatmul.mubr.msk.f32.gmra.mrb[22].mxu0 %vm412_vm1, %v13014_v26 }
  0x50   : > { %10657 = vmatprep.mubr.msk.f32.mxu0 %vm412_vm1, %v361_v27  ;;  %v13215_v27 = vld [vmem:[%s12897_s26 + $0xc2] sm:$0xff] }
  0x51   : > { %15918 = vst [vmem:[#allocation11_spill] sm:$0xff] %v13215_v27 }
  0x53   : > { %10658 = vmatmul.mubr.msk.f32.vlgmr.msra.gmra.mrb[0].mxu0 %vm412_vm1, %v362_v28  ;;  %v13222_v28 = vld [vmem:[%s12897_s26 + $0xca] sm:$0xff] }
  0x54   : > { %10694 = vmatpush3.msk.msra.mxu0 %vm485_vm0, %v9110_v5  ;;  %10660 = vmatprep.mubr.msk.f32.mxu0 %vm412_vm1, %v13022_v29  ;;  %v13212_v5 = vld [vmem:[%s12897_s26 + $0xb2] sm:$0xff] }
  0x55   : > { %10731 = vmatprep.subr.msk.mxu0 %vm485_vm0, %v9160_v30  ;;  %15917 = vst [vmem:[#allocation10_spill] sm:$0xff] %v13212_v5 }
  0x57   : > { %10661 = vmatmul.mubr.msk.f32.gmra.mrb[2].mxu0 %vm412_vm1, %v13032_v31 }
  0x58   : > { %10663 = vmatprep.mubr.msk.f32.mxu0 %vm412_vm1, %v13035_v32 }
  0x5b   : > { %10664 = vmatmul.mubr.msk.f32.gmra.mrb[4].mxu0 %vm412_vm1, %v13043_v33 }
  0x5c   : > { %10666 = vmatprep.mubr.msk.f32.mxu0 %vm412_vm1, %v13046_v34 }
  0x5f   : > { %10667 = vmatmul.mubr.msk.f32.gmra.mrb[6].mxu0 %vm412_vm1, %v13053_v35 }
  0x60   : > { %10669 = vmatprep.mubr.msk.f32.mxu0 %vm412_vm1, %v13056_v36 }
  0x63   : > { %10670 = vmatmul.mubr.msk.f32.gmra.mrb[8].mxu0 %vm412_vm1, %v13063_v37 }
  0x64   : > { %10672 = vmatprep.mubr.msk.f32.mxu0 %vm412_vm1, %v13066_v38 }
  0x67   : > { %10673 = vmatmul.mubr.msk.f32.gmra.mrb[10].mxu0 %vm412_vm1, %v13073_v39 }
  0x68   : > { %10675 = vmatprep.mubr.msk.f32.mxu0 %vm412_vm1, %v13076_v40 }
  0x6b   : > { %10676 = vmatmul.mubr.msk.f32.gmra.mrb[12].mxu0 %vm412_vm1, %v13083_v41 }
  0x6c   : > { %10678 = vmatprep.mubr.msk.f32.mxu0 %vm412_vm1, %v13086_v42 }
  0x6f   : > { %10679 = vmatmul.mubr.msk.f32.gmra.mrb[14].mxu0 %vm412_vm1, %v13093_v43 }
  0x70   : > { %10681 = vmatprep.mubr.msk.f32.mxu0 %vm412_vm1, %v13096_v44 }
  0x73   : > { %10682 = vmatmul.mubr.msk.f32.gmra.mrb[16].mxu0 %vm412_vm1, %v13103_v45 }
  0x74   : > { %10684 = vmatprep.mubr.msk.f32.mxu0 %vm412_vm1, %v13106_v46 }
  0x77   : > { %10685 = vmatmul.mubr.msk.f32.gmra.mrb[18].mxu0 %vm412_vm1, %v13113_v47 }
  0x78   : > { %10687 = vmatprep.mubr.msk.f32.mxu0 %vm412_vm1, %v13116_v48 }
  0x7b   : > { %10688 = vmatmul.mubr.msk.f32.gmra.mrb[20].mxu0 %vm412_vm1, %v13123_v49 }
  0x7c   : > { %10690 = vmatprep.mubr.msk.f32.mxu0 %vm412_vm1, %v13126_v50 }
  0x7f   : > { %10691 = vmatmul.mubr.msk.f32.gmra.mrb[22].mxu0 %vm412_vm1, %v13133_v51 }
  0x80   : > { %10695 = vmatprep.mubr.msk.f32.mxu0 %vm412_vm1, %v934_v52  ;;  %v13232_v52 = vld [vmem:[%s12897_s26 + $0xe2] sm:$0xff] }
  0x83   : > { %10696 = vmatmul.mubr.msk.f32.vlgmr.msra.gmra.mrb[0].mxu0 %vm412_vm1, %v935_v53  ;;  %v13235_v53 = vld [vmem:[%s12897_s26 + $0xf2] sm:$0xff] }
  0x84   : > { %10732 = vmatpush3.msk.msra.mxu0 %vm485_vm0, %v9160_v30  ;;  %10698 = vmatprep.mubr.msk.f32.mxu0 %vm412_vm1, %v13141_v54  ;;  %v13225_v30 = vld [vmem:[%s12897_s26 + $0xda] sm:$0xff]  ;;  %15920 = vst [vmem:[#allocation13_spill] sm:$0xff] %v13235_v53 }
  0x85   : > { %10769 = vmatprep.subr.msk.mxu0 %vm485_vm0, %v9210_v55  ;;  %15919 = vst [vmem:[#allocation12_spill] sm:$0xff] %v13225_v30 }
  0x87   : > { %10699 = vmatmul.mubr.msk.f32.gmra.mrb[2].mxu0 %vm412_vm1, %v13151_v56 }
  0x88   : > { %10701 = vmatprep.mubr.msk.f32.mxu0 %vm412_vm1, %v13154_v57 }
  0x8b   : > { %10702 = vmatmul.mubr.msk.f32.gmra.mrb[4].mxu0 %vm412_vm1, %v13162_v58 }
  0x8c   : > { %10704 = vmatprep.mubr.msk.f32.mxu0 %vm412_vm1, %v13165_v59 }
  0x8f   : > { %10705 = vmatmul.mubr.msk.f32.gmra.mrb[6].mxu0 %vm412_vm1, %v13172_v60 }
  0x90   : > { %10707 = vmatprep.mubr.msk.f32.mxu0 %vm412_vm1, %v13175_v61 }
  0x93   : > { %10708 = vmatmul.mubr.msk.f32.gmra.mrb[8].mxu0 %vm412_vm1, %v13182_v62 }
  0x94   : > { %10710 = vmatprep.mubr.msk.f32.mxu0 %vm412_vm1, %v13185_v63 }
  0x97   : > { %10711 = vmatmul.mubr.msk.f32.gmra.mrb[10].mxu0 %vm412_vm1, %v13192_v0 }
  0x98   : > { %10713 = vmatprep.mubr.msk.f32.mxu0 %vm412_vm1, %v13195_v1 }
  0x9b   : > { %10714 = vmatmul.mubr.msk.f32.gmra.mrb[12].mxu0 %vm412_vm1, %v13202_v2 }
  0x9c   : > { %10716 = vmatprep.mubr.msk.f32.mxu0 %vm412_vm1, %v13205_v3 }
  0x9f   : > { %10717 = vmatmul.mubr.msk.f32.gmra.mrb[14].mxu0 %vm412_vm1, %v13212_v5  ;;  %v13245_v5 = vld [vmem:[%s12897_s26 + $0x10a] sm:$0xff] }
  0xa0   : > { %10719 = vmatprep.mubr.msk.f32.mxu0 %vm412_vm1, %v13215_v27  ;;  %v13242_v27 = vld [vmem:[%s12897_s26 + $0xfa] sm:$0xff]  ;;  %15921 = vst [vmem:[#allocation14_spill] sm:$0xff] %v13245_v5 }
  0xa3   : > { %10720 = vmatmul.mubr.msk.f32.gmra.mrb[16].mxu0 %vm412_vm1, %v13222_v28 }
  0xa4   : > { %10722 = vmatprep.mubr.msk.f32.mxu0 %vm412_vm1, %v13225_v30  ;;  %v13252_v30 = vld [vmem:[%s12897_s26 + $0x112] sm:$0xff] }
  0xa7   : > { %10723 = vmatmul.mubr.msk.f32.gmra.mrb[18].mxu0 %vm412_vm1, %v13232_v52 }
  0xa8   : > { %10725 = vmatprep.mubr.msk.f32.mxu0 %vm412_vm1, %v13235_v53  ;;  %v9260_v53 = vld [vmem:[%s15871_s1 + $0x14] sm:$0xf] }
  0xab   : > { %10726 = vmatmul.mubr.msk.f32.gmra.mrb[20].mxu0 %vm412_vm1, %v13242_v27 }
  0xac   : > { %10728 = vmatprep.mubr.msk.f32.mxu0 %vm412_vm1, %v13245_v5 }
  0xaf   : > { %10729 = vmatmul.mubr.msk.f32.gmra.mrb[22].mxu0 %vm412_vm1, %v13252_v30 }
  0xb0   : > { %10733 = vmatprep.mubr.msk.f32.mxu0 %vm412_vm1, %v13022_v29  ;;  %v13304_v29 = vld [vmem:[%s12897_s26 + $0x120] sm:$0xff] }
  0xb3   : > { %10734 = vmatmul.mubr.msk.f32.vlgmr.msra.gmra.mrb[0].mxu0 %vm412_vm1, %v13032_v31  ;;  %v13311_v31 = vld [vmem:[%s12897_s26 + $0x128] sm:$0xff] }
  0xb4   : > { %10770 = vmatpush3.msk.msra.mxu0 %vm485_vm0, %v9210_v55  ;;  %10736 = vmatprep.mubr.msk.f32.mxu0 %vm412_vm1, %v13035_v32  ;;  %v9310_v55 = vld [vmem:[%s15871_s1 + $0x18] sm:$0xf] }
  0xb5   : > { %10807 = vmatprep.subr.msk.mxu0 %vm485_vm0, %v9260_v53 }
  0xb7   : > { %10737 = vmatmul.mubr.msk.f32.gmra.mrb[2].mxu0 %vm412_vm1, %v13043_v33 }
  0xb8   : > { %10739 = vmatprep.mubr.msk.f32.mxu0 %vm412_vm1, %v13046_v34 }
  0xbb   : > { %10740 = vmatmul.mubr.msk.f32.gmra.mrb[4].mxu0 %vm412_vm1, %v13053_v35 }
  0xbc   : > { %10742 = vmatprep.mubr.msk.f32.mxu0 %vm412_vm1, %v13056_v36 }
  0xbf   : > { %10743 = vmatmul.mubr.msk.f32.gmra.mrb[6].mxu0 %vm412_vm1, %v13063_v37 }
  0xc0   : > { %10745 = vmatprep.mubr.msk.f32.mxu0 %vm412_vm1, %v13066_v38 }
  0xc3   : > { %10746 = vmatmul.mubr.msk.f32.gmra.mrb[8].mxu0 %vm412_vm1, %v13073_v39 }
  0xc4   : > { %10748 = vmatprep.mubr.msk.f32.mxu0 %vm412_vm1, %v13076_v40 }
  0xc7   : > { %10749 = vmatmul.mubr.msk.f32.gmra.mrb[10].mxu0 %vm412_vm1, %v13083_v41 }
  0xc8   : > { %10751 = vmatprep.mubr.msk.f32.mxu0 %vm412_vm1, %v13086_v42 }
  0xcb   : > { %10752 = vmatmul.mubr.msk.f32.gmra.mrb[12].mxu0 %vm412_vm1, %v13093_v43 }
  0xcc   : > { %10754 = vmatprep.mubr.msk.f32.mxu0 %vm412_vm1, %v13096_v44 }
  0xcf   : > { %10755 = vmatmul.mubr.msk.f32.gmra.mrb[14].mxu0 %vm412_vm1, %v13103_v45 }
  0xd0   : > { %10757 = vmatprep.mubr.msk.f32.mxu0 %vm412_vm1, %v13106_v46 }
  0xd3   : > { %10758 = vmatmul.mubr.msk.f32.gmra.mrb[16].mxu0 %vm412_vm1, %v13113_v47 }
  0xd4   : > { %10760 = vmatprep.mubr.msk.f32.mxu0 %vm412_vm1, %v13116_v48 }
  0xd7   : > { %10761 = vmatmul.mubr.msk.f32.gmra.mrb[18].mxu0 %vm412_vm1, %v13123_v49 }
  0xd8   : > { %10763 = vmatprep.mubr.msk.f32.mxu0 %vm412_vm1, %v13126_v50 }
  0xdb   : > { %10764 = vmatmul.mubr.msk.f32.gmra.mrb[20].mxu0 %vm412_vm1, %v13133_v51 }
  0xdc   : > { %10766 = vmatprep.mubr.msk.f32.mxu0 %vm412_vm1, %v13304_v29 }
  0xdf   : > { %10767 = vmatmul.mubr.msk.f32.gmra.mrb[22].mxu0 %vm412_vm1, %v13311_v31 }
  0xe0   : > { %10771 = vmatprep.mubr.msk.f32.mxu0 %vm412_vm1, %v12902_v4  ;;  %v13363_v4 = vld [vmem:[%s12897_s26 + $0x121] sm:$0xff] }
  0xe3   : > { %10772 = vmatmul.mubr.msk.f32.vlgmr.msra.gmra.mrb[0].mxu0 %vm412_vm1, %v12913_v6  ;;  %v13370_v6 = vld [vmem:[%s12897_s26 + $0x129] sm:$0xff] }
  0xe4   : > { %10808 = vmatpush3.msk.msra.mxu0 %vm485_vm0, %v9260_v53  ;;  %10774 = vmatprep.mubr.msk.f32.mxu0 %vm412_vm1, %v12916_v7  ;;  %v9360_v53 = vld [vmem:[%s15871_s1 + $0x1c] sm:$0xf] }
  0xe5   : > { %10845 = vmatprep.subr.msk.mxu0 %vm485_vm0, %v9310_v55 }
  0xe7   : > { %10775 = vmatmul.mubr.msk.f32.gmra.mrb[2].mxu0 %vm412_vm1, %v12924_v8 }
  0xe8   : > { %10777 = vmatprep.mubr.msk.f32.mxu0 %vm412_vm1, %v12927_v9 }
  0xeb   : > { %10778 = vmatmul.mubr.msk.f32.gmra.mrb[4].mxu0 %vm412_vm1, %v12934_v10 }
  0xec   : > { %10780 = vmatprep.mubr.msk.f32.mxu0 %vm412_vm1, %v12937_v11 }
  0xef   : > { %10781 = vmatmul.mubr.msk.f32.gmra.mrb[6].mxu0 %vm412_vm1, %v12944_v12 }
  0xf0   : > { %10783 = vmatprep.mubr.msk.f32.mxu0 %vm412_vm1, %v12947_v13 }
  0xf3   : > { %10784 = vmatmul.mubr.msk.f32.gmra.mrb[8].mxu0 %vm412_vm1, %v12954_v14 }
  0xf4   : > { %10786 = vmatprep.mubr.msk.f32.mxu0 %vm412_vm1, %v12957_v15 }
  0xf7   : > { %10787 = vmatmul.mubr.msk.f32.gmra.mrb[10].mxu0 %vm412_vm1, %v12964_v16 }
  0xf8   : > { %10789 = vmatprep.mubr.msk.f32.mxu0 %vm412_vm1, %v12967_v17 }
  0xfb   : > { %10790 = vmatmul.mubr.msk.f32.gmra.mrb[12].mxu0 %vm412_vm1, %v12974_v18 }
  0xfc   : > { %10792 = vmatprep.mubr.msk.f32.mxu0 %vm412_vm1, %v12977_v19 }
  0xff   : > { %10793 = vmatmul.mubr.msk.f32.gmra.mrb[14].mxu0 %vm412_vm1, %v12984_v20 }
 0x100   : > { %10795 = vmatprep.mubr.msk.f32.mxu0 %vm412_vm1, %v12987_v21 }
 0x103   : > { %10796 = vmatmul.mubr.msk.f32.gmra.mrb[16].mxu0 %vm412_vm1, %v12994_v22 }
 0x104   : > { %10798 = vmatprep.mubr.msk.f32.mxu0 %vm412_vm1, %v12997_v23 }
 0x107   : > { %10799 = vmatmul.mubr.msk.f32.gmra.mrb[18].mxu0 %vm412_vm1, %v13004_v24 }
 0x108   : > { %10801 = vmatprep.mubr.msk.f32.mxu0 %vm412_vm1, %v13007_v25 }
 0x10b   : > { %10802 = vmatmul.mubr.msk.f32.gmra.mrb[20].mxu0 %vm412_vm1, %v13014_v26 }
 0x10c   : > { %10804 = vmatprep.mubr.msk.f32.mxu0 %vm412_vm1, %v13363_v4 }
 0x10f   : > { %10805 = vmatmul.mubr.msk.f32.gmra.mrb[22].mxu0 %vm412_vm1, %v13370_v6 }
 0x110   : > { %10809 = vmatprep.mubr.msk.f32.mxu0 %vm412_vm1, %v13141_v54  ;;  %v15922_v54 = vld [vmem:[#allocation10_spill] sm:$0xff] }
 0x113   : > { %10810 = vmatmul.mubr.msk.f32.vlgmr.msra.gmra.mrb[0].mxu0 %vm412_vm1, %v13151_v56  ;;  %v15923_v56 = vld [vmem:[#allocation11_spill] sm:$0xff] }
 0x114   : > { %10846 = vmatpush3.msk.msra.mxu0 %vm485_vm0, %v9310_v55  ;;  %10812 = vmatprep.mubr.msk.f32.mxu0 %vm412_vm1, %v13154_v57  ;;  %v15924_v55 = vld [vmem:[#allocation12_spill] sm:$0xff] }
 0x115   : > { %10883 = vmatprep.subr.msk.mxu0 %vm485_vm0, %v9360_v53 }
 0x117   : > { %10813 = vmatmul.mubr.msk.f32.gmra.mrb[2].mxu0 %vm412_vm1, %v13162_v58 }
 0x118   : > { %10815 = vmatprep.mubr.msk.f32.mxu0 %vm412_vm1, %v13165_v59 }
 0x11b   : > { %10816 = vmatmul.mubr.msk.f32.gmra.mrb[4].mxu0 %vm412_vm1, %v13172_v60 }
 0x11c   : > { %10818 = vmatprep.mubr.msk.f32.mxu0 %vm412_vm1, %v13175_v61 }
 0x11f   : > { %10819 = vmatmul.mubr.msk.f32.gmra.mrb[6].mxu0 %vm412_vm1, %v13182_v62 }
 0x120   : > { %10821 = vmatprep.mubr.msk.f32.mxu0 %vm412_vm1, %v13185_v63 }
 0x123   : > { %10822 = vmatmul.mubr.msk.f32.gmra.mrb[8].mxu0 %vm412_vm1, %v13192_v0 }
 0x124   : > { %10824 = vmatprep.mubr.msk.f32.mxu0 %vm412_vm1, %v13195_v1  ;;  %v15925_v1 = vld [vmem:[#allocation13_spill] sm:$0xff] }
 0x127   : > { %10825 = vmatmul.mubr.msk.f32.gmra.mrb[10].mxu0 %vm412_vm1, %v13202_v2 }
 0x128   : > { %10827 = vmatprep.mubr.msk.f32.mxu0 %vm412_vm1, %v13205_v3 }
 0x12b   : > { %10828 = vmatmul.mubr.msk.f32.gmra.mrb[12].mxu0 %vm412_vm1, %v15922_v54  ;;  %v13422_v54 = vld [vmem:[%s12897_s26 + $0x122] sm:$0xff] }
 0x12c   : > { %10830 = vmatprep.mubr.msk.f32.mxu0 %vm412_vm1, %v15923_v56 }
 0x12f   : > { %10831 = vmatmul.mubr.msk.f32.gmra.mrb[14].mxu0 %vm412_vm1, %v13222_v28 }
 0x130   : > { %10833 = vmatprep.mubr.msk.f32.mxu0 %vm412_vm1, %v15924_v55  ;;  %v13429_v55 = vld [vmem:[%s12897_s26 + $0x12a] sm:$0xff] }
 0x133   : > { %10834 = vmatmul.mubr.msk.f32.gmra.mrb[16].mxu0 %vm412_vm1, %v13232_v52 }
 0x134   : > { %10836 = vmatprep.mubr.msk.f32.mxu0 %vm412_vm1, %v15925_v1 }
 0x137   : > { %10837 = vmatmul.mubr.msk.f32.gmra.mrb[18].mxu0 %vm412_vm1, %v13242_v27 }
 0x138   : > { %10839 = vmatprep.mubr.msk.f32.mxu0 %vm412_vm1, %v13245_v5  ;;  %v9410_v5 = vld [vmem:[%s15871_s1 + $0x20] sm:$0xf] }
 0x13b   : > { %10840 = vmatmul.mubr.msk.f32.gmra.mrb[20].mxu0 %vm412_vm1, %v13252_v30 }
 0x13c   : > { %10842 = vmatprep.mubr.msk.f32.mxu0 %vm412_vm1, %v13422_v54 }
 0x13f   : > { %10843 = vmatmul.mubr.msk.f32.gmra.mrb[22].mxu0 %vm412_vm1, %v13429_v55 }
 0x140   : > { %10847 = vmatprep.mubr.msk.f32.mxu0 %vm412_vm1, %v13035_v32  ;;  %v9308_v32 = vld [vmem:[%s12897_s26 + $0x138] sm:$0xff] }
 0x143   : > { %10848 = vmatmul.mubr.msk.f32.vlgmr.msra.gmra.mrb[0].mxu0 %vm412_vm1, %v13043_v33  ;;  %v9309_v33 = vld [vmem:[%s12897_s26 + $0x140] sm:$0xff] }
 0x144   : > { %10884 = vmatpush3.msk.msra.mxu0 %vm485_vm0, %v9360_v53  ;;  %10850 = vmatprep.mubr.msk.f32.mxu0 %vm412_vm1, %v13046_v34  ;;  %v3209_v34 = vld [vmem:[%s15873_s3] sm:$0xff] }
 0x145   : > { %10921 = vmatprep.subr.msk.mxu0 %vm485_vm0, %v9410_v5 }
 0x147   : > { %10851 = vmatmul.mubr.msk.f32.gmra.mrb[2].mxu0 %vm412_vm1, %v13053_v35  ;;  %v3210_v35 = vld [vmem:[%s15873_s3 + $0x8] sm:$0xff] }
 0x148   : > { %10853 = vmatprep.mubr.msk.f32.mxu0 %vm412_vm1, %v13056_v36  ;;  %v11709_v36 = vpack.c.bf16 %v3210_v35, %v3209_v34 }
 0x14b   : > { %10854 = vmatmul.mubr.msk.f32.gmra.mrb[4].mxu0 %vm412_vm1, %v13063_v37 }
 0x14c   : > { %10856 = vmatprep.mubr.msk.f32.mxu0 %vm412_vm1, %v13066_v38 }
 0x14f   : > { %10857 = vmatmul.mubr.msk.f32.gmra.mrb[6].mxu0 %vm412_vm1, %v13073_v39 }
 0x150   : > { %10859 = vmatprep.mubr.msk.f32.mxu0 %vm412_vm1, %v13076_v40 }
 0x153   : > { %10860 = vmatmul.mubr.msk.f32.gmra.mrb[8].mxu0 %vm412_vm1, %v13083_v41 }
 0x154   : > { %10862 = vmatprep.mubr.msk.f32.mxu0 %vm412_vm1, %v13086_v42 }
 0x157   : > { %10863 = vmatmul.mubr.msk.f32.gmra.mrb[10].mxu0 %vm412_vm1, %v13093_v43 }
 0x158   : > { %10865 = vmatprep.mubr.msk.f32.mxu0 %vm412_vm1, %v13096_v44 }
 0x15b   : > { %10866 = vmatmul.mubr.msk.f32.gmra.mrb[12].mxu0 %vm412_vm1, %v13103_v45 }
 0x15c   : > { %10868 = vmatprep.mubr.msk.f32.mxu0 %vm412_vm1, %v13106_v46 }
 0x15f   : > { %10869 = vmatmul.mubr.msk.f32.gmra.mrb[14].mxu0 %vm412_vm1, %v13113_v47 }
 0x160   : > { %10871 = vmatprep.mubr.msk.f32.mxu0 %vm412_vm1, %v13116_v48 }
 0x163   : > { %10872 = vmatmul.mubr.msk.f32.gmra.mrb[16].mxu0 %vm412_vm1, %v13123_v49 }
 0x164   : > { %10874 = vmatprep.mubr.msk.f32.mxu0 %vm412_vm1, %v13126_v50 }
 0x167   : > { %10875 = vmatmul.mubr.msk.f32.gmra.mrb[18].mxu0 %vm412_vm1, %v13133_v51 }
 0x168   : > { %10877 = vmatprep.mubr.msk.f32.mxu0 %vm412_vm1, %v13304_v29 }
 0x16b   : > { %10878 = vmatmul.mubr.msk.f32.gmra.mrb[20].mxu0 %vm412_vm1, %v13311_v31 }
 0x16c   : > { %10880 = vmatprep.mubr.msk.f32.mxu0 %vm412_vm1, %v9308_v32 }
 0x16f   : > { %10881 = vmatmul.mubr.msk.f32.gmra.mrb[22].mxu0 %vm412_vm1, %v9309_v33 }
 0x170   : > { %10885 = vmatprep.mubr.msk.f32.mxu0 %vm412_vm1, %v12916_v7  ;;  %v9358_v7 = vld [vmem:[%s12897_s26 + $0x139] sm:$0xff] }
 0x173   : > { %10886 = vmatmul.mubr.msk.f32.vlgmr.msra.gmra.mrb[0].mxu0 %vm412_vm1, %v12924_v8  ;;  %v9359_v8 = vld [vmem:[%s12897_s26 + $0x141] sm:$0xff] }
 0x174   : > { %10922 = vmatpush3.msk.msra.mxu0 %vm485_vm0, %v9410_v5  ;;  %10888 = vmatprep.mubr.msk.f32.mxu0 %vm412_vm1, %v12927_v9  ;;  %v3211_v9 = vld [vmem:[%s15873_s3 + $0x10] sm:$0xff] }
 0x175   : > { %11710 = vmatprep.subr.bf16.mxu0 %v11709_v36 }
 0x177   : > { %10889 = vmatmul.mubr.msk.f32.gmra.mrb[2].mxu0 %vm412_vm1, %v12934_v10  ;;  %v3212_v10 = vld [vmem:[%s15873_s3 + $0x18] sm:$0xff] }
 0x178   : > { %10891 = vmatprep.mubr.msk.f32.mxu0 %vm412_vm1, %v12937_v11  ;;  %v11713_v11 = vpack.c.bf16 %v3212_v10, %v3211_v9 }
 0x17b   : > { %10892 = vmatmul.mubr.msk.f32.gmra.mrb[4].mxu0 %vm412_vm1, %v12944_v12  ;;  %v3213_v12 = vld [vmem:[%s15873_s3 + $0x20] sm:$0xff] }
 0x17c   : > { %10894 = vmatprep.mubr.msk.f32.mxu0 %vm412_vm1, %v12947_v13  ;;  %v3214_v13 = vld [vmem:[%s15873_s3 + $0x28] sm:$0xff] }
 0x17f   : > { %10895 = vmatmul.mubr.msk.f32.gmra.mrb[6].mxu0 %vm412_vm1, %v12954_v14  ;;  %v11717_v14 = vpack.c.bf16 %v3214_v13, %v3213_v12 }
 0x180   : > { %10897 = vmatprep.mubr.msk.f32.mxu0 %vm412_vm1, %v12957_v15  ;;  %v15926_v15 = vld [vmem:[#allocation9_spill] sm:$0xff] }
 0x183   : > { %10898 = vmatmul.mubr.msk.f32.gmra.mrb[8].mxu0 %vm412_vm1, %v12964_v16  ;;  %v15927_v16 = vld [vmem:[#allocation10_spill] sm:$0xff] }
 0x184   : > { %10900 = vmatprep.mubr.msk.f32.mxu0 %vm412_vm1, %v12967_v17  ;;  %v15928_v17 = vld [vmem:[#allocation12_spill] sm:$0xff] }
 0x187   : > { %10901 = vmatmul.mubr.msk.f32.gmra.mrb[10].mxu0 %vm412_vm1, %v12974_v18  ;;  %v15929_v18 = vld [vmem:[#allocation14_spill] sm:$0xff] }
 0x188   : > { %10903 = vmatprep.mubr.msk.f32.mxu0 %vm412_vm1, %v12977_v19  ;;  %v9408_v19 = vld [vmem:[%s12897_s26 + $0x13a] sm:$0xff] }
 0x18b   : > { %10904 = vmatmul.mubr.msk.f32.gmra.mrb[12].mxu0 %vm412_vm1, %v12984_v20  ;;  %v9409_v20 = vld [vmem:[%s12897_s26 + $0x142] sm:$0xff]  ;;  %s12754_s26 = smov 96  }
 0x18c   : > { %10906 = vmatprep.mubr.msk.f32.mxu0 %vm412_vm1, %v12987_v21  ;;  %v13604_v21 = vld [vmem:[%s15872_s2] ss:$0 sm:$0xff] }
 0x18f   : > { %10907 = vmatmul.mubr.msk.f32.gmra.mrb[14].mxu0 %vm412_vm1, %v12994_v22 }
 0x190   : > { %10909 = vmatprep.mubr.msk.f32.mxu0 %vm412_vm1, %v12997_v23 }
 0x193   : > { %10910 = vmatmul.mubr.msk.f32.gmra.mrb[16].mxu0 %vm412_vm1, %v13004_v24 }
 0x194   : > { %10912 = vmatprep.mubr.msk.f32.mxu0 %vm412_vm1, %v13007_v25 }
 0x197   : > { %10913 = vmatmul.mubr.msk.f32.gmra.mrb[18].mxu0 %vm412_vm1, %v13014_v26 }
 0x198   : > { %10915 = vmatprep.mubr.msk.f32.mxu0 %vm412_vm1, %v13363_v4 }
 0x19b   : > { %10916 = vmatmul.mubr.msk.f32.gmra.mrb[20].mxu0 %vm412_vm1, %v13370_v6 }
 0x19c   : > { %10918 = vmatprep.mubr.msk.f32.mxu0 %vm412_vm1, %v9358_v7 }
 0x19f   : > { %10919 = vmatmul.mubr.msk.f32.gmra.mrb[22].mxu0 %vm412_vm1, %v9359_v8 }
 0x1a0   : > { %10923 = vmatprep.mubr.msk.f32.mxu0 %vm412_vm1, %v13154_v57 }
 0x1a3   : > { %10924 = vmatmul.mubr.msk.f32.vlgmr.msra.gmra.mrb[0].mxu0 %vm412_vm1, %v13162_v58 }
 0x1a4   : > { %10926 = vmatprep.mubr.msk.f32.mxu0 %vm412_vm1, %v13165_v59  ;;  %11712 = vmatpush3.bf16.msra.mxu0 %v11709_v36 }
 0x1a5   : > { %11714 = vmatprep.subr.bf16.mxu0 %v11713_v11 }
 0x1a7   : > { %10927 = vmatmul.mubr.msk.f32.gmra.mrb[2].mxu0 %vm412_vm1, %v13172_v60 }
 0x1a8   : > { %10929 = vmatprep.mubr.msk.f32.mxu0 %vm412_vm1, %v13175_v61  ;;  %11716 = vmatpush3.bf16.msra.mxu0 %v11713_v11 }
 0x1a9   : > { %11718 = vmatprep.subr.bf16.mxu0 %v11717_v14 }
 0x1ab   : > { %10930 = vmatmul.mubr.msk.f32.gmra.mrb[4].mxu0 %vm412_vm1, %v13182_v62 }
 0x1ac   : > { %10932 = vmatprep.mubr.msk.f32.mxu0 %vm412_vm1, %v13185_v63  ;;  %11720 = vmatpush3.bf16.msra.mxu0 %v11717_v14 }
 0x1af   : > { %10933 = vmatmul.mubr.msk.f32.gmra.mrb[6].mxu0 %vm412_vm1, %v13192_v0 }
 0x1b0   : > { %10935 = vmatprep.mubr.msk.f32.mxu0 %vm412_vm1, %v15926_v15 }
 0x1b3   : > { %10936 = vmatmul.mubr.msk.f32.gmra.mrb[8].mxu0 %vm412_vm1, %v13202_v2 }
 0x1b4   : > { %10938 = vmatprep.mubr.msk.f32.mxu0 %vm412_vm1, %v13205_v3 }
 0x1b7   : > { %10939 = vmatmul.mubr.msk.f32.gmra.mrb[10].mxu0 %vm412_vm1, %v15927_v16 }
 0x1b8   : > { %10941 = vmatprep.mubr.msk.f32.mxu0 %vm412_vm1, %v15923_v56 }
 0x1bb   : > { %10942 = vmatmul.mubr.msk.f32.gmra.mrb[12].mxu0 %vm412_vm1, %v13222_v28 }
 0x1bc   : > { %10944 = vmatprep.mubr.msk.f32.mxu0 %vm412_vm1, %v15928_v17 }
 0x1bf   : > { %10945 = vmatmul.mubr.msk.f32.gmra.mrb[14].mxu0 %vm412_vm1, %v13232_v52 }
 0x1c0   : > { %10947 = vmatprep.mubr.msk.f32.mxu0 %vm412_vm1, %v15925_v1 }
 0x1c3   : > { %10948 = vmatmul.mubr.msk.f32.gmra.mrb[16].mxu0 %vm412_vm1, %v13242_v27 }
 0x1c4   : > { %10950 = vmatprep.mubr.msk.f32.mxu0 %vm412_vm1, %v15929_v18 }
 0x1c7   : > { %10951 = vmatmul.mubr.msk.f32.gmra.mrb[18].mxu0 %vm412_vm1, %v13252_v30 }
 0x1c8   : > { %10953 = vmatprep.mubr.msk.f32.mxu0 %vm412_vm1, %v13422_v54 }
 0x1cb   : > { %10954 = vmatmul.mubr.msk.f32.gmra.mrb[20].mxu0 %vm412_vm1, %v13429_v55 }
 0x1cc   : > { %10956 = vmatprep.mubr.msk.f32.mxu0 %vm412_vm1, %v9408_v19 }
 0x1cf   : > { %10957 = vmatmul.mubr.msk.f32.gmra.mrb[22].mxu0 %vm412_vm1, %v9409_v20 }
 0x276   : > { %v10925_v22 = vpop.f32.mrb[0].mxu0 }
 0x277   : > { %v3114_v23 = vadd.f32 %v10925_v22, %v13604_v21  ;;  %v2963_v24 = vpop.f32.mrb[1].mxu0 }
 0x278   : > { %v3113_v25 = vadd.f32 %v13604_v21, %v2963_v24 }
 0x279   : > { %v3162_v26 = vmul.f32 0.2, %v3114_v23  ;;  %vm3138_vm2 = vcmp.gt.f32.partialorder %v3114_v23, 0.0 }
 0x27a   : > { %vm3137_vm3 = vcmp.gt.f32.partialorder %v3113_v25, 0.0  ;;  %v3161_v37 = vmul.f32 0.2, %v3113_v25  ;;  %v10928_v38 = vpop.f32.mrb[2].mxu0 }
 0x27b   : > { %v3116_v39 = vadd.f32 %v10928_v38, %v13604_v21  ;;  %v2973_v40 = vpop.f32.mrb[3].mxu0  ;;  %v13612_v43 = vsel %vm3138_vm2, %v3114_v23, %v3162_v26 }
 0x27c   : > { %v3115_v41 = vadd.f32 %v13604_v21, %v2973_v40  ;;  %v13610_v42 = vsel %vm3137_vm3, %v3113_v25, %v3161_v37 }
 0x27d   : > { %v3164_v44 = vmul.f32 0.2, %v3116_v39  ;;  %10971 = vmatprep.mubr.msk.f32.mxu0 %vm3222_vm4, %v13610_v42  ;;  %vm3140_vm5 = vcmp.gt.f32.partialorder %v3116_v39, 0.0 }
 0x27e   : > { %v3163_v45 = vmul.f32 0.2, %v3115_v41  ;;  %v10931_v46 = vpop.f32.mrb[4].mxu0  ;;  %10972 = vmatmul.mubr.msk.f32.vlgmr.msra.gmra.mrb[24].mxu0 %vm3222_vm4, %v13612_v43  ;;  %vm3139_vm6 = vcmp.gt.f32.partialorder %v3115_v41, 0.0 }
 0x27f   : > { %v3118_v47 = vadd.f32 %v10931_v46, %v13604_v21  ;;  %v2983_v48 = vpop.f32.mrb[5].mxu0  ;;  %v13626_v57 = vsel %vm3140_vm5, %v3116_v39, %v3164_v44 }
 0x280   : > { %v3117_v49 = vadd.f32 %v13604_v21, %v2983_v48  ;;  %v13620_v50 = vsel %vm3139_vm6, %v3115_v41, %v3163_v45 }
 0x281   : > { %v3166_v51 = vmul.f32 0.2, %v3118_v47  ;;  %3484 = vrot.lane.b32.xlu0 %v13620_v50, %s12754_s26  ;;  %10974 = vmatprep.mubr.msk.f32.mxu0 %vm3222_vm4, %v13620_v50  ;;  %vm3142_vm7 = vcmp.gt.f32.partialorder %v3118_v47, 0.0 }
 0x282   : > { %vm3141_vm8 = vcmp.gt.f32.partialorder %v3117_v49, 0.0  ;;  %v3165_v58 = vmul.f32 0.2, %v3117_v49  ;;  %v10934_v59 = vpop.f32.mrb[6].mxu0  ;;  %10975 = vmatmul.mubr.msk.f32.gmra.mrb[26].mxu0 %vm3222_vm4, %v13626_v57 }
 0x283   : > { %v3120_v60 = vadd.f32 %v10934_v59, %v13604_v21  ;;  %v2993_v61 = vpop.f32.mrb[7].mxu0  ;;  %v13631_v62 = vsel %vm3142_vm7, %v3118_v47, %v3166_v51 }
 0x284   : > { %15930 = vst [vmem:[#allocation11_spill] sm:$0xff] %v13631_v62  ;;  %v3119_v63 = vadd.f32 %v13604_v21, %v2993_v61  ;;  %3490 = vrot.lane.b32.xlu1 %v13631_v62, %s12754_s26  ;;  %v13636_v0 = vsel %vm3141_vm8, %v3117_v49, %v3165_v58 }
 0x285   : > { %15931 = vst [vmem:[#allocation13_spill] sm:$0xff] %v13636_v0  ;;  %v3168_v1 = vmul.f32 0.2, %v3120_v60  ;;  %3486 = vrot.lane.b32.xlu0 %v13626_v57, %s12754_s26  ;;  %10977 = vmatprep.mubr.msk.f32.mxu0 %vm3222_vm4, %v13636_v0  ;;  %vm3144_vm9 = vcmp.gt.f32.partialorder %v3120_v60, 0.0 }
 0x286   : > { %v3167_v2 = vmul.f32 0.2, %v3119_v63  ;;  %v10937_v3 = vpop.f32.mrb[8].mxu0  ;;  %10978 = vmatmul.mubr.msk.f32.gmra.mrb[28].mxu0 %vm3222_vm4, %v13631_v62  ;;  %vm3143_vm10 = vcmp.gt.f32.partialorder %v3119_v63, 0.0  ;;  %v9604_v62 = vld [vmem:[%s15875_s5 + $0xc8] sm:$0xff] }
 0x287   : > { %v3122_v5 = vadd.f32 %v10937_v3, %v13604_v21  ;;  %v3003_v27 = vpop.f32.mrb[9].mxu0  ;;  %v13654_v29 = vsel %vm3144_vm9, %v3120_v60, %v3168_v1 }
 0x288   : > { %v3121_v28 = vadd.f32 %v13604_v21, %v3003_v27  ;;  %3488 = vrot.lane.b32.xlu1 %v13636_v0, %s12754_s26  ;;  %v13648_v30 = vsel %vm3143_vm10, %v3119_v63, %v3167_v2  ;;  %15933 = vst [vmem:[#allocation10_spill] sm:$0xff] %v13654_v29  ;;  %v9603_v0 = vld [vmem:[%s15875_s5 + $0xc0] sm:$0xff] }
 0x289   : > { %15932 = vst [vmem:[#allocation9_spill] sm:$0xff] %v13648_v30  ;;  %v3170_v52 = vmul.f32 0.2, %v3122_v5  ;;  %3492 = vrot.lane.b32.xlu0 %v13648_v30, %s12754_s26  ;;  %10980 = vmatprep.mubr.msk.f32.mxu0 %vm3222_vm4, %v13648_v30  ;;  %vm3146_vm11 = vcmp.gt.f32.partialorder %v3122_v5, 0.0 }
 0x28a   : > { %v3169_v31 = vmul.f32 0.2, %v3121_v28  ;;  %v10940_v4 = vpop.f32.mrb[10].mxu0  ;;  %10981 = vmatmul.mubr.msk.f32.gmra.mrb[30].mxu0 %vm3222_vm4, %v13654_v29  ;;  %vm3145_vm12 = vcmp.gt.f32.partialorder %v3121_v28, 0.0 }
 0x28b   : > { %v3124_v6 = vadd.f32 %v10940_v4, %v13604_v21  ;;  %v3013_v53 = vpop.f32.mrb[11].mxu0  ;;  %v13668_v32 = vsel %vm3146_vm11, %v3122_v5, %v3170_v52 }
 0x28c   : > { %v3123_v54 = vadd.f32 %v13604_v21, %v3013_v53  ;;  %3494 = vrot.lane.b32.xlu1 %v13654_v29, %s12754_s26  ;;  %v13662_v56 = vsel %vm3145_vm12, %v3121_v28, %v3169_v31  ;;  %15935 = vst [vmem:[#allocation14_spill] sm:$0xff] %v13668_v32  ;;  %v9463_v53 = vld [vmem:[%s15875_s5 + $0x20] sm:$0xff]  ;;  %vm3675_vm12 = vcmask 253952  }
 0x28d   : > { %15934 = vst [vmem:[#allocation12_spill] sm:$0xff] %v13662_v56  ;;  %v3172_v55 = vmul.f32 0.2, %v3124_v6  ;;  %3496 = vrot.lane.b32.xlu0 %v13662_v56, %s12754_s26  ;;  %10983 = vmatprep.mubr.msk.f32.mxu0 %vm3222_vm4, %v13662_v56  ;;  %vm3148_vm13 = vcmp.gt.f32.partialorder %v3124_v6, 0.0  ;;  %v9582_v56 = vld [vmem:[%s15875_s5 + $0xb8] sm:$0xff] }
 0x28e   : > { %v3171_v33 = vmul.f32 0.2, %v3123_v54  ;;  %v10943_v34 = vpop.f32.mrb[12].mxu0  ;;  %10984 = vmatmul.mubr.msk.f32.gmra.mrb[32].mxu0 %vm3222_vm4, %v13668_v32  ;;  %vm3147_vm14 = vcmp.gt.f32.partialorder %v3123_v54, 0.0 }
 0x28f   : > { %v3126_v35 = vadd.f32 %v10943_v34, %v13604_v21  ;;  %v3023_v36 = vpop.f32.mrb[13].mxu0  ;;  %v13682_v10 = vsel %vm3148_vm13, %v3124_v6, %v3172_v55  ;;  %v15892_v55 = vmov 0.0   ;;  %v9465_v34 = vld [vmem:[%s15875_s5 + $0x30] sm:$0xff] }
 0x290   : > { %v3125_v7 = vadd.f32 %v13604_v21, %v3023_v36  ;;  %3498 = vrot.lane.b32.xlu1 %v13668_v32, %s12754_s26  ;;  %v13676_v8 = vsel %vm3147_vm14, %v3123_v54, %v3171_v33  ;;  %15937 = vst [vmem:[#allocation16_spill] sm:$0xff] %v13682_v10  ;;  %3689 = vst.msk [vmem:[#allocation2 + $0x29] sm:$0x1] %vm3675_vm12, %v15892_v55  ;;  %v9508_v33 = vld [vmem:[%s15875_s5 + $0x48] sm:$0xff]  ;;  %v9466_v36 = vld [vmem:[%s15875_s5 + $0x38] sm:$0xff] }
 0x291   : > { %15936 = vst [vmem:[#allocation15_spill] sm:$0xff] %v13676_v8  ;;  %v3174_v9 = vmul.f32 0.2, %v3126_v35  ;;  %3500 = vrot.lane.b32.xlu0 %v13676_v8, %s12754_s26  ;;  %10986 = vmatprep.mubr.msk.f32.mxu0 %vm3222_vm4, %v13676_v8  ;;  %vm3150_vm15 = vcmp.gt.f32.partialorder %v3126_v35, 0.0  ;;  %3676 = vst.msk [vmem:[#allocation2] sm:$0x1] %vm3675_vm12, %v15892_v55 }
 0x292   : > { %v3173_v11 = vmul.f32 0.2, %v3125_v7  ;;  %v10946_v12 = vpop.f32.mrb[14].mxu0  ;;  %10987 = vmatmul.mubr.msk.f32.gmra.mrb[34].mxu0 %vm3222_vm4, %v13682_v10  ;;  %vm3149_vm0 = vcmp.gt.f32.partialorder %v3125_v7, 0.0  ;;  %3677 = vst.msk [vmem:[#allocation2 + $0x18] sm:$0x1] %vm3675_vm12, %v15892_v55 }
 0x293   : > { %v3128_v13 = vadd.f32 %v10946_v12, %v13604_v21  ;;  %v3033_v14 = vpop.f32.mrb[15].mxu0  ;;  %v13696_v18 = vsel %vm3150_vm15, %v3126_v35, %v3174_v9  ;;  %3678 = vst.msk [vmem:[#allocation2 + $0x30] sm:$0x1] %vm3675_vm12, %v15892_v55  ;;  %3679 = vst.msk [vmem:[#allocation2 + $0x48] sm:$0x1] %vm3675_vm12, %v15892_v55  ;;  %v9509_v9 = vld [vmem:[%s15875_s5 + $0x50] sm:$0xff] }
 0x294   : > { %v3127_v15 = vadd.f32 %v13604_v21, %v3033_v14  ;;  %3502 = vrot.lane.b32.xlu1 %v13682_v10, %s12754_s26  ;;  %v13690_v16 = vsel %vm3149_vm0, %v3125_v7, %v3173_v11  ;;  %15939 = vst [vmem:[#allocation18_spill] sm:$0xff] %v13696_v18  ;;  %3680 = vst.msk [vmem:[#allocation2 + $0x60] sm:$0x1] %vm3675_vm12, %v15892_v55  ;;  %v11725_v7 = vpack.c.bf16 %v9466_v36, %v9465_v34  ;;  %v9510_v11 = vld [vmem:[%s15875_s5 + $0x58] sm:$0xff]  ;;  %v9532_v14 = vld [vmem:[%s15875_s5 + $0x68] sm:$0xff]  ;;  %vm3552_vm15 = vcmask 130048  }
 0x295   : > { %15938 = vst [vmem:[#allocation17_spill] sm:$0xff] %v13690_v16  ;;  %v3176_v17 = vmul.f32 0.2, %v3128_v13  ;;  %3504 = vrot.lane.b32.xlu0 %v13690_v16, %s12754_s26  ;;  %10989 = vmatprep.mubr.msk.f32.mxu0 %vm3222_vm4, %v13690_v16  ;;  %vm3152_vm1 = vcmp.gt.f32.partialorder %v3128_v13, 0.0  ;;  %3681 = vst.msk [vmem:[#allocation2 + $0x78] sm:$0x1] %vm3675_vm12, %v15892_v55  ;;  %v13842_v12 = vpack.c.bf16 %v9510_v11, %v9509_v9 }
 0x296   : > { %v3175_v19 = vmul.f32 0.2, %v3127_v15  ;;  %v10949_v20 = vpop.f32.mrb[16].mxu0  ;;  %10990 = vmatmul.mubr.msk.f32.gmra.mrb[36].mxu0 %vm3222_vm4, %v13696_v18  ;;  %vm3151_vm2 = vcmp.gt.f32.partialorder %v3127_v15, 0.0  ;;  %3682 = vst.msk [vmem:[#allocation2 + $0x90] sm:$0x1] %vm3675_vm12, %v15892_v55 }
 0x297   : > { %v3130_v22 = vadd.f32 %v10949_v20, %v13604_v21  ;;  %v3043_v23 = vpop.f32.mrb[17].mxu0  ;;  %v13710_v37 = vsel %vm3152_vm1, %v3128_v13, %v3176_v17  ;;  %3683 = vst.msk [vmem:[#allocation2 + $0xa8] sm:$0x1] %vm3675_vm12, %v15892_v55  ;;  %3684 = vst.msk [vmem:[#allocation2 + $0xc0] sm:$0x1] %vm3675_vm12, %v15892_v55  ;;  %v9531_v13 = vld [vmem:[%s15875_s5 + $0x60] sm:$0xff] }
 0x298   : > { %v3129_v24 = vadd.f32 %v13604_v21, %v3043_v23  ;;  %3506 = vrot.lane.b32.xlu1 %v13696_v18, %s12754_s26  ;;  %v13704_v25 = vsel %vm3151_vm2, %v3127_v15, %v3175_v19  ;;  %15941 = vst [vmem:[#allocation20_spill] sm:$0xff] %v13710_v37  ;;  %3685 = vst.msk [vmem:[#allocation2 + $0xd8] sm:$0x1] %vm3675_vm12, %v15892_v55  ;;  %v13852_v15 = vpack.c.bf16 %v9532_v14, %v9531_v13  ;;  %v3720_v17 = vld [vmem:[%s15875_s5] sm:$0xff]  ;;  %v3721_v19 = vld [vmem:[%s15875_s5 + $0x8] sm:$0xff]  ;;  %vm3650_vm1 = vcmask 261120  }
 0x299   : > { %15940 = vst [vmem:[#allocation19_spill] sm:$0xff] %v13704_v25  ;;  %v3178_v26 = vmul.f32 0.2, %v3130_v22  ;;  %3508 = vrot.lane.b32.xlu0 %v13704_v25, %s12754_s26  ;;  %10992 = vmatprep.mubr.msk.f32.mxu0 %vm3222_vm4, %v13704_v25  ;;  %vm3154_vm3 = vcmp.gt.f32.partialorder %v3130_v22, 0.0  ;;  %3686 = vst.msk [vmem:[#allocation2 + $0xf0] sm:$0x1] %vm3675_vm12, %v15892_v55  ;;  %v13861_v20 = vpack.c.bf16 %v3721_v19, %v3720_v17 }
 0x29a   : > { %v3177_v38 = vmul.f32 0.2, %v3129_v24  ;;  %v10952_v39 = vpop.f32.mrb[18].mxu0  ;;  %10993 = vmatmul.mubr.msk.f32.gmra.mrb[38].mxu0 %vm3222_vm4, %v13710_v37  ;;  %vm3153_vm5 = vcmp.gt.f32.partialorder %v3129_v24, 0.0  ;;  %3687 = vst.msk [vmem:[#allocation2 + $0x108] sm:$0x1] %vm3675_vm12, %v15892_v55 }
 0x29b   : > { %v3132_v40 = vadd.f32 %v10952_v39, %v13604_v21  ;;  %v3053_v41 = vpop.f32.mrb[19].mxu0  ;;  %v13724_v47 = vsel %vm3154_vm3, %v3130_v22, %v3178_v26  ;;  %3688 = vst.msk [vmem:[#allocation2 + $0x11] sm:$0x1] %vm3675_vm12, %v15892_v55  ;;  %3690 = vst.msk [vmem:[#allocation2 + $0x41] sm:$0x1] %vm3675_vm12, %v15892_v55  ;;  %v9581_v10 = vld [vmem:[%s15875_s5 + $0xb0] sm:$0xff] }
 0x29c   : > { %v3131_v44 = vadd.f32 %v13604_v21, %v3053_v41  ;;  %3510 = vrot.lane.b32.xlu1 %v13710_v37, %s12754_s26  ;;  %v13718_v45 = vsel %vm3153_vm5, %v3129_v24, %v3177_v38  ;;  %15943 = vst [vmem:[#allocation22_spill] sm:$0xff] %v13724_v47  ;;  %3691 = vst.msk [vmem:[#allocation2 + $0x59] sm:$0x1] %vm3675_vm12, %v15892_v55  ;;  %v11765_v30 = vpack.c.bf16 %v9582_v56, %v9581_v10  ;;  %v9627_v10 = vld [vmem:[%s15875_s5 + $0xe0] sm:$0xff] }
 0x29d   : > { %15942 = vst [vmem:[#allocation21_spill] sm:$0xff] %v13718_v45  ;;  %v3180_v46 = vmul.f32 0.2, %v3132_v40  ;;  %3512 = vrot.lane.b32.xlu0 %v13718_v45, %s12754_s26  ;;  %10995 = vmatprep.mubr.msk.f32.mxu0 %vm3222_vm4, %v13718_v45  ;;  %vm3156_vm6 = vcmp.gt.f32.partialorder %v3132_v40, 0.0  ;;  %3692 = vst.msk [vmem:[#allocation2 + $0x71] sm:$0x1] %vm3675_vm12, %v15892_v55  ;;  %v11769_v56 = vpack.c.bf16 %v9604_v62, %v9603_v0 }
 0x29e   : > { %v3179_v48 = vmul.f32 0.2, %v3131_v44  ;;  %v10955_v49 = vpop.f32.mrb[20].mxu0  ;;  %10996 = vmatmul.mubr.msk.f32.gmra.mrb[40].mxu0 %vm3222_vm4, %v13724_v47  ;;  %vm3155_vm7 = vcmp.gt.f32.partialorder %v3131_v44, 0.0  ;;  %3693 = vst.msk [vmem:[#allocation2 + $0x89] sm:$0x1] %vm3675_vm12, %v15892_v55 }
 0x29f   : > { %v3134_v51 = vadd.f32 %v10955_v49, %v13604_v21  ;;  %v3063_v58 = vpop.f32.mrb[21].mxu0  ;;  %v13738_v63 = vsel %vm3156_vm6, %v3132_v40, %v3180_v46  ;;  %3694 = vst.msk [vmem:[#allocation2 + $0xa1] sm:$0x1] %vm3675_vm12, %v15892_v55  ;;  %3695 = vst.msk [vmem:[#allocation2 + $0xb9] sm:$0x1] %vm3675_vm12, %v15892_v55 }
 0x2a0   : > { %v3133_v59 = vadd.f32 %v13604_v21, %v3063_v58  ;;  %3514 = vrot.lane.b32.xlu1 %v13724_v47, %s12754_s26  ;;  %v13732_v60 = vsel %vm3155_vm7, %v3131_v44, %v3179_v48  ;;  %15945 = vst [vmem:[#allocation24_spill] sm:$0xff] %v13738_v63  ;;  %3696 = vst.msk [vmem:[#allocation2 + $0xd1] sm:$0x1] %vm3675_vm12, %v15892_v55 }
 0x2a1   : > { %15944 = vst [vmem:[#allocation23_spill] sm:$0xff] %v13732_v60  ;;  %v3182_v61 = vmul.f32 0.2, %v3134_v51  ;;  %3516 = vrot.lane.b32.xlu0 %v13732_v60, %s12754_s26  ;;  %10998 = vmatprep.mubr.msk.f32.mxu0 %vm3222_vm4, %v13732_v60  ;;  %vm3158_vm8 = vcmp.gt.f32.partialorder %v3134_v51, 0.0  ;;  %3697 = vst.msk [vmem:[#allocation2 + $0xe9] sm:$0x1] %vm3675_vm12, %v15892_v55 }
 0x2a2   : > { %v3181_v1 = vmul.f32 0.2, %v3133_v59  ;;  %v10958_v2 = vpop.f32.mrb[22].mxu0  ;;  %10999 = vmatmul.mubr.msk.f32.gmra.mrb[42].mxu0 %vm3222_vm4, %v13738_v63  ;;  %vm3157_vm9 = vcmp.gt.f32.partialorder %v3133_v59, 0.0  ;;  %3698 = vst.msk [vmem:[#allocation2 + $0x101] sm:$0x1] %vm3675_vm12, %v15892_v55 }
 0x2a3   : > { %v3136_v3 = vadd.f32 %v10958_v2, %v13604_v21  ;;  %v3073_v5 = vpop.f32.mrb[23].mxu0  ;;  %v13752_v31 = vsel %vm3158_vm8, %v3134_v51, %v3182_v61  ;;  %3699 = vst.msk [vmem:[#allocation2 + $0x119] sm:$0x1] %vm3675_vm12, %v15892_v55  ;;  %v9579_v60 = vld [vmem:[%s15875_s5 + $0xa0] sm:$0xff] }
 0x2a4   : > { %v3135_v27 = vadd.f32 %v13604_v21, %v3073_v5  ;;  %3518 = vrot.lane.b32.xlu1 %v13738_v63, %s12754_s26  ;;  %v13746_v28 = vsel %vm3157_vm9, %v3133_v59, %v3181_v1  ;;  %15947 = vst [vmem:[#allocation26_spill] sm:$0xff] %v13752_v31  ;;  %v9580_v63 = vld [vmem:[%s15875_s5 + $0xa8] sm:$0xff] }
 0x2a5   : > { %15946 = vst [vmem:[#allocation25_spill] sm:$0xff] %v13746_v28  ;;  %v3184_v52 = vmul.f32 0.2, %v3136_v3  ;;  %3520 = vrot.lane.b32.xlu0 %v13746_v28, %s12754_s26  ;;  %11001 = vmatprep.mubr.msk.f32.mxu0 %vm3222_vm4, %v13746_v28  ;;  %vm3160_vm10 = vcmp.gt.f32.partialorder %v3136_v3, 0.0 }
 0x2a6   : > { %vm3159_vm11 = vcmp.gt.f32.partialorder %v3135_v27, 0.0  ;;  %v3183_v4 = vmul.f32 0.2, %v3135_v27  ;;  %11002 = vmatmul.mubr.msk.f32.gmra.mrb[44].mxu0 %vm3222_vm4, %v13752_v31 }
 0x2a7   : > { %v3208_v6 = vsel %vm3160_vm10, %v3136_v3, %v3184_v52  ;;  %v13899_v3 = vstv %s9462_s21  ;;  %v13908_v52 = vld [vmem:[%s15874_s4] ss:$0 sm:$0xff]  ;;  %s12757_s21 = smov 48  }
 0x2a8   : > { %3522 = vrot.lane.b32.xlu1 %v13752_v31, %s12754_s26  ;;  %v3207_v21 = vsel %vm3159_vm11, %v3135_v27, %v3183_v4  ;;  %vm3590_vm13 = vcmp.ge.s32.totalorder %v13899_v3, 0  ;;  %vm3602_vm14 = vcmp.lt.s32.totalorder %v13899_v3, 16  ;;  %v3579_v4 = vadd.s32 1, %v13899_v3 }
 0x2a9   : > { %3480 = vrot.lane.b32.xlu0 %v13610_v42, %s12754_s26  ;;  %11004 = vmatprep.mubr.msk.f32.mxu0 %vm3222_vm4, %v3207_v21  ;;  %v9464_v42 = vld [vmem:[%s15875_s5 + $0x28] sm:$0xff]  ;;  %vm13914_vm0 = vmand %vm3590_vm13, %vm3602_vm14 }
 0x2aa   : > { %11005 = vmatmul.mubr.msk.f32.gmra.mrb[46].mxu0 %vm3222_vm4, %v3208_v6  ;;  %v11721_v54 = vpack.c.bf16 %v9464_v42, %v9463_v53  ;;  %vm3591_vm2 = vcmp.ge.s32.totalorder %v3579_v4, 0  ;;  %vm3603_vm3 = vcmp.lt.s32.totalorder %v3579_v4, 16 }
 0x2ab   : > { %vm13928_vm5 = vmand %vm3591_vm2, %vm3603_vm3 }
 0x2ac   : > { %3482 = vrot.lane.b32.xlu1 %v13612_v43, %s12754_s26  ;;  %11722 = vmatprep.subr.bf16.mxu0 %v11721_v54  ;;  %v9507_v43 = vld [vmem:[%s15875_s5 + $0x40] sm:$0xff] }
 0x2ad   : > { %3524 = vrot.lane.b32.xlu0 %v3207_v21, %s12754_s26  ;;  %11724 = vmatpush3.bf16.msra.mxu0 %v11721_v54  ;;  %v13829_v35 = vpack.c.bf16 %v9508_v33, %v9507_v43  ;;  %v3580_v33 = vadd.s32 2, %v13899_v3 }
 0x2ae   : > { %11726 = vmatprep.subr.bf16.mxu0 %v11725_v7 }
 0x2af   : > { %11937 = vmatprep.subr.bf16.mxu1 %v13829_v35  ;;  %vm3592_vm6 = vcmp.ge.s32.totalorder %v3580_v33, 0  ;;  %vm3604_vm7 = vcmp.lt.s32.totalorder %v3580_v33, 16 }
 0x2b0   : > { %3526 = vrot.lane.b32.xlu1 %v3208_v6, %s12754_s26  ;;  %11939 = vmatpush3.bf16.msra.mxu1 %v13829_v35  ;;  %vm13944_vm8 = vmand %vm3592_vm6, %vm3604_vm7 }
 0x2b1   : > { %11728 = vmatpush3.bf16.msra.mxu0 %v11725_v7  ;;  %11938 = vmatprep.subr.bf16.mxu1 %v13842_v12 }
 0x2b2   : > { %11730 = vmatprep.subr.bf16.mxu0 %v13861_v20 }
 0x2b4   : > { %11940 = vmatpush3.bf16.msra.mxu1 %v13842_v12 }
 0x2b5   : > { %11746 = vmatprep.subr.bf16.mxu1 %v13852_v15 }
 0x2f3   : > { %v3485_v23 = vpop.permute.xlu0 %3484 }
 0x2f6   : > { %v13864_v22 = vpop.permute.xlu1 %3490 }
 0x2f7   : > { %v3487_v26 = vpop.permute.xlu0 %3486 }
 0x2fa   : > { %v13866_v24 = vpop.permute.xlu1 %3488 }
 0x2fb   : > { %v13870_v39 = vpop.permute.xlu0 %3492 }
 0x2fe   : > { %v13868_v38 = vpop.permute.xlu1 %3494 }
 0x2ff   : > { %v13874_v41 = vpop.permute.xlu0 %3496 }
 0x302   : > { %v13872_v40 = vpop.permute.xlu1 %3498 }
 0x303   : > { %v13878_v46 = vpop.permute.xlu0 %3500 }
 0x306   : > { %v13876_v44 = vpop.permute.xlu1 %3502 }
 0x307   : > { %v13882_v49 = vpop.permute.xlu0 %3504 }
 0x30a   : > { %v13880_v48 = vpop.permute.xlu1 %3506 }
 0x30b   : > { %v13886_v58 = vpop.permute.xlu0 %3508 }
 0x30e   : > { %v13884_v51 = vpop.permute.xlu1 %3510 }
 0x30f   : > { %v13890_v61 = vpop.permute.xlu0 %3512 }
 0x312   : > { %v13888_v59 = vpop.permute.xlu1 %3514 }
 0x313   : > { %v13895_v2 = vpop.permute.xlu0 %3516 }
 0x316   : > { %v13893_v1 = vpop.permute.xlu1 %3518 }
 0x317   : > { %v13903_v27 = vpop.permute.xlu0 %3520 }
 0x31a   : > { %v13901_v5 = vpop.permute.xlu1 %3522 }
 0x31b   : > { %v3481_v34 = vpop.permute.xlu0 %3480 }
 0x31e   : > { %v3483_v54 = vpop.permute.xlu1 %3482 }
 0x351   : > { %v10973_v21 = vpop.f32.mrb[24].mxu0 }
 0x352   : > { %v3367_v6 = vadd.f32 %v10973_v21, %v13908_v52  ;;  %v3361_v42 = vpop.f32.mrb[25].mxu0  ;;  %v3581_v21 = vadd.s32 3, %v13899_v3 }
 0x353   : > { %v3362_v43 = vadd.f32 %v13908_v52, %v3361_v42 }
 0x354   : > { %v3554_v36 = vsel %vm3552_vm15, %v3367_v6, %v3483_v54  ;;  %vm3593_vm9 = vcmp.ge.s32.totalorder %v3581_v21, 0  ;;  %vm3605_vm10 = vcmp.lt.s32.totalorder %v3581_v21, 16  ;;  %v3584_v21 = vadd.s32 6, %v13899_v3 }
 0x355   : > { %v3627_v7 = vsel %vm13914_vm0, %v3554_v36, 0.0  ;;  %v3553_v9 = vsel %vm3552_vm15, %v3362_v43, %v3481_v34  ;;  %v10976_v11 = vpop.f32.mrb[26].mxu0  ;;  %v3582_v43 = vadd.s32 4, %v13899_v3  ;;  %vm13966_vm12 = vmand %vm3593_vm9, %vm3605_vm10 }
 0x356   : > { %3652 = vst.msk [vmem:[#allocation2 + $0x9] sm:$0xff] %vm3650_vm1, %v3627_v7  ;;  %v3626_v13 = vsel %vm13914_vm0, %v3553_v9, 0.0  ;;  %v3377_v14 = vadd.f32 %v10976_v11, %v13908_v52  ;;  %v3371_v19 = vpop.f32.mrb[27].mxu0  ;;  %v3723_v9 = vld [vmem:[%s15875_s5 + $0x18] sm:$0xff]  ;;  %vm3608_vm6 = vcmp.lt.s32.totalorder %v3584_v21, 16 }
 0x357   : > { %3651 = vst.msk [vmem:[#allocation2 + $0x1] sm:$0xff] %vm3650_vm1, %v3626_v13  ;;  %v3372_v4 = vadd.f32 %v13908_v52, %v3371_v19  ;;  %vm3594_vm11 = vcmp.ge.s32.totalorder %v3582_v43, 0  ;;  %vm3606_vm13 = vcmp.lt.s32.totalorder %v3582_v43, 16  ;;  %v9555_v43 = vld [vmem:[%s15875_s5 + $0x80] sm:$0xff] }
 0x358   : > { %v3556_v6 = vsel %vm3552_vm15, %v3377_v14, %v3487_v26  ;;  %vm13988_vm14 = vmand %vm3594_vm11, %vm3606_vm13 }
 0x359   : > { %v3629_v53 = vsel %vm13928_vm5, %v3556_v6, 0.0  ;;  %v3555_v42 = vsel %vm3552_vm15, %v3372_v4, %v3485_v23  ;;  %v10979_v54 = vpop.f32.mrb[28].mxu0  ;;  %v3722_v23 = vld [vmem:[%s15875_s5 + $0x10] sm:$0xff] }
 0x35a   : > { %3654 = vst.msk [vmem:[#allocation2 + $0x21] sm:$0xff] %vm3650_vm1, %v3629_v53  ;;  %v3628_v34 = vsel %vm13928_vm5, %v3555_v42, 0.0  ;;  %v3387_v36 = vadd.f32 %v10979_v54, %v13908_v52  ;;  %v3381_v26 = vpop.f32.mrb[29].mxu0  ;;  %v11733_v53 = vpack.c.bf16 %v3723_v9, %v3722_v23  ;;  %v3583_v54 = vadd.s32 5, %v13899_v3 }
 0x35b   : > { %3653 = vst.msk [vmem:[#allocation2 + $0x19] sm:$0xff] %vm3650_vm1, %v3628_v34  ;;  %v3382_v7 = vadd.f32 %v13908_v52, %v3381_v26  ;;  %v9533_v34 = vld [vmem:[%s15875_s5 + $0x70] sm:$0xff]  ;;  %vm3596_vm5 = vcmp.ge.s32.totalorder %v3584_v21, 0  ;;  %v3585_v9 = vadd.s32 7, %v13899_v3 }
 0x35c   : > { %v3558_v11 = vsel %vm3552_vm15, %v3387_v36, %v13864_v22  ;;  %v9534_v36 = vld [vmem:[%s15875_s5 + $0x78] sm:$0xff]  ;;  %vm3595_vm0 = vcmp.ge.s32.totalorder %v3583_v54, 0  ;;  %vm3607_vm2 = vcmp.lt.s32.totalorder %v3583_v54, 16  ;;  %vm14070_vm7 = vmand %vm3596_vm5, %vm3608_vm6 }
 0x35d   : > { %v3631_v13 = vsel %vm13944_vm8, %v3558_v11, 0.0  ;;  %v3557_v14 = vsel %vm3552_vm15, %v3382_v7, %v13866_v24  ;;  %v10982_v17 = vpop.f32.mrb[30].mxu0  ;;  %v3725_v42 = vld [vmem:[#allocation2 + $0x9] sm:$0xff]  ;;  %vm14034_vm3 = vmand %vm3595_vm0, %vm3607_vm2  ;;  %vm3609_vm9 = vcmp.lt.s32.totalorder %v3585_v9, 16 }
 0x35e   : > { %3656 = vst.msk [vmem:[#allocation2 + $0x39] sm:$0xff] %vm3650_vm1, %v3631_v13  ;;  %v3630_v19 = vsel %vm13944_vm8, %v3557_v14, 0.0  ;;  %v3397_v4 = vadd.f32 %v10982_v17, %v13908_v52  ;;  %v3391_v22 = vpop.f32.mrb[31].mxu0  ;;  %v3724_v6 = vld [vmem:[#allocation2 + $0x1] sm:$0xff]  ;;  %vm3597_vm8 = vcmp.ge.s32.totalorder %v3585_v9, 0  ;;  %v4200_v29 = vld [vmem:[#allocation2 + $0xa] sm:$0xff] }
 0x35f   : > { %3655 = vst.msk [vmem:[#allocation2 + $0x31] sm:$0xff] %vm3650_vm1, %v3630_v19  ;;  %v3392_v24 = vadd.f32 %v13908_v52, %v3391_v22  ;;  %11015 = vmatprep.mubr.msk.f32.mxu0 %vm3650_vm1, %v3724_v6  ;;  %v9556_v22 = vld [vmem:[%s15875_s5 + $0x88] sm:$0xff]  ;;  %vm14104_vm10 = vmand %vm3597_vm8, %vm3609_vm9 }
 0x360   : > { %v3560_v33 = vsel %vm3552_vm15, %v3397_v4, %v13868_v38  ;;  %11016 = vmatmul.mubr.msk.f32.vlgmr.msra.gmra.mrb[48].mxu0 %vm3650_vm1, %v3725_v42  ;;  %v4199_v32 = vld [vmem:[#allocation2 + $0x2] sm:$0xff] }
 0x361   : > { %v3633_v26 = vsel %vm13966_vm12, %v3560_v33, 0.0  ;;  %v3559_v7 = vsel %vm3552_vm15, %v3392_v24, %v13870_v39  ;;  %v10985_v23 = vpop.f32.mrb[32].mxu0  ;;  %11732 = vmatpush3.bf16.msra.mxu0 %v13861_v20  ;;  %v11749_v39 = vpack.c.bf16 %v9534_v36, %v9533_v34  ;;  %v14010_v19 = vld [vmem:[#allocation2 + $0x21] sm:$0xff] }
 0x362   : > { %3658 = vst.msk [vmem:[#allocation2 + $0x51] sm:$0xff] %vm3650_vm1, %v3633_v26  ;;  %v3632_v38 = vsel %vm13966_vm12, %v3559_v7, 0.0  ;;  %v3407_v11 = vadd.f32 %v10985_v23, %v13908_v52  ;;  %v3401_v13 = vpop.f32.mrb[33].mxu0  ;;  %v13997_v14 = vld [vmem:[#allocation2 + $0x19] sm:$0xff]  ;;  %11734 = vmatprep.subr.bf16.mxu0 %v11733_v53  ;;  %v14012_v4 = vld [vmem:[#allocation2 + $0x22] sm:$0xff] }
 0x363   : > { %v13999_v17 = vld [vmem:[#allocation2 + $0x1a] sm:$0xff]  ;;  %3657 = vst.msk [vmem:[#allocation2 + $0x49] sm:$0xff] %vm3650_vm1, %v3632_v38  ;;  %v3402_v20 = vadd.f32 %v13908_v52, %v3401_v13  ;;  %11018 = vmatprep.mubr.msk.f32.mxu0 %vm3650_vm1, %v13997_v14 }
 0x364   : > { %11094 = vmatprep.mubr.msk.f32.mxu1 %vm3650_vm1, %v13999_v17  ;;  %v3562_v6 = vsel %vm3552_vm15, %v3407_v11, %v13872_v40  ;;  %11019 = vmatmul.mubr.msk.f32.gmra.mrb[50].mxu0 %vm3650_vm1, %v14010_v19 }
 0x365   : > { %11095 = vmatmul.mubr.msk.f32.vlgmr.msra.gmra.mrb[0].mxu1 %vm3650_vm1, %v14012_v4  ;;  %v3635_v24 = vsel %vm13988_vm14, %v3562_v6, 0.0  ;;  %v3561_v42 = vsel %vm3552_vm15, %v3402_v20, %v13874_v41  ;;  %v10988_v34 = vpop.f32.mrb[34].mxu0  ;;  %11736 = vmatpush3.bf16.msra.mxu0 %v11733_v53  ;;  %v14051_v54 = vld [vmem:[#allocation2 + $0x39] sm:$0xff] }
 0x366   : > { %11748 = vmatpush3.bf16.msra.mxu1 %v13852_v15  ;;  %3660 = vst.msk [vmem:[#allocation2 + $0x69] sm:$0xff] %vm3650_vm1, %v3635_v24  ;;  %v3634_v40 = vsel %vm13988_vm14, %v3561_v42, 0.0  ;;  %v3417_v36 = vadd.f32 %v10988_v34, %v13908_v52  ;;  %v3411_v26 = vpop.f32.mrb[35].mxu0  ;;  %v14038_v7 = vld [vmem:[#allocation2 + $0x31] sm:$0xff]  ;;  %v14042_v15 = vpack.c.bf16 %v9556_v22, %v9555_v43  ;;  %11738 = vmatprep.subr.bf16.mxu0 %v13829_v35  ;;  %v14053_v23 = vld [vmem:[#allocation2 + $0x3a] sm:$0xff]  ;;  %v3586_v34 = vadd.s32 8, %v13899_v3 }
 0x367   : > { %v14040_v41 = vld [vmem:[#allocation2 + $0x32] sm:$0xff]  ;;  %11750 = vmatprep.subr.bf16.mxu1 %v11749_v39  ;;  %3659 = vst.msk [vmem:[#allocation2 + $0x61] sm:$0xff] %vm3650_vm1, %v3634_v40  ;;  %v3412_v53 = vadd.f32 %v13908_v52, %v3411_v26  ;;  %11021 = vmatprep.mubr.msk.f32.mxu0 %vm3650_vm1, %v14038_v7 }
 0x368   : > { %11097 = vmatprep.mubr.msk.f32.mxu1 %vm3650_vm1, %v14040_v41  ;;  %v3564_v38 = vsel %vm3552_vm15, %v3417_v36, %v13876_v44  ;;  %11022 = vmatmul.mubr.msk.f32.gmra.mrb[52].mxu0 %vm3650_vm1, %v14051_v54  ;;  %vm3598_vm11 = vcmp.ge.s32.totalorder %v3586_v34, 0  ;;  %vm3610_vm12 = vcmp.lt.s32.totalorder %v3586_v34, 16 }
 0x369   : > { %11098 = vmatmul.mubr.msk.f32.gmra.mrb[2].mxu1 %vm3650_vm1, %v14053_v23  ;;  %v3637_v11 = vsel %vm14034_vm3, %v3564_v38, 0.0  ;;  %v3563_v13 = vsel %vm3552_vm15, %v3412_v53, %v13878_v46  ;;  %v10991_v43 = vpop.f32.mrb[36].mxu0  ;;  %v14087_v42 = vld [vmem:[#allocation2 + $0x52] sm:$0xff]  ;;  %vm14137_vm13 = vmand %vm3598_vm11, %vm3610_vm12 }
 0x36a   : > { %11752 = vmatpush3.bf16.msra.mxu1 %v11749_v39  ;;  %3662 = vst.msk [vmem:[#allocation2 + $0x81] sm:$0xff] %vm3650_vm1, %v3637_v11  ;;  %v3636_v20 = vsel %vm14034_vm3, %v3563_v13, 0.0  ;;  %v3427_v44 = vadd.f32 %v10991_v43, %v13908_v52  ;;  %v3421_v22 = vpop.f32.mrb[37].mxu0  ;;  %v14074_v6 = vld [vmem:[#allocation2 + $0x49] sm:$0xff]  ;;  %v14085_v39 = vld [vmem:[#allocation2 + $0x51] sm:$0xff] }
 0x36b   : > { %v14076_v24 = vld [vmem:[#allocation2 + $0x4a] sm:$0xff]  ;;  %11754 = vmatprep.subr.bf16.mxu1 %v14042_v15  ;;  %3661 = vst.msk [vmem:[#allocation2 + $0x79] sm:$0xff] %vm3650_vm1, %v3636_v20  ;;  %v3422_v46 = vadd.f32 %v13908_v52, %v3421_v22  ;;  %11024 = vmatprep.mubr.msk.f32.mxu0 %vm3650_vm1, %v14074_v6 }
 0x36c   : > { %11100 = vmatprep.mubr.msk.f32.mxu1 %vm3650_vm1, %v14076_v24  ;;  %v3566_v40 = vsel %vm3552_vm15, %v3427_v44, %v13880_v48  ;;  %11025 = vmatmul.mubr.msk.f32.gmra.mrb[54].mxu0 %vm3650_vm1, %v14085_v39  ;;  %v3587_v44 = vadd.s32 9, %v13899_v3 }
 0x36d   : > { %11101 = vmatmul.mubr.msk.f32.gmra.mrb[4].mxu1 %vm3650_vm1, %v14087_v42  ;;  %v3639_v36 = vsel %vm14070_vm7, %v3566_v40, 0.0  ;;  %v3565_v33 = vsel %vm3552_vm15, %v3422_v46, %v13882_v49  ;;  %v10994_v26 = vpop.f32.mrb[38].mxu0  ;;  %v14118_v43 = vld [vmem:[#allocation2 + $0x69] sm:$0xff] }
 0x36e   : > { %3664 = vst.msk [vmem:[#allocation2 + $0x99] sm:$0xff] %vm3650_vm1, %v3639_v36  ;;  %v3638_v53 = vsel %vm14070_vm7, %v3565_v33, 0.0  ;;  %v3437_v48 = vadd.f32 %v10994_v26, %v13908_v52  ;;  %v3431_v38 = vpop.f32.mrb[39].mxu0  ;;  %v14108_v11 = vld [vmem:[#allocation2 + $0x61] sm:$0xff]  ;;  %v14120_v20 = vld [vmem:[#allocation2 + $0x6a] sm:$0xff]  ;;  %vm3599_vm14 = vcmp.ge.s32.totalorder %v3587_v44, 0 }
 0x36f   : > { %v14110_v13 = vld [vmem:[#allocation2 + $0x62] sm:$0xff]  ;;  %3663 = vst.msk [vmem:[#allocation2 + $0x91] sm:$0xff] %vm3650_vm1, %v3638_v53  ;;  %v3432_v49 = vadd.f32 %v13908_v52, %v3431_v38  ;;  %11027 = vmatprep.mubr.msk.f32.mxu0 %vm3650_vm1, %v14108_v11  ;;  %vm3611_vm0 = vcmp.lt.s32.totalorder %v3587_v44, 16  ;;  %v3588_v38 = vadd.s32 10, %v13899_v3 }
 0x370   : > { %11103 = vmatprep.mubr.msk.f32.mxu1 %vm3650_vm1, %v14110_v13  ;;  %v3568_v21 = vsel %vm3552_vm15, %v3437_v48, %v13884_v51  ;;  %11028 = vmatmul.mubr.msk.f32.gmra.mrb[56].mxu0 %vm3650_vm1, %v14118_v43  ;;  %vm14170_vm2 = vmand %vm3599_vm14, %vm3611_vm0 }
 0x371   : > { %11104 = vmatmul.mubr.msk.f32.gmra.mrb[6].mxu1 %vm3650_vm1, %v14120_v20  ;;  %v3641_v22 = vsel %vm14104_vm10, %v3568_v21, 0.0  ;;  %v3567_v46 = vsel %vm3552_vm15, %v3432_v49, %v13886_v58  ;;  %v10997_v40 = vpop.f32.mrb[40].mxu0  ;;  %v14151_v48 = vld [vmem:[#allocation2 + $0x81] sm:$0xff]  ;;  %vm3600_vm3 = vcmp.ge.s32.totalorder %v3588_v38, 0  ;;  %vm3612_vm5 = vcmp.lt.s32.totalorder %v3588_v38, 16 }
 0x372   : > { %3666 = vst.msk [vmem:[#allocation2 + $0xb1] sm:$0xff] %vm3650_vm1, %v3641_v22  ;;  %v3640_v34 = vsel %vm14104_vm10, %v3567_v46, 0.0  ;;  %v3447_v51 = vadd.f32 %v10997_v40, %v13908_v52  ;;  %v3441_v33 = vpop.f32.mrb[41].mxu0  ;;  %v14141_v26 = vld [vmem:[#allocation2 + $0x79] sm:$0xff]  ;;  %v14153_v9 = vld [vmem:[#allocation2 + $0x82] sm:$0xff]  ;;  %vm14203_vm6 = vmand %vm3600_vm3, %vm3612_vm5  ;;  %vm6580_vm10 = vcmask 516096  }
 0x373   : > { %v14143_v53 = vld [vmem:[#allocation2 + $0x7a] sm:$0xff]  ;;  %3665 = vst.msk [vmem:[#allocation2 + $0xa9] sm:$0xff] %vm3650_vm1, %v3640_v34  ;;  %v3442_v58 = vadd.f32 %v13908_v52, %v3441_v33  ;;  %11030 = vmatprep.mubr.msk.f32.mxu0 %vm3650_vm1, %v14141_v26 }
 0x374   : > { %11106 = vmatprep.mubr.msk.f32.mxu1 %vm3650_vm1, %v14143_v53  ;;  %v3570_v49 = vsel %vm3552_vm15, %v3447_v51, %v13888_v59  ;;  %11031 = vmatmul.mubr.msk.f32.gmra.mrb[58].mxu0 %vm3650_vm1, %v14151_v48 }
 0x375   : > { %11107 = vmatmul.mubr.msk.f32.gmra.mrb[8].mxu1 %vm3650_vm1, %v14153_v9  ;;  %v3643_v21 = vsel %vm14137_vm13, %v3570_v49, 0.0  ;;  %v3569_v22 = vsel %vm3552_vm15, %v3442_v58, %v13890_v61  ;;  %v11000_v46 = vpop.f32.mrb[42].mxu0  ;;  %v14184_v36 = vld [vmem:[#allocation2 + $0x99] sm:$0xff]  ;;  %v3589_v49 = vadd.s32 11, %v13899_v3 }
 0x376   : > { %3668 = vst.msk [vmem:[#allocation2 + $0xc9] sm:$0xff] %vm3650_vm1, %v3643_v21  ;;  %v3642_v44 = vsel %vm14137_vm13, %v3569_v22, 0.0  ;;  %v3457_v59 = vadd.f32 %v11000_v46, %v13908_v52  ;;  %v3451_v34 = vpop.f32.mrb[43].mxu0  ;;  %v14174_v51 = vld [vmem:[#allocation2 + $0x91] sm:$0xff]  ;;  %v14186_v58 = vld [vmem:[#allocation2 + $0x9a] sm:$0xff] }
 0x377   : > { %v14176_v33 = vld [vmem:[#allocation2 + $0x92] sm:$0xff]  ;;  %3667 = vst.msk [vmem:[#allocation2 + $0xc1] sm:$0xff] %vm3650_vm1, %v3642_v44  ;;  %v3452_v61 = vadd.f32 %v13908_v52, %v3451_v34  ;;  %11033 = vmatprep.mubr.msk.f32.mxu0 %vm3650_vm1, %v14174_v51  ;;  %vm3601_vm7 = vcmp.ge.s32.totalorder %v3589_v49, 0  ;;  %vm3613_vm8 = vcmp.lt.s32.totalorder %v3589_v49, 16 }
 0x378   : > { %11109 = vmatprep.mubr.msk.f32.mxu1 %vm3650_vm1, %v14176_v33  ;;  %v3572_v21 = vsel %vm3552_vm15, %v3457_v59, %v13893_v1  ;;  %11034 = vmatmul.mubr.msk.f32.gmra.mrb[60].mxu0 %vm3650_vm1, %v14184_v36  ;;  %vm14235_vm9 = vmand %vm3601_vm7, %vm3613_vm8 }
 0x379   : > { %11110 = vmatmul.mubr.msk.f32.gmra.mrb[10].mxu1 %vm3650_vm1, %v14186_v58  ;;  %v3645_v22 = vsel %vm14170_vm2, %v3572_v21, 0.0  ;;  %v3571_v46 = vsel %vm3552_vm15, %v3452_v61, %v13895_v2  ;;  %v11003_v44 = vpop.f32.mrb[44].mxu0  ;;  %v14217_v40 = vld [vmem:[#allocation2 + $0xb1] sm:$0xff] }
 0x37a   : > { %3670 = vst.msk [vmem:[#allocation2 + $0xe1] sm:$0xff] %vm3650_vm1, %v3645_v22  ;;  %v3644_v3 = vsel %vm14170_vm2, %v3571_v46, 0.0  ;;  %v3467_v1 = vadd.f32 %v11003_v44, %v13908_v52  ;;  %v3461_v59 = vpop.f32.mrb[45].mxu0  ;;  %v14207_v34 = vld [vmem:[#allocation2 + $0xa9] sm:$0xff]  ;;  %v14219_v61 = vld [vmem:[#allocation2 + $0xb2] sm:$0xff] }
 0x37b   : > { %v14209_v55 = vld [vmem:[#allocation2 + $0xaa] sm:$0xff]  ;;  %3669 = vst.msk [vmem:[#allocation2 + $0xd9] sm:$0xff] %vm3650_vm1, %v3644_v3  ;;  %v3462_v2 = vadd.f32 %v13908_v52, %v3461_v59  ;;  %11036 = vmatprep.mubr.msk.f32.mxu0 %vm3650_vm1, %v14207_v34 }
 0x37c   : > { %11112 = vmatprep.mubr.msk.f32.mxu1 %vm3650_vm1, %v14209_v55  ;;  %v3574_v21 = vsel %vm3552_vm15, %v3467_v1, %v13901_v5  ;;  %11037 = vmatmul.mubr.msk.f32.gmra.mrb[62].mxu0 %vm3650_vm1, %v14217_v40  ;;  %v14368_v45 = vld [vmem:[#allocation2 + $0xb0] sm:$0xff] }
 0x37d   : > { %11113 = vmatmul.mubr.msk.f32.gmra.mrb[12].mxu1 %vm3650_vm1, %v14219_v61  ;;  %v3647_v22 = vsel %vm14203_vm6, %v3574_v21, 0.0  ;;  %v3573_v46 = vsel %vm3552_vm15, %v3462_v2, %v13903_v27  ;;  %v11006_v44 = vpop.f32.mrb[46].mxu0  ;;  %v3527_v21 = vpop.permute.xlu1 %3526  ;;  %v14249_v38 = vld [vmem:[#allocation2 + $0xc9] sm:$0xff] }
 0x37e   : > { %3672 = vst.msk [vmem:[#allocation2 + $0xf9] sm:$0xff] %vm3650_vm1, %v3647_v22  ;;  %v3646_v49 = vsel %vm14203_vm6, %v3573_v46, 0.0  ;;  %v3477_v5 = vadd.f32 %v11006_v44, %v13908_v52  ;;  %v3471_v1 = vpop.f32.mrb[47].mxu0  ;;  %v14239_v59 = vld [vmem:[#allocation2 + $0xc1] sm:$0xff]  ;;  %v14251_v2 = vld [vmem:[#allocation2 + $0xca] sm:$0xff]  ;;  %v3525_v22 = vpop.permute.xlu0 %3524 }
 0x37f   : > { %v14241_v28 = vld [vmem:[#allocation2 + $0xc2] sm:$0xff]  ;;  %3671 = vst.msk [vmem:[#allocation2 + $0xf1] sm:$0xff] %vm3650_vm1, %v3646_v49  ;;  %v3472_v27 = vadd.f32 %v13908_v52, %v3471_v1  ;;  %11039 = vmatprep.mubr.msk.f32.mxu0 %vm3650_vm1, %v14239_v59 }
 0x380   : > { %11115 = vmatprep.mubr.msk.f32.mxu1 %vm3650_vm1, %v14241_v28  ;;  %v3576_v46 = vsel %vm3552_vm15, %v3477_v5, %v3527_v21  ;;  %11040 = vmatmul.mubr.msk.f32.gmra.mrb[64].mxu0 %vm3650_vm1, %v14249_v38  ;;  %v9557_v5 = vld [vmem:[%s15875_s5 + $0x90] sm:$0xff]  ;;  %v14374_v47 = vld [vmem:[#allocation2 + $0xc0] sm:$0xff]  ;;  %v14380_v25 = vld [vmem:[#allocation2 + $0xc8] sm:$0xff] }
 0x381   : > { %11116 = vmatmul.mubr.msk.f32.gmra.mrb[14].mxu1 %vm3650_vm1, %v14251_v2  ;;  %v3649_v52 = vsel %vm14235_vm9, %v3576_v46, 0.0  ;;  %v3575_v44 = vsel %vm3552_vm15, %v3472_v27, %v3525_v22  ;;  %v14276_v21 = vld [vmem:[#allocation2 + $0xe1] sm:$0xff]  ;;  %v9558_v27 = vld [vmem:[%s15875_s5 + $0x98] sm:$0xff] }
 0x382   : > { %3674 = vst.msk [vmem:[#allocation2 + $0x111] sm:$0xff] %vm3650_vm1, %v3649_v52  ;;  %v3648_v49 = vsel %vm14235_vm9, %v3575_v44, 0.0  ;;  %v14264_v1 = vld [vmem:[#allocation2 + $0xd9] sm:$0xff]  ;;  %v14278_v3 = vld [vmem:[#allocation2 + $0xe2] sm:$0xff]  ;;  %v11757_v52 = vpack.c.bf16 %v9558_v27, %v9557_v5  ;;  %v14306_v27 = vpack.c.bf16 %v9580_v63, %v9579_v60 }
 0x383   : > { %v14266_v31 = vld [vmem:[#allocation2 + $0xda] sm:$0xff]  ;;  %3673 = vst.msk [vmem:[#allocation2 + $0x109] sm:$0xff] %vm3650_vm1, %v3648_v49  ;;  %11042 = vmatprep.mubr.msk.f32.mxu0 %vm3650_vm1, %v14264_v1  ;;  %v3701_v44 = vld [vmem:[#allocation2 + $0x8] sm:$0xff] }
 0x384   : > { %11118 = vmatprep.mubr.msk.f32.mxu1 %vm3650_vm1, %v14266_v31  ;;  %11043 = vmatmul.mubr.msk.f32.gmra.mrb[66].mxu0 %vm3650_vm1, %v14276_v21  ;;  %v3700_v22 = vld [vmem:[#allocation2] sm:$0xff]  ;;  %v4470_v46 = vld [vmem:[#allocation2 + $0x18] sm:$0xff]  ;;  %v14332_v63 = vld [vmem:[#allocation2 + $0x68] sm:$0xff] }
 0x385   : > { %11119 = vmatmul.mubr.msk.f32.gmra.mrb[16].mxu1 %vm3650_vm1, %v14278_v3  ;;  %11053 = vmatprep.mubr.msk.f32.mxu0 %vm3650_vm1, %v3700_v22  ;;  %v4471_v49 = vld [vmem:[#allocation2 + $0x20] sm:$0xff]  ;;  %v14299_v22 = vld [vmem:[#allocation2 + $0x30] sm:$0xff]  ;;  %v14303_v5 = vld [vmem:[#allocation2 + $0x38] sm:$0xff] }
 0x386   : > { %11129 = vmatprep.mubr.msk.f32.mxu1 %vm3650_vm1, %v4470_v46  ;;  %v14326_v60 = vld [vmem:[#allocation2 + $0x60] sm:$0xff]  ;;  %v14386_v37 = vld [vmem:[#allocation2 + $0xd8] sm:$0xff]  ;;  %v14398_v18 = vld [vmem:[#allocation2 + $0xf0] sm:$0xff] }
 0x387   : > { %v14392_v16 = vld [vmem:[#allocation2 + $0xe0] sm:$0xff]  ;;  %v14404_v8 = vld [vmem:[#allocation2 + $0xf8] sm:$0xff] }
 0x388   : > { %11054 = vmatmul.mubr.msk.f32.vlgmr.msra.gmra.mrb[48].mxu0 %vm3650_vm1, %v3701_v44  ;;  %v14356_v44 = vld [vmem:[#allocation2 + $0x98] sm:$0xff] }
 0x389   : > { %11130 = vmatmul.mubr.msk.f32.vlgmr.msra.gmra.mrb[18].mxu1 %vm3650_vm1, %v4471_v49  ;;  %11056 = vmatprep.mubr.msk.f32.mxu0 %vm3650_vm1, %v4470_v46  ;;  %v14318_v46 = vld [vmem:[#allocation2 + $0x50] sm:$0xff]  ;;  %v14465_v0 = vld [vmem:[#allocation2 + $0xf9] sm:$0xff] }
 0x38a   : > { %11756 = vmatpush3.bf16.msra.mxu1 %v14042_v15  ;;  %11132 = vmatprep.mubr.msk.f32.mxu1 %vm3650_vm1, %v14299_v22  ;;  %v14311_v15 = vld [vmem:[#allocation2 + $0x48] sm:$0xff]  ;;  %v14461_v62 = vld [vmem:[#allocation2 + $0xf1] sm:$0xff] }
 0x38b   : > { %11758 = vmatprep.subr.bf16.mxu1 %v11757_v52  ;;  %11740 = vmatpush3.bf16.msra.mxu0 %v13829_v35  ;;  %v14338_v35 = vld [vmem:[#allocation2 + $0x78] sm:$0xff] }
 0x38c   : > { %11057 = vmatmul.mubr.msk.f32.gmra.mrb[50].mxu0 %vm3650_vm1, %v4471_v49  ;;  %11742 = vmatprep.subr.bf16.mxu0 %v13842_v12  ;;  %v14362_v49 = vld [vmem:[#allocation2 + $0xa8] sm:$0xff] }
 0x38d   : > { %11133 = vmatmul.mubr.msk.f32.gmra.mrb[0].mxu1 %vm3650_vm1, %v14303_v5  ;;  %11059 = vmatprep.mubr.msk.f32.mxu0 %vm3650_vm1, %v14299_v22 }
 0x38e   : > { %11135 = vmatprep.mubr.msk.f32.mxu1 %vm3650_vm1, %v14311_v15  ;;  %11760 = vmatpush3.bf16.msra.mxu1 %v11757_v52  ;;  %v14350_v52 = vld [vmem:[#allocation2 + $0x90] sm:$0xff] }
 0x38f   : > { %11744 = vmatpush3.bf16.msra.mxu0 %v13842_v12  ;;  %11762 = vmatprep.subr.bf16.mxu1 %v14306_v27  ;;  %v14344_v12 = vld [vmem:[#allocation2 + $0x80] sm:$0xff] }
 0x390   : > { %11060 = vmatmul.mubr.msk.f32.gmra.mrb[52].mxu0 %vm3650_vm1, %v14303_v5 }
 0x391   : > { %11136 = vmatmul.mubr.msk.f32.gmra.mrb[2].mxu1 %vm3650_vm1, %v14318_v46  ;;  %11062 = vmatprep.mubr.msk.f32.mxu0 %vm3650_vm1, %v14311_v15 }
 0x392   : > { %11138 = vmatprep.mubr.msk.f32.mxu1 %vm3650_vm1, %v14326_v60 }
 0x394   : > { %11063 = vmatmul.mubr.msk.f32.gmra.mrb[54].mxu0 %vm3650_vm1, %v14318_v46 }
 0x395   : > { %11139 = vmatmul.mubr.msk.f32.gmra.mrb[4].mxu1 %vm3650_vm1, %v14332_v63  ;;  %11065 = vmatprep.mubr.msk.f32.mxu0 %vm3650_vm1, %v14326_v60 }
 0x396   : > { %11141 = vmatprep.mubr.msk.f32.mxu1 %vm3650_vm1, %v14338_v35 }
 0x398   : > { %11066 = vmatmul.mubr.msk.f32.gmra.mrb[56].mxu0 %vm3650_vm1, %v14332_v63 }
 0x399   : > { %11142 = vmatmul.mubr.msk.f32.gmra.mrb[6].mxu1 %vm3650_vm1, %v14344_v12  ;;  %11068 = vmatprep.mubr.msk.f32.mxu0 %vm3650_vm1, %v14338_v35 }
 0x39a   : > { %11144 = vmatprep.mubr.msk.f32.mxu1 %vm3650_vm1, %v14350_v52 }
 0x39c   : > { %11069 = vmatmul.mubr.msk.f32.gmra.mrb[58].mxu0 %vm3650_vm1, %v14344_v12 }
 0x39d   : > { %11145 = vmatmul.mubr.msk.f32.gmra.mrb[8].mxu1 %vm3650_vm1, %v14356_v44  ;;  %11071 = vmatprep.mubr.msk.f32.mxu0 %vm3650_vm1, %v14350_v52 }
 0x39e   : > { %11147 = vmatprep.mubr.msk.f32.mxu1 %vm3650_vm1, %v14362_v49 }
 0x3a0   : > { %11072 = vmatmul.mubr.msk.f32.gmra.mrb[60].mxu0 %vm3650_vm1, %v14356_v44 }
 0x3a1   : > { %11148 = vmatmul.mubr.msk.f32.gmra.mrb[10].mxu1 %vm3650_vm1, %v14368_v45  ;;  %11074 = vmatprep.mubr.msk.f32.mxu0 %vm3650_vm1, %v14362_v49 }
 0x3a2   : > { %11150 = vmatprep.mubr.msk.f32.mxu1 %vm3650_vm1, %v14374_v47 }
 0x3a4   : > { %11075 = vmatmul.mubr.msk.f32.gmra.mrb[62].mxu0 %vm3650_vm1, %v14368_v45 }
 0x3a5   : > { %11151 = vmatmul.mubr.msk.f32.gmra.mrb[12].mxu1 %vm3650_vm1, %v14380_v25  ;;  %11077 = vmatprep.mubr.msk.f32.mxu0 %vm3650_vm1, %v14374_v47 }
 0x3a6   : > { %11153 = vmatprep.mubr.msk.f32.mxu1 %vm3650_vm1, %v14386_v37 }
 0x3a8   : > { %11078 = vmatmul.mubr.msk.f32.gmra.mrb[64].mxu0 %vm3650_vm1, %v14380_v25 }
 0x3a9   : > { %11154 = vmatmul.mubr.msk.f32.gmra.mrb[14].mxu1 %vm3650_vm1, %v14392_v16  ;;  %11080 = vmatprep.mubr.msk.f32.mxu0 %vm3650_vm1, %v14386_v37 }
 0x3aa   : > { %11156 = vmatprep.mubr.msk.f32.mxu1 %vm3650_vm1, %v14398_v18 }
 0x3ac   : > { %11081 = vmatmul.mubr.msk.f32.gmra.mrb[66].mxu0 %vm3650_vm1, %v14392_v16 }
 0x3ad   : > { %11157 = vmatmul.mubr.msk.f32.gmra.mrb[16].mxu1 %vm3650_vm1, %v14404_v8  ;;  %11091 = vmatprep.mubr.msk.f32.mxu0 %vm3650_vm1, %v4199_v32 }
 0x3ae   : > { %11167 = vmatprep.mubr.msk.f32.mxu1 %vm3650_vm1, %v13997_v14  ;;  %v9628_v14 = vld [vmem:[%s15875_s5 + $0xe8] sm:$0xff] }
 0x3b0   : > { %11092 = vmatmul.mubr.msk.f32.vlgmr.msra.gmra.mrb[48].mxu0 %vm3650_vm1, %v4200_v29  ;;  %v9606_v29 = vld [vmem:[%s15875_s5 + $0xd8] sm:$0xff] }
 0x3b1   : > { %11168 = vmatmul.mubr.msk.f32.vlgmr.msra.gmra.mrb[18].mxu1 %vm3650_vm1, %v14010_v19  ;;  %v11777_v19 = vpack.c.bf16 %v9628_v14, %v9627_v10 }
 0x3b2   : > { %11764 = vmatpush3.bf16.msra.mxu1 %v14306_v27  ;;  %11170 = vmatprep.mubr.msk.f32.mxu1 %vm3650_vm1, %v14038_v7  ;;  %v9629_v27 = vld [vmem:[%s15875_s5 + $0xf0] sm:$0xff] }
 0x3b3   : > { %11766 = vmatprep.subr.bf16.mxu1 %v11765_v30 }
 0x3b5   : > { %11171 = vmatmul.mubr.msk.f32.gmra.mrb[0].mxu1 %vm3650_vm1, %v14051_v54 }
 0x3b6   : > { %11173 = vmatprep.mubr.msk.f32.mxu1 %vm3650_vm1, %v14074_v6  ;;  %11768 = vmatpush3.bf16.msra.mxu1 %v11765_v30  ;;  %v9605_v30 = vld [vmem:[%s15875_s5 + $0xd0] sm:$0xff] }
 0x3b7   : > { %11770 = vmatprep.subr.bf16.mxu1 %v11769_v56  ;;  %v11773_v32 = vpack.c.bf16 %v9606_v29, %v9605_v30  ;;  %v9651_v29 = vld [vmem:[%s15875_s5 + $0x100] sm:$0xff] }
 0x3b9   : > { %11174 = vmatmul.mubr.msk.f32.gmra.mrb[2].mxu1 %vm3650_vm1, %v14085_v39 }
 0x3ba   : > { %11176 = vmatprep.mubr.msk.f32.mxu1 %vm3650_vm1, %v14108_v11 }
 0x3bd   : > { %11177 = vmatmul.mubr.msk.f32.gmra.mrb[4].mxu1 %vm3650_vm1, %v14118_v43 }
 0x3be   : > { %11179 = vmatprep.mubr.msk.f32.mxu1 %vm3650_vm1, %v14141_v26 }
 0x3c1   : > { %11180 = vmatmul.mubr.msk.f32.gmra.mrb[6].mxu1 %vm3650_vm1, %v14151_v48 }
 0x3c2   : > { %11182 = vmatprep.mubr.msk.f32.mxu1 %vm3650_vm1, %v14174_v51 }
 0x3c5   : > { %11183 = vmatmul.mubr.msk.f32.gmra.mrb[8].mxu1 %vm3650_vm1, %v14184_v36 }
 0x3c6   : > { %11185 = vmatprep.mubr.msk.f32.mxu1 %vm3650_vm1, %v14207_v34 }
 0x3c9   : > { %11186 = vmatmul.mubr.msk.f32.gmra.mrb[10].mxu1 %vm3650_vm1, %v14217_v40 }
 0x3ca   : > { %11188 = vmatprep.mubr.msk.f32.mxu1 %vm3650_vm1, %v14239_v59 }
 0x3cd   : > { %11189 = vmatmul.mubr.msk.f32.gmra.mrb[12].mxu1 %vm3650_vm1, %v14249_v38 }
 0x3ce   : > { %11191 = vmatprep.mubr.msk.f32.mxu1 %vm3650_vm1, %v14264_v1 }
 0x3d1   : > { %11192 = vmatmul.mubr.msk.f32.gmra.mrb[14].mxu1 %vm3650_vm1, %v14276_v21 }
 0x3d2   : > { %11194 = vmatprep.mubr.msk.f32.mxu1 %vm3650_vm1, %v14461_v62 }
 0x3d5   : > { %11195 = vmatmul.mubr.msk.f32.gmra.mrb[16].mxu1 %vm3650_vm1, %v14465_v0 }
 0x3d6   : > { %11205 = vmatprep.mubr.msk.f32.mxu1 %vm3650_vm1, %v13999_v17  ;;  %v14517_v17 = vld [vmem:[#allocation2 + $0xf2] sm:$0xff] }
 0x3d9   : > { %11206 = vmatmul.mubr.msk.f32.vlgmr.msra.gmra.mrb[18].mxu1 %vm3650_vm1, %v14012_v4  ;;  %v14521_v4 = vld [vmem:[#allocation2 + $0xfa] sm:$0xff] }
 0x3da   : > { %11772 = vmatpush3.bf16.msra.mxu1 %v11769_v56  ;;  %11208 = vmatprep.mubr.msk.f32.mxu1 %vm3650_vm1, %v14040_v41  ;;  %v9630_v56 = vld [vmem:[%s15875_s5 + $0xf8] sm:$0xff] }
 0x3db   : > { %11774 = vmatprep.subr.bf16.mxu1 %v11773_v32  ;;  %v11781_v30 = vpack.c.bf16 %v9630_v56, %v9629_v27 }
 0x3dd   : > { %11209 = vmatmul.mubr.msk.f32.gmra.mrb[0].mxu1 %vm3650_vm1, %v14053_v23 }
 0x3de   : > { %11211 = vmatprep.mubr.msk.f32.mxu1 %vm3650_vm1, %v14076_v24  ;;  %11776 = vmatpush3.bf16.msra.mxu1 %v11773_v32  ;;  %v9652_v32 = vld [vmem:[%s15875_s5 + $0x108] sm:$0xff] }
 0x3df   : > { %11778 = vmatprep.subr.bf16.mxu1 %v11777_v19  ;;  %v11785_v10 = vpack.c.bf16 %v9652_v32, %v9651_v29 }
 0x3e1   : > { %11212 = vmatmul.mubr.msk.f32.gmra.mrb[2].mxu1 %vm3650_vm1, %v14087_v42 }
 0x3e2   : > { %11214 = vmatprep.mubr.msk.f32.mxu1 %vm3650_vm1, %v14110_v13 }
 0x3e5   : > { %11215 = vmatmul.mubr.msk.f32.gmra.mrb[4].mxu1 %vm3650_vm1, %v14120_v20 }
 0x3e6   : > { %11217 = vmatprep.mubr.msk.f32.mxu1 %vm3650_vm1, %v14143_v53 }
 0x3e9   : > { %11218 = vmatmul.mubr.msk.f32.gmra.mrb[6].mxu1 %vm3650_vm1, %v14153_v9 }
 0x3ea   : > { %11220 = vmatprep.mubr.msk.f32.mxu1 %vm3650_vm1, %v14176_v33 }
 0x3ed   : > { %11221 = vmatmul.mubr.msk.f32.gmra.mrb[8].mxu1 %vm3650_vm1, %v14186_v58 }
 0x3ee   : > { %11223 = vmatprep.mubr.msk.f32.mxu1 %vm3650_vm1, %v14209_v55 }
 0x3f1   : > { %11224 = vmatmul.mubr.msk.f32.gmra.mrb[10].mxu1 %vm3650_vm1, %v14219_v61 }
 0x3f2   : > { %11226 = vmatprep.mubr.msk.f32.mxu1 %vm3650_vm1, %v14241_v28 }
 0x3f5   : > { %11227 = vmatmul.mubr.msk.f32.gmra.mrb[12].mxu1 %vm3650_vm1, %v14251_v2 }
 0x3f6   : > { %11229 = vmatprep.mubr.msk.f32.mxu1 %vm3650_vm1, %v14266_v31 }
 0x3f9   : > { %11230 = vmatmul.mubr.msk.f32.gmra.mrb[14].mxu1 %vm3650_vm1, %v14278_v3 }
 0x3fa   : > { %11232 = vmatprep.mubr.msk.f32.mxu1 %vm3650_vm1, %v14517_v17 }
 0x3fd   : > { %11233 = vmatmul.mubr.msk.f32.gmra.mrb[16].mxu1 %vm3650_vm1, %v14521_v4 }
 0x3fe   : > { %11243 = vmatprep.mubr.msk.f32.mxu1 %vm3650_vm1, %v14299_v22  ;;  %v5299_v22 = vld [vmem:[#allocation2 + $0x108] sm:$0xff] }
 0x401   : > { %11244 = vmatmul.mubr.msk.f32.vlgmr.msra.gmra.mrb[18].mxu1 %vm3650_vm1, %v14303_v5 }
 0x402   : > { %11780 = vmatpush3.bf16.msra.mxu1 %v11777_v19  ;;  %11246 = vmatprep.mubr.msk.f32.mxu1 %vm3650_vm1, %v14311_v15 }
 0x403   : > { %11782 = vmatprep.subr.bf16.mxu1 %v11781_v30 }
 0x405   : > { %11247 = vmatmul.mubr.msk.f32.gmra.mrb[0].mxu1 %vm3650_vm1, %v14318_v46 }
 0x406   : > { %11249 = vmatprep.mubr.msk.f32.mxu1 %vm3650_vm1, %v14326_v60  ;;  %11784 = vmatpush3.bf16.msra.mxu1 %v11781_v30 }
 0x407   : > { %11786 = vmatprep.subr.bf16.mxu1 %v11785_v10 }
 0x409   : > { %11250 = vmatmul.mubr.msk.f32.gmra.mrb[2].mxu1 %vm3650_vm1, %v14332_v63 }
 0x40a   : > { %11252 = vmatprep.mubr.msk.f32.mxu1 %vm3650_vm1, %v14338_v35 }
 0x40d   : > { %11253 = vmatmul.mubr.msk.f32.gmra.mrb[4].mxu1 %vm3650_vm1, %v14344_v12 }
 0x40e   : > { %11255 = vmatprep.mubr.msk.f32.mxu1 %vm3650_vm1, %v14350_v52 }
 0x411   : > { %11256 = vmatmul.mubr.msk.f32.gmra.mrb[6].mxu1 %vm3650_vm1, %v14356_v44 }
 0x412   : > { %11258 = vmatprep.mubr.msk.f32.mxu1 %vm3650_vm1, %v14362_v49 }
 0x415   : > { %11259 = vmatmul.mubr.msk.f32.gmra.mrb[8].mxu1 %vm3650_vm1, %v14368_v45  ;;  %v5300_v45 = vld [vmem:[#allocation2 + $0x110] sm:$0xff] }
 0x416   : > { %11261 = vmatprep.mubr.msk.f32.mxu1 %vm3650_vm1, %v14374_v47 }
 0x419   : > { %11262 = vmatmul.mubr.msk.f32.gmra.mrb[10].mxu1 %vm3650_vm1, %v14380_v25  ;;  %v9653_v25 = vld [vmem:[%s15875_s5 + $0x110] sm:$0xff] }
 0x41a   : > { %11264 = vmatprep.mubr.msk.f32.mxu1 %vm3650_vm1, %v14386_v37  ;;  %v9654_v37 = vld [vmem:[%s15875_s5 + $0x118] sm:$0xff] }
 0x41d   : > { %11265 = vmatmul.mubr.msk.f32.gmra.mrb[12].mxu1 %vm3650_vm1, %v14392_v16  ;;  %v11789_v16 = vpack.c.bf16 %v9654_v37, %v9653_v25 }
 0x41e   : > { %11267 = vmatprep.mubr.msk.f32.mxu1 %vm3650_vm1, %v14398_v18  ;;  %v5570_v18 = vld [vmem:[#allocation2 + $0x111] sm:$0xff] }
 0x421   : > { %11268 = vmatmul.mubr.msk.f32.gmra.mrb[14].mxu1 %vm3650_vm1, %v14404_v8  ;;  %v5569_v8 = vld [vmem:[#allocation2 + $0x109] sm:$0xff] }
 0x422   : > { %11270 = vmatprep.mubr.msk.f32.mxu1 %vm3650_vm1, %v5299_v22 }
 0x425   : > { %11271 = vmatmul.mubr.msk.f32.gmra.mrb[16].mxu1 %vm3650_vm1, %v5300_v45 }
 0x426   : > { %11281 = vmatprep.mubr.msk.f32.mxu1 %vm3650_vm1, %v14038_v7 }
 0x429   : > { %11282 = vmatmul.mubr.msk.f32.vlgmr.msra.gmra.mrb[18].mxu1 %vm3650_vm1, %v14051_v54 }
 0x42a   : > { %11788 = vmatpush3.bf16.msra.mxu1 %v11785_v10  ;;  %11284 = vmatprep.mubr.msk.f32.mxu1 %vm3650_vm1, %v14074_v6 }
 0x42b   : > { %11790 = vmatprep.subr.bf16.mxu1 %v11789_v16 }
 0x42d   : > { %11285 = vmatmul.mubr.msk.f32.gmra.mrb[0].mxu1 %vm3650_vm1, %v14085_v39 }
 0x42e   : > { %11287 = vmatprep.mubr.msk.f32.mxu1 %vm3650_vm1, %v14108_v11  ;;  %11792 = vmatpush3.bf16.msra.mxu1 %v11789_v16  ;;  %v5840_v11 = vld [vmem:[#allocation2 + $0x112] sm:$0xff] }
 0x431   : > { %11288 = vmatmul.mubr.msk.f32.gmra.mrb[2].mxu1 %vm3650_vm1, %v14118_v43 }
 0x432   : > { %11290 = vmatprep.mubr.msk.f32.mxu1 %vm3650_vm1, %v14141_v26 }
 0x435   : > { %11291 = vmatmul.mubr.msk.f32.gmra.mrb[4].mxu1 %vm3650_vm1, %v14151_v48 }
 0x436   : > { %11293 = vmatprep.mubr.msk.f32.mxu1 %vm3650_vm1, %v14174_v51 }
 0x439   : > { %11294 = vmatmul.mubr.msk.f32.gmra.mrb[6].mxu1 %vm3650_vm1, %v14184_v36 }
 0x43a   : > { %11296 = vmatprep.mubr.msk.f32.mxu1 %vm3650_vm1, %v14207_v34 }
 0x43d   : > { %11297 = vmatmul.mubr.msk.f32.gmra.mrb[8].mxu1 %vm3650_vm1, %v14217_v40 }
 0x43e   : > { %11299 = vmatprep.mubr.msk.f32.mxu1 %vm3650_vm1, %v14239_v59 }
 0x441   : > { %11300 = vmatmul.mubr.msk.f32.gmra.mrb[10].mxu1 %vm3650_vm1, %v14249_v38 }
 0x442   : > { %11302 = vmatprep.mubr.msk.f32.mxu1 %vm3650_vm1, %v14264_v1 }
 0x445   : > { %11303 = vmatmul.mubr.msk.f32.gmra.mrb[12].mxu1 %vm3650_vm1, %v14276_v21 }
 0x446   : > { %11305 = vmatprep.mubr.msk.f32.mxu1 %vm3650_vm1, %v14461_v62 }
 0x449   : > { %11306 = vmatmul.mubr.msk.f32.gmra.mrb[14].mxu1 %vm3650_vm1, %v14465_v0 }
 0x44a   : > { %11308 = vmatprep.mubr.msk.f32.mxu1 %vm3650_vm1, %v5569_v8 }
 0x44d   : > { %11309 = vmatmul.mubr.msk.f32.gmra.mrb[16].mxu1 %vm3650_vm1, %v5570_v18 }
 0x44e   : > { %11319 = vmatprep.mubr.msk.f32.mxu1 %vm3650_vm1, %v14040_v41 }
 0x451   : > { %11320 = vmatmul.mubr.msk.f32.vlgmr.msra.gmra.mrb[18].mxu1 %vm3650_vm1, %v14053_v23 }
 0x452   : > { %11322 = vmatprep.mubr.msk.f32.mxu1 %vm3650_vm1, %v14076_v24 }
 0x455   : > { %11323 = vmatmul.mubr.msk.f32.gmra.mrb[0].mxu1 %vm3650_vm1, %v14087_v42  ;;  %v5839_v42 = vld [vmem:[#allocation2 + $0x10a] sm:$0xff] }
 0x456   : > { %11325 = vmatprep.mubr.msk.f32.mxu1 %vm3650_vm1, %v14110_v13 }
 0x459   : > { %11326 = vmatmul.mubr.msk.f32.gmra.mrb[2].mxu1 %vm3650_vm1, %v14120_v20 }
 0x45a   : > { %11328 = vmatprep.mubr.msk.f32.mxu1 %vm3650_vm1, %v14143_v53 }
 0x45d   : > { %11329 = vmatmul.mubr.msk.f32.gmra.mrb[4].mxu1 %vm3650_vm1, %v14153_v9 }
 0x45e   : > { %11331 = vmatprep.mubr.msk.f32.mxu1 %vm3650_vm1, %v14176_v33 }
 0x45f   : > { %v11058_v47 = vpop.f32.mrb[50].mxu0 }
 0x460   : > { %v4110_v7 = vpop.f32.mrb[51].mxu0 }
 0x461   : > { %11332 = vmatmul.mubr.msk.f32.gmra.mrb[6].mxu1 %vm3650_vm1, %v14186_v58  ;;  %v14682_v58 = vld [vmem:[%s15876_s6] ss:$0 sm:$0xff] }
 0x462   : > { %11334 = vmatprep.mubr.msk.f32.mxu1 %vm3650_vm1, %v14209_v55 }
 0x463   : > { %v11061_v41 = vpop.f32.mrb[52].mxu0 }
 0x464   : > { %v4120_v54 = vpop.f32.mrb[53].mxu0 }
 0x465   : > { %11335 = vmatmul.mubr.msk.f32.gmra.mrb[8].mxu1 %vm3650_vm1, %v14219_v61 }
 0x466   : > { %11337 = vmatprep.mubr.msk.f32.mxu1 %vm3650_vm1, %v14241_v28 }
 0x467   : > { %v11064_v23 = vpop.f32.mrb[54].mxu0 }
 0x468   : > { %v4130_v6 = vpop.f32.mrb[55].mxu0 }
 0x469   : > { %11338 = vmatmul.mubr.msk.f32.gmra.mrb[10].mxu1 %vm3650_vm1, %v14251_v2 }
 0x46a   : > { %11340 = vmatprep.mubr.msk.f32.mxu1 %vm3650_vm1, %v14266_v31 }
 0x46b   : > { %v11067_v24 = vpop.f32.mrb[56].mxu0 }
 0x46c   : > { %v14649_v39 = vpop.f32.mrb[57].mxu0 }
 0x46d   : > { %11341 = vmatmul.mubr.msk.f32.gmra.mrb[12].mxu1 %vm3650_vm1, %v14278_v3 }
 0x46e   : > { %11343 = vmatprep.mubr.msk.f32.mxu1 %vm3650_vm1, %v14517_v17 }
 0x46f   : > { %v14655_v55 = vpop.f32.mrb[58].mxu0 }
 0x470   : > { %v14657_v28 = vpop.f32.mrb[59].mxu0 }
 0x471   : > { %11344 = vmatmul.mubr.msk.f32.gmra.mrb[14].mxu1 %vm3650_vm1, %v14521_v4 }
 0x472   : > { %11346 = vmatprep.mubr.msk.f32.mxu1 %vm3650_vm1, %v5839_v42 }
 0x473   : > { %v14662_v31 = vpop.f32.mrb[60].mxu0 }
 0x474   : > { %v14664_v13 = vpop.f32.mrb[61].mxu0 }
 0x475   : > { %11347 = vmatmul.mubr.msk.f32.gmra.mrb[16].mxu1 %vm3650_vm1, %v5840_v11 }
 0x477   : > { %v14667_v43 = vpop.f32.mrb[62].mxu0 }
 0x478   : > { %v14669_v20 = vpop.f32.mrb[63].mxu0 }
 0x47b   : > { %v14671_v26 = vpop.f32.mrb[64].mxu0 }
 0x47c   : > { %v14673_v53 = vpop.f32.mrb[65].mxu0 }
 0x47f   : > { %v14675_v48 = vpop.f32.mrb[66].mxu0 }
 0x480   : > { %v14677_v9 = vpop.f32.mrb[67].mxu0 }
 0x483   : > { %v11093_v51 = vpop.f32.mrb[48].mxu0 }
 0x484   : > { %v4350_v33 = vpop.f32.mrb[49].mxu0 }
 0x524   : > { %v11321_v36 = vpop.f32.mrb[18].mxu1 }
 0x525   : > { %v11941_v34 = vadd.f32 %v11321_v36, %v11093_v51  ;;  %v5972_v40 = vpop.f32.mrb[19].mxu1 }
 0x526   : > { %v11942_v61 = vadd.f32 %v5972_v40, %v4350_v33 }
 0x527   : > { %v14685_v59 = vadd.f32 %v11941_v34, %v14682_v58 }
 0x528   : > { %v14688_v38 = vadd.f32 %v11942_v61, %v14682_v58  ;;  %v11324_v2 = vpop.f32.mrb[0].mxu1 }
 0x529   : > { %v9677_v1 = vmul.f32 -1.442695, %v14685_v59  ;;  %v11943_v21 = vadd.f32 %v11324_v2, %v11058_v47  ;;  %v5982_v3 = vpop.f32.mrb[1].mxu1  ;;  %vm6119_vm15 = vcmp.gt.f32.partialorder %v14685_v59, 0.0 }
 0x52a   : > { %v9676_v5 = vmul.f32 -1.442695, %v14688_v38  ;;  %v11944_v15 = vadd.f32 %v5982_v3, %v4110_v7  ;;  %vm6118_vm1 = vcmp.gt.f32.partialorder %v14688_v38, 0.0 }
 0x52b   : > { %12500 = vpow2.f32 %v9677_v1  ;;  %v14693_v46 = vadd.f32 %v11943_v21, %v14682_v58 }
 0x52c   : > { %12502 = vpow2.f32 %v9676_v5  ;;  %v14696_v60 = vadd.f32 %v11944_v15, %v14682_v58  ;;  %v11327_v63 = vpop.f32.mrb[2].mxu1 }
 0x52d   : > { %v9679_v35 = vmul.f32 -1.442695, %v14693_v46  ;;  %v11945_v12 = vadd.f32 %v11327_v63, %v11061_v41  ;;  %v5992_v52 = vpop.f32.mrb[3].mxu1  ;;  %vm6121_vm11 = vcmp.gt.f32.partialorder %v14693_v46, 0.0 }
 0x52e   : > { %v9678_v44 = vmul.f32 -1.442695, %v14696_v60  ;;  %v11946_v49 = vadd.f32 %v5992_v52, %v4120_v54  ;;  %vm6120_vm12 = vcmp.gt.f32.partialorder %v14696_v60, 0.0 }
 0x52f   : > { %12504 = vpow2.f32 %v9679_v35  ;;  %v14701_v62 = vadd.f32 %v11945_v12, %v14682_v58 }
 0x530   : > { %12506 = vpow2.f32 %v9678_v44  ;;  %v14704_v0 = vadd.f32 %v11946_v49, %v14682_v58  ;;  %v11330_v14 = vpop.f32.mrb[4].mxu1 }
 0x531   : > { %v9681_v19 = vmul.f32 -1.442695, %v14701_v62  ;;  %v11947_v17 = vadd.f32 %v11330_v14, %v11064_v23  ;;  %v6002_v4 = vpop.f32.mrb[5].mxu1  ;;  %vm6123_vm13 = vcmp.gt.f32.partialorder %v14701_v62, 0.0 }
 0x532   : > { %v9680_v27 = vmul.f32 -1.442695, %v14704_v0  ;;  %v11948_v56 = vadd.f32 %v6002_v4, %v4130_v6  ;;  %vm6122_vm14 = vcmp.gt.f32.partialorder %v14704_v0, 0.0 }
 0x533   : > { %12508 = vpow2.f32 %v9681_v19  ;;  %v14709_v30 = vadd.f32 %v11947_v17, %v14682_v58 }
 0x534   : > { %12510 = vpow2.f32 %v9680_v27  ;;  %v14712_v29 = vadd.f32 %v11948_v56, %v14682_v58  ;;  %v11333_v32 = vpop.f32.mrb[6].mxu1 }
 0x535   : > { %v12501_v10 = vpop.eup %12500  ;;  %v9683_v22 = vmul.f32 -1.442695, %v14709_v30  ;;  %v11949_v45 = vadd.f32 %v11333_v32, %v11067_v24  ;;  %v6012_v25 = vpop.f32.mrb[7].mxu1  ;;  %vm6125_vm0 = vcmp.gt.f32.partialorder %v14709_v30, 0.0 }
 0x536   : > { %v12503_v37 = vpop.eup %12502  ;;  %v6239_v16 = vadd.f32 1.0, %v12501_v10  ;;  %v9682_v8 = vmul.f32 -1.442695, %v14712_v29  ;;  %v11950_v18 = vadd.f32 %v6012_v25, %v14649_v39  ;;  %vm6124_vm2 = vcmp.gt.f32.partialorder %v14712_v29, 0.0 }
 0x537   : > { %v6238_v47 = vadd.f32 1.0, %v12503_v37  ;;  %12512 = vpow2.f32 %v9683_v22  ;;  %v14718_v7 = vadd.f32 %v11949_v45, %v14682_v58 }
 0x538   : > { %12514 = vrcp.f32 %v6239_v16  ;;  %v14721_v41 = vadd.f32 %v11950_v18, %v14682_v58  ;;  %v11336_v54 = vpop.f32.mrb[8].mxu1 }
 0x539   : > { %v12505_v23 = vpop.eup %12504  ;;  %12516 = vrcp.f32 %v6238_v47  ;;  %v9685_v6 = vmul.f32 -1.442695, %v14718_v7  ;;  %v11951_v24 = vadd.f32 %v11336_v54, %v14655_v55  ;;  %v6022_v42 = vpop.f32.mrb[9].mxu1  ;;  %vm6127_vm3 = vcmp.gt.f32.partialorder %v14718_v7, 0.0 }
 0x53a   : > { %v12507_v11 = vpop.eup %12506  ;;  %v6241_v51 = vadd.f32 1.0, %v12505_v23  ;;  %12518 = vpow2.f32 %v9682_v8  ;;  %v9684_v39 = vmul.f32 -1.442695, %v14721_v41  ;;  %v11952_v33 = vadd.f32 %v6022_v42, %v14657_v28 }
 0x53b   : > { %v6240_v36 = vadd.f32 1.0, %v12507_v11  ;;  %12520 = vpow2.f32 %v9685_v6  ;;  %v14728_v34 = vadd.f32 %v11951_v24, %v14682_v58  ;;  %vm6126_vm5 = vcmp.gt.f32.partialorder %v14721_v41, 0.0 }
 0x53c   : > { %12522 = vrcp.f32 %v6241_v51  ;;  %v14731_v40 = vadd.f32 %v11952_v33, %v14682_v58  ;;  %v11339_v61 = vpop.f32.mrb[10].mxu1 }
 0x53d   : > { %v12509_v2 = vpop.eup %12508  ;;  %12524 = vrcp.f32 %v6240_v36  ;;  %v9687_v55 = vmul.f32 -1.442695, %v14728_v34  ;;  %v11953_v1 = vadd.f32 %v11339_v61, %v14662_v31  ;;  %v6032_v21 = vpop.f32.mrb[11].mxu1  ;;  %vm6129_vm6 = vcmp.gt.f32.partialorder %v14728_v34, 0.0 }
 0x53e   : > { %v12511_v3 = vpop.eup %12510  ;;  %v6243_v5 = vadd.f32 1.0, %v12509_v2  ;;  %12526 = vpow2.f32 %v9684_v39  ;;  %v9686_v28 = vmul.f32 -1.442695, %v14731_v40  ;;  %v11954_v15 = vadd.f32 %v6032_v21, %v14664_v13 }
 0x53f   : > { %v6242_v63 = vadd.f32 1.0, %v12511_v3  ;;  %12528 = vpow2.f32 %v9687_v55  ;;  %v14738_v35 = vadd.f32 %v11953_v1, %v14682_v58  ;;  %vm6128_vm7 = vcmp.gt.f32.partialorder %v14731_v40, 0.0 }
 0x540   : > { %12530 = vrcp.f32 %v6243_v5  ;;  %v14741_v12 = vadd.f32 %v11954_v15, %v14682_v58  ;;  %v11342_v52 = vpop.f32.mrb[12].mxu1 }
 0x541   : > { %v12513_v44 = vpop.eup %12512  ;;  %12532 = vrcp.f32 %v6242_v63  ;;  %v9689_v31 = vmul.f32 -1.442695, %v14738_v35  ;;  %v11955_v49 = vadd.f32 %v11342_v52, %v14667_v43  ;;  %v6042_v14 = vpop.f32.mrb[13].mxu1  ;;  %vm6131_vm8 = vcmp.gt.f32.partialorder %v14738_v35, 0.0 }
 0x542   : > { %v12515_v19 = vpop.eup %12514  ;;  %v6245_v17 = vadd.f32 1.0, %v12513_v44  ;;  %12534 = vpow2.f32 %v9686_v28  ;;  %v9688_v13 = vmul.f32 -1.442695, %v14741_v12  ;;  %v11956_v4 = vadd.f32 %v6042_v14, %v14669_v20 }
 0x543   : > { %v12517_v27 = vpop.eup %12516  ;;  %12536 = vpow2.f32 %v9689_v31  ;;  %v14748_v56 = vadd.f32 %v11955_v49, %v14682_v58  ;;  %6320 = vrot.lane.b32.xlu1 %v12515_v19, %s12756_s17  ;;  %vm6130_vm9 = vcmp.gt.f32.partialorder %v14741_v12, 0.0 }
 0x544   : > { %v12519_v32 = vpop.eup %12518  ;;  %12538 = vrcp.f32 %v6245_v17  ;;  %v14752_v43 = vadd.f32 %v11956_v4, %v14682_v58  ;;  %6318 = vrot.lane.b32.xlu0 %v12517_v27, %s12756_s17  ;;  %v11345_v10 = vpop.f32.mrb[14].mxu1  ;;  %v9698_v4 = vld [vmem:[%s15877_s7 + $0x48] sm:$0xff] }
 0x545   : > { %v12521_v22 = vpop.eup %12520  ;;  %v6244_v45 = vadd.f32 1.0, %v12519_v32  ;;  %12540 = vpow2.f32 %v9688_v13  ;;  %v9691_v20 = vmul.f32 -1.442695, %v14748_v56  ;;  %v11957_v25 = vadd.f32 %v11345_v10, %v14671_v26  ;;  %v6052_v37 = vpop.f32.mrb[15].mxu1  ;;  %v9697_v13 = vld [vmem:[%s15877_s7 + $0x40] sm:$0xff] }
 0x546   : > { %v12523_v16 = vpop.eup %12522  ;;  %v6247_v8 = vadd.f32 1.0, %v12521_v22  ;;  %v9690_v18 = vmul.f32 -1.442695, %v14752_v43  ;;  %v11958_v47 = vadd.f32 %v6052_v37, %v14673_v53  ;;  %v11793_v32 = vpack.c.bf16 %v9698_v4, %v9697_v13 }
 0x547   : > { %v12525_v54 = vpop.eup %12524  ;;  %12542 = vrcp.f32 %v6244_v45  ;;  %v14760_v23 = vadd.f32 %v11957_v25, %v14682_v58  ;;  %6324 = vrot.lane.b32.xlu1 %v12523_v16, %s12756_s17  ;;  %v9699_v45 = vld [vmem:[%s15877_s7 + $0x50] sm:$0xff]  ;;  %v6139_v37 = vmul.f32 0.2, %v14685_v59  ;;  %v6138_v16 = vmul.f32 0.2, %v14688_v38 }
 0x548   : > { %v12527_v6 = vpop.eup %12526  ;;  %12544 = vrcp.f32 %v6247_v8  ;;  %v14764_v24 = vadd.f32 %v11958_v47, %v14682_v58  ;;  %6322 = vrot.lane.b32.xlu0 %v12525_v54, %s12756_s17  ;;  %v11348_v26 = vpop.f32.mrb[16].mxu1  ;;  %11794 = vmatprep.subr.bf16.mxu1 %v11793_v32  ;;  %v9701_v8 = vld [vmem:[%s15877_s7 + $0x60] sm:$0xff]  ;;  %v6141_v54 = vmul.f32 0.2, %v14693_v46 }
 0x549   : > { %v12529_v42 = vpop.eup %12528  ;;  %v6246_v11 = vadd.f32 1.0, %v12527_v6  ;;  %12546 = vpow2.f32 %v9691_v20  ;;  %v11959_v53 = vadd.f32 %v11348_v26, %v14675_v48  ;;  %v6062_v51 = vpop.f32.mrb[17].mxu1  ;;  %11796 = vmatpush3.bf16.msra.mxu1 %v11793_v32  ;;  %v9700_v20 = vld [vmem:[%s15877_s7 + $0x58] sm:$0xff]  ;;  %v6159_v26 = vsel %vm6119_vm15, %v14685_v59, %v6139_v37 }
 0x54a   : > { %v12531_v39 = vpop.eup %12530  ;;  %v6249_v33 = vadd.f32 1.0, %v12529_v42  ;;  %12548 = vpow2.f32 %v9690_v18  ;;  %v11960_v36 = vadd.f32 %v6062_v51, %v14677_v9  ;;  %v11797_v25 = vpack.c.bf16 %v9700_v20, %v9699_v45  ;;  %v9702_v18 = vld [vmem:[%s15877_s7 + $0x68] sm:$0xff]  ;;  %v9704_v51 = vld [vmem:[%s15877_s7 + $0x78] sm:$0xff] }
 0x54b   : > { %v12533_v61 = vpop.eup %12532  ;;  %12550 = vrcp.f32 %v6246_v11  ;;  %v14770_v2 = vadd.f32 %v11959_v53, %v14682_v58  ;;  %6328 = vrot.lane.b32.xlu1 %v12531_v39, %s12756_s17  ;;  %v11801_v47 = vpack.c.bf16 %v9702_v18, %v9701_v8  ;;  %v6158_v42 = vsel %vm6118_vm1, %v14688_v38, %v6138_v16  ;;  %v9703_v53 = vld [vmem:[%s15877_s7 + $0x70] sm:$0xff] }
 0x54c   : > { %v12535_v55 = vpop.eup %12534  ;;  %12552 = vrcp.f32 %v6249_v33  ;;  %v14774_v1 = vadd.f32 %v11960_v36, %v14682_v58  ;;  %6326 = vrot.lane.b32.xlu0 %v12533_v61, %s12756_s17  ;;  %11798 = vmatprep.subr.bf16.mxu1 %v11797_v25  ;;  %v6140_v11 = vmul.f32 0.2, %v14696_v60  ;;  %v15972_v39 = vmov 0.0  }
 0x54d   : > { %v12537_v48 = vpop.eup %12536  ;;  %v6248_v21 = vadd.f32 1.0, %v12535_v55  ;;  %11800 = vmatpush3.bf16.msra.mxu1 %v11797_v25  ;;  %6581 = vst.msk [vmem:[#allocation3] sm:$0x1] %vm6580_vm10, %v15972_v39  ;;  %6582 = vst.msk [vmem:[#allocation3 + $0x18] sm:$0x1] %vm6580_vm10, %v15972_v39  ;;  %v11805_v33 = vpack.c.bf16 %v9704_v51, %v9703_v53  ;;  %v6161_v55 = vsel %vm6121_vm11, %v14693_v46, %v6141_v54  ;;  %vm6133_vm15 = vcmp.gt.f32.partialorder %v14748_v56, 0.0 }
 0x54e   : > { %v12539_v3 = vpop.eup %12538  ;;  %v6251_v5 = vadd.f32 1.0, %v12537_v48  ;;  %11802 = vmatprep.subr.bf16.mxu1 %v11801_v47  ;;  %6583 = vst.msk [vmem:[#allocation3 + $0x30] sm:$0x1] %vm6580_vm10, %v15972_v39  ;;  %6584 = vst.msk [vmem:[#allocation3 + $0x48] sm:$0x1] %vm6580_vm10, %v15972_v39  ;;  %v6160_v48 = vsel %vm6120_vm12, %v14696_v60, %v6140_v11  ;;  %vm6132_vm1 = vcmp.gt.f32.partialorder %v14752_v43, 0.0 }
 0x54f   : > { %v12541_v28 = vpop.eup %12540  ;;  %12554 = vrcp.f32 %v6248_v21  ;;  %6332 = vrot.lane.b32.xlu1 %v12539_v3, %s12756_s17  ;;  %6585 = vst.msk [vmem:[#allocation3 + $0x60] sm:$0x1] %vm6580_vm10, %v15972_v39  ;;  %6586 = vst.msk [vmem:[#allocation3 + $0x78] sm:$0x1] %vm6580_vm10, %v15972_v39  ;;  %v6143_v21 = vmul.f32 0.2, %v14701_v62 }
 0x550   : > { %12556 = vrcp.f32 %v6251_v5  ;;  %v6250_v9 = vadd.f32 1.0, %v12541_v28  ;;  %6587 = vst.msk [vmem:[#allocation3 + $0x90] sm:$0x1] %vm6580_vm10, %v15972_v39  ;;  %6588 = vst.msk [vmem:[#allocation3 + $0xa8] sm:$0x1] %vm6580_vm10, %v15972_v39 }
 0x551   : > { %v12543_v15 = vpop.eup %12542  ;;  %11804 = vmatpush3.bf16.msra.mxu1 %v11801_v47  ;;  %6589 = vst.msk [vmem:[#allocation3 + $0xc0] sm:$0x1] %vm6580_vm10, %v15972_v39  ;;  %6590 = vst.msk [vmem:[#allocation3 + $0xd8] sm:$0x1] %vm6580_vm10, %v15972_v39  ;;  %v9693_v3 = vmul.f32 -1.442695, %v14760_v23  ;;  %v6163_v60 = vsel %vm6123_vm13, %v14701_v62, %v6143_v21 }
 0x552   : > { %v12545_v63 = vpop.eup %12544  ;;  %12558 = vrcp.f32 %v6250_v9  ;;  %6330 = vrot.lane.b32.xlu0 %v12543_v15, %s12756_s17  ;;  %6591 = vst.msk [vmem:[#allocation3 + $0x11] sm:$0x1] %vm6580_vm10, %v15972_v39  ;;  %6592 = vst.msk [vmem:[#allocation3 + $0x29] sm:$0x1] %vm6580_vm10, %v15972_v39  ;;  %11806 = vmatprep.subr.bf16.mxu1 %v11805_v33  ;;  %v6142_v9 = vmul.f32 0.2, %v14704_v0 }
 0x553   : > { %v12547_v52 = vpop.eup %12546  ;;  %6336 = vrot.lane.b32.xlu1 %v12545_v63, %s12756_s17  ;;  %6593 = vst.msk [vmem:[#allocation3 + $0x41] sm:$0x1] %vm6580_vm10, %v15972_v39  ;;  %6594 = vst.msk [vmem:[#allocation3 + $0x59] sm:$0x1] %vm6580_vm10, %v15972_v39  ;;  %v9692_v15 = vmul.f32 -1.442695, %v14764_v24 }
 0x554   : > { %v12549_v58 = vpop.eup %12548  ;;  %v6253_v44 = vadd.f32 1.0, %v12547_v52  ;;  %6595 = vst.msk [vmem:[#allocation3 + $0x71] sm:$0x1] %vm6580_vm10, %v15972_v39  ;;  %6596 = vst.msk [vmem:[#allocation3 + $0x89] sm:$0x1] %vm6580_vm10, %v15972_v39  ;;  %vm6559_vm13 = vcmask 523264  }
 0x555   : > { %v12551_v31 = vpop.eup %12550  ;;  %v6252_v49 = vadd.f32 1.0, %v12549_v58  ;;  %6597 = vst.msk [vmem:[#allocation3 + $0xa1] sm:$0x1] %vm6580_vm10, %v15972_v39  ;;  %6598 = vst.msk [vmem:[#allocation3 + $0xb9] sm:$0x1] %vm6580_vm10, %v15972_v39  ;;  %11808 = vmatpush3.bf16.msra.mxu1 %v11805_v33 }
 0x556   : > { %v12553_v14 = vpop.eup %12552  ;;  %12560 = vrcp.f32 %v6253_v44  ;;  %6334 = vrot.lane.b32.xlu0 %v12551_v31, %s12756_s17  ;;  %6599 = vst.msk [vmem:[#allocation3 + $0xd1] sm:$0x1] %vm6580_vm10, %v15972_v39  ;;  %6600 = vst.msk [vmem:[#allocation3 + $0xe9] sm:$0x1] %vm6580_vm10, %v15972_v39  ;;  %v6145_v52 = vmul.f32 0.2, %v14709_v30  ;;  %v6162_v31 = vsel %vm6122_vm14, %v14704_v0, %v6142_v9 }
 0x557   : > { %12562 = vrcp.f32 %v6252_v49  ;;  %6340 = vrot.lane.b32.xlu1 %v12553_v14, %s12756_s17  ;;  %v6144_v14 = vmul.f32 0.2, %v14712_v29  ;;  %v6148_v37 = vmul.f32 0.2, %v14731_v40  ;;  %v6151_v47 = vmul.f32 0.2, %v14738_v35 }
 0x558   : > { %12564 = vpow2.f32 %v9693_v3  ;;  %v6165_v62 = vsel %vm6125_vm0, %v14709_v30, %v6145_v52  ;;  %v6150_v53 = vmul.f32 0.2, %v14741_v12 }
 0x559   : > { %v12555_v19 = vpop.eup %12554  ;;  %12566 = vpow2.f32 %v9692_v15  ;;  %v6164_v4 = vsel %vm6124_vm2, %v14712_v29, %v6144_v14  ;;  %v6168_v11 = vsel %vm6128_vm7, %v14731_v40, %v6148_v37  ;;  %v6153_v40 = vmul.f32 0.2, %v14748_v56 }
 0x55a   : > { %v12557_v17 = vpop.eup %12556  ;;  %6338 = vrot.lane.b32.xlu0 %v12555_v19, %s12756_s17 }
 0x55b   : > { %6344 = vrot.lane.b32.xlu1 %v12557_v17, %s12756_s17  ;;  %v6147_v17 = vmul.f32 0.2, %v14718_v7  ;;  %v6173_v21 = vsel %vm6133_vm15, %v14748_v56, %v6153_v40  ;;  %v14930_v56 = vstv %s9696_s20  ;;  %s9929_s20 = sshll.u32 %s12736_s12, 4 }
 0x55c   : > { %v12559_v27 = vpop.eup %12558  ;;  %vm6509_vm10 = vcmp.ge.s32.totalorder %v14930_v56, 0  ;;  %vm6519_vm11 = vcmp.lt.s32.totalorder %v14930_v56, 16  ;;  %v6502_v14 = vadd.s32 3, %v14930_v56  ;;  %s8969_s12 = sadd.s32 %s9929_s20, %s9925_s18  ;;  %s12759_s20 = smov [#allocation4]  }
 0x55d   : > { %v6167_v30 = vsel %vm6127_vm3, %v14718_v7, %v6147_v17  ;;  %vm6529_vm12 = vmand %vm6509_vm10, %vm6519_vm11  ;;  %s9926_s13 = sshll.u32 %s8969_s12, 7  ;;  %s12662_s18 = sshll.u32 %s12759_s20, 4  ;;  %s12663_s18 = int_to_ptr.vmem [resolvable:$false] %s12662_s18 }
 0x55e   : > { %6342 = vrot.lane.b32.xlu0 %v12559_v27, %s12756_s17  ;;  %v6146_v27 = vmul.f32 0.2, %v14721_v41  ;;  %vm6512_vm7 = vcmp.ge.s32.totalorder %v6502_v14, 0  ;;  %s15807_s25 = scalar_lea.hbm %s15879_s9, %s9926_s13  ;;  %s12664_s12 = scalar_lea.vmem %s12663_s18, 4096 }
 0x560   : > { %v12561_v10 = vpop.eup %12560  ;;  %v6166_v29 = vsel %vm6126_vm5, %v14721_v41, %v6146_v27  ;;  %v6617_v41 = vld [vmem:[%s15877_s7] sm:$0xff] }
 0x561   : > { %v12563_v22 = vpop.eup %12562  ;;  %6348 = vrot.lane.b32.xlu1 %v12561_v10, %s12756_s17 }
 0x562   : > { %6346 = vrot.lane.b32.xlu0 %v12563_v22, %s12756_s17  ;;  %v6149_v22 = vmul.f32 0.2, %v14728_v34  ;;  %v12565_v20 = vpop.eup %12564 }
 0x563   : > { %v12567_v16 = vpop.eup %12566 }
 0x564   : > { %v6169_v18 = vsel %vm6129_vm6, %v14728_v34, %v6149_v22  ;;  %v9695_v22 = vmul.f32 -1.442695, %v14770_v2 }
 0x5b5   : > { %v6321_v6 = vpop.permute.xlu1 %6320 }
 0x5b6   : > { %v6379_v59 = vmul.f32 %v6321_v6, %v6159_v26  ;;  %v6319_v38 = vpop.permute.xlu0 %6318  ;;  %v6255_v6 = vadd.f32 1.0, %v12565_v20  ;;  %v6618_v26 = vld [vmem:[%s15877_s7 + $0x8] sm:$0xff] }
 0x5b7   : > { %v6378_v36 = vmul.f32 %v6319_v38, %v6158_v42  ;;  %v6254_v42 = vadd.f32 1.0, %v12567_v16  ;;  %v14909_v51 = vpack.c.bf16 %v6618_v26, %v6617_v41  ;;  %v6171_v38 = vsel %vm6131_vm8, %v14738_v35, %v6151_v47  ;;  %v15978_v16 = vld [vmem:[#allocation9_spill] sm:$0xff] }
 0x5b8   : > { %6420 = vrot.lane.b32.xlu1 %v6379_v59, %s12757_s21  ;;  %12568 = vrcp.f32 %v6255_v6  ;;  %v6152_v35 = vmul.f32 0.2, %v14752_v43  ;;  %vm6522_vm8 = vcmp.lt.s32.totalorder %v6502_v14, 16  ;;  %v6504_v26 = vadd.s32 5, %v14930_v56  ;;  %v15989_v14 = vld [vmem:[#allocation18_spill] sm:$0xff] }
 0x5b9   : > { %v6325_v61 = vpop.permute.xlu1 %6324  ;;  %6418 = vrot.lane.b32.xlu0 %v6378_v36, %s12757_s21  ;;  %11810 = vmatprep.subr.bf16.mxu1 %v14909_v51  ;;  %12570 = vrcp.f32 %v6254_v42  ;;  %v6621_v42 = vld [vmem:[%s15877_s7 + $0x20] sm:$0xff] }
 0x5ba   : > { %v6381_v5 = vmul.f32 %v6325_v61, %v6161_v55  ;;  %v6323_v28 = vpop.permute.xlu0 %6322  ;;  %v6170_v61 = vsel %vm6130_vm9, %v14741_v12, %v6150_v53  ;;  %vm14971_vm9 = vmand %vm6512_vm7, %vm6522_vm8  ;;  %12572 = vpow2.f32 %v9695_v22  ;;  %vm6514_vm11 = vcmp.ge.s32.totalorder %v6504_v26, 0  ;;  %v15993_v22 = vld [vmem:[#allocation20_spill] sm:$0xff] }
 0x5bb   : > { %v6380_v63 = vmul.f32 %v6323_v28, %v6160_v48  ;;  %v6172_v28 = vsel %vm6132_vm1, %v14752_v43, %v6152_v35  ;;  %v6500_v43 = vadd.s32 1, %v14930_v56  ;;  %vm6135_vm8 = vcmp.gt.f32.partialorder %v14760_v23, 0.0 }
 0x5bc   : > { %6424 = vrot.lane.b32.xlu1 %v6381_v5, %s12757_s21 }
 0x5bd   : > { %v6329_v46 = vpop.permute.xlu1 %6328  ;;  %6422 = vrot.lane.b32.xlu0 %v6380_v63, %s12757_s21  ;;  %vm6510_vm14 = vcmp.ge.s32.totalorder %v6500_v43, 0  ;;  %vm6520_vm0 = vcmp.lt.s32.totalorder %v6500_v43, 16 }
 0x5be   : > { %v6383_v58 = vmul.f32 %v6329_v46, %v6163_v60  ;;  %v6327_v44 = vpop.permute.xlu0 %6326  ;;  %v6501_v46 = vadd.s32 2, %v14930_v56  ;;  %vm6530_vm2 = vmand %vm6510_vm14, %vm6520_vm0 }
 0x5bf   : > { %v6382_v49 = vmul.f32 %v6327_v44, %v6162_v31 }
 0x5c0   : > { %6428 = vrot.lane.b32.xlu1 %v6383_v58, %s12757_s21  ;;  %vm6511_vm3 = vcmp.ge.s32.totalorder %v6501_v46, 0  ;;  %vm6521_vm5 = vcmp.lt.s32.totalorder %v6501_v46, 16  ;;  %v15988_v46 = vld [vmem:[#allocation15_spill] sm:$0xff] }
 0x5c1   : > { %v6333_v19 = vpop.permute.xlu1 %6332  ;;  %6426 = vrot.lane.b32.xlu0 %v6382_v49, %s12757_s21  ;;  %vm14948_vm6 = vmand %vm6511_vm3, %vm6521_vm5 }
 0x5c2   : > { %v6385_v13 = vmul.f32 %v6333_v19, %v6165_v62  ;;  %v12569_v9 = vpop.eup %12568  ;;  %v15973_v19 = vld [vmem:[#allocation11_spill] sm:$0xff] }
 0x5c3   : > { %v12571_v15 = vpop.eup %12570 }
 0x5c4   : > { %v6331_v0 = vpop.permute.xlu0 %6330  ;;  %6432 = vrot.lane.b32.xlu1 %v6385_v13, %s12757_s21  ;;  %v15974_v13 = vld [vmem:[#allocation13_spill] sm:$0xff] }
 0x5c5   : > { %v6384_v32 = vmul.f32 %v6331_v0, %v6164_v4  ;;  %v6337_v10 = vpop.permute.xlu1 %6336 }
 0x5c6   : > { %v6387_v45 = vmul.f32 %v6337_v10, %v6167_v30  ;;  %v6619_v10 = vld [vmem:[%s15877_s7 + $0x10] sm:$0xff]  ;;  %v6620_v30 = vld [vmem:[%s15877_s7 + $0x18] sm:$0xff] }
 0x5c7   : > { %6430 = vrot.lane.b32.xlu0 %v6384_v32, %s12757_s21  ;;  %v6503_v32 = vadd.s32 4, %v14930_v56 }
 0x5c8   : > { %v6335_v25 = vpop.permute.xlu0 %6334  ;;  %6436 = vrot.lane.b32.xlu1 %v6387_v45, %s12757_s21  ;;  %v15977_v45 = vld [vmem:[#allocation10_spill] sm:$0xff] }
 0x5c9   : > { %v6386_v8 = vmul.f32 %v6335_v25, %v6166_v29  ;;  %v6341_v7 = vpop.permute.xlu1 %6340  ;;  %v9694_v29 = vmul.f32 -1.442695, %v14774_v1  ;;  %vm6513_vm15 = vcmp.ge.s32.totalorder %v6503_v32, 0  ;;  %vm6523_vm1 = vcmp.lt.s32.totalorder %v6503_v32, 16 }
 0x5ca   : > { %v6389_v54 = vmul.f32 %v6341_v7, %v6169_v18  ;;  %vm14991_vm10 = vmand %vm6513_vm15, %vm6523_vm1 }
 0x5cb   : > { %6434 = vrot.lane.b32.xlu0 %v6386_v8, %s12757_s21  ;;  %12574 = vpow2.f32 %v9694_v29 }
 0x5cc   : > { %v6339_v34 = vpop.permute.xlu0 %6338  ;;  %6440 = vrot.lane.b32.xlu1 %v6389_v54, %s12757_s21  ;;  %v11813_v54 = vpack.c.bf16 %v6620_v30, %v6619_v10 }
 0x5cd   : > { %v6388_v39 = vmul.f32 %v6339_v34, %v6168_v11  ;;  %v6345_v59 = vpop.permute.xlu1 %6344  ;;  %v6622_v34 = vld [vmem:[%s15877_s7 + $0x28] sm:$0xff]  ;;  %v15981_v11 = vld [vmem:[#allocation14_spill] sm:$0xff] }
 0x5ce   : > { %v6391_v33 = vmul.f32 %v6345_v59, %v6171_v38  ;;  %v11817_v40 = vpack.c.bf16 %v6622_v34, %v6621_v42  ;;  %v6155_v42 = vmul.f32 0.2, %v14760_v23  ;;  %v15997_v34 = vld [vmem:[#allocation22_spill] sm:$0xff]  ;;  %v15998_v38 = vld [vmem:[#allocation21_spill] sm:$0xff] }
 0x5cf   : > { %6438 = vrot.lane.b32.xlu0 %v6388_v39, %s12757_s21 }
 0x5d0   : > { %v6343_v36 = vpop.permute.xlu0 %6342  ;;  %6444 = vrot.lane.b32.xlu1 %v6391_v33, %s12757_s21 }
 0x5d1   : > { %v6390_v55 = vmul.f32 %v6343_v36, %v6170_v61  ;;  %v15984_v36 = vld [vmem:[#allocation12_spill] sm:$0xff] }
 0x5d3   : > { %v6349_v48 = vpop.permute.xlu1 %6348  ;;  %6442 = vrot.lane.b32.xlu0 %v6390_v55, %s12757_s21 }
 0x5d4   : > { %v6393_v3 = vmul.f32 %v6349_v48, %v6173_v21  ;;  %v6347_v5 = vpop.permute.xlu0 %6346  ;;  %v6623_v48 = vld [vmem:[%s15877_s7 + $0x30] sm:$0xff]  ;;  %v6624_v21 = vld [vmem:[%s15877_s7 + $0x38] sm:$0xff] }
 0x5d5   : > { %v6392_v12 = vmul.f32 %v6347_v5, %v6172_v28  ;;  %v15985_v5 = vld [vmem:[#allocation16_spill] sm:$0xff] }
 0x5d6   : > { %6448 = vrot.lane.b32.xlu1 %v6393_v3, %s12757_s21 }
 0x5d7   : > { %6446 = vrot.lane.b32.xlu0 %v6392_v12, %s12757_s21 }
 0x5da   : > { %6352 = vrot.lane.b32.xlu1 %v12569_v9, %s12756_s17 }
 0x5db   : > { %6350 = vrot.lane.b32.xlu0 %v12571_v15, %s12756_s17 }
 0x62a   : > { %v6421_v63 = vpop.permute.xlu1 %6420 }
 0x62b   : > { %v6479_v60 = vsel %vm3222_vm4, %v13626_v57, %v6421_v63  ;;  %v6419_v52 = vpop.permute.xlu0 %6418  ;;  %v11821_v63 = vpack.c.bf16 %v6624_v21, %v6623_v48 }
 0x62c   : > { %v6540_v58 = vsel %vm6529_vm12, %v6479_v60, 0.0  ;;  %v6478_v44 = vsel %vm3222_vm4, %v13620_v50, %v6419_v52 }
 0x62d   : > { %6561 = vst.msk [vmem:[#allocation3 + $0x9] sm:$0xff] %vm6559_vm13, %v6540_v58  ;;  %v6539_v31 = vsel %vm6529_vm12, %v6478_v44, 0.0  ;;  %vm6524_vm12 = vcmp.lt.s32.totalorder %v6504_v26, 16  ;;  %v9737_v44 = vld [vmem:[%s15877_s7 + $0x80] sm:$0xff] }
 0x62e   : > { %6560 = vst.msk [vmem:[#allocation3 + $0x1] sm:$0xff] %vm6559_vm13, %v6539_v31  ;;  %v6425_v49 = vpop.permute.xlu1 %6424  ;;  %vm15020_vm14 = vmand %vm6514_vm11, %vm6524_vm12  ;;  %v9738_v31 = vld [vmem:[%s15877_s7 + $0x88] sm:$0xff]  ;;  %vm6137_vm11 = vcmp.gt.f32.partialorder %v14770_v2, 0.0  ;;  %vm6136_vm12 = vcmp.gt.f32.partialorder %v14774_v1, 0.0 }
 0x62f   : > { %v6481_v62 = vsel %vm3222_vm4, %v15973_v19, %v6425_v49  ;;  %v6423_v57 = vpop.permute.xlu0 %6422 }
 0x630   : > { %v6542_v17 = vsel %vm6530_vm2, %v6481_v62, 0.0  ;;  %v6480_v0 = vsel %vm3222_vm4, %v15974_v13, %v6423_v57  ;;  %v6506_v57 = vadd.s32 7, %v14930_v56 }
 0x631   : > { %6563 = vst.msk [vmem:[#allocation3 + $0x21] sm:$0xff] %vm6559_vm13, %v6542_v17  ;;  %v6541_v50 = vsel %vm6530_vm2, %v6480_v0, 0.0  ;;  %v12573_v17 = vpop.eup %12572 }
 0x632   : > { %6562 = vst.msk [vmem:[#allocation3 + $0x19] sm:$0xff] %vm6559_vm13, %v6541_v50  ;;  %v6429_v27 = vpop.permute.xlu1 %6428  ;;  %v15053_v50 = vpack.c.bf16 %v9738_v31, %v9737_v44  ;;  %v12575_v4 = vpop.eup %12574  ;;  %vm6516_vm5 = vcmp.ge.s32.totalorder %v6506_v57, 0 }
 0x633   : > { %v6483_v20 = vsel %vm3222_vm4, %v15977_v45, %v6429_v27  ;;  %v6427_v25 = vpop.permute.xlu0 %6426  ;;  %v15992_v27 = vld [vmem:[#allocation17_spill] sm:$0xff] }
 0x634   : > { %v6544_v37 = vsel %vm14948_vm6, %v6483_v20, 0.0  ;;  %v6482_v8 = vsel %vm3222_vm4, %v15978_v16, %v6427_v25  ;;  %v6626_v41 = vld [vmem:[#allocation3 + $0x9] sm:$0xff]  ;;  %v6257_v25 = vadd.f32 1.0, %v12573_v17  ;;  %v6256_v16 = vadd.f32 1.0, %v12575_v4 }
 0x635   : > { %6565 = vst.msk [vmem:[#allocation3 + $0x39] sm:$0xff] %vm6559_vm13, %v6544_v37  ;;  %v6543_v7 = vsel %vm14948_vm6, %v6482_v8, 0.0  ;;  %v6625_v47 = vld [vmem:[#allocation3 + $0x1] sm:$0xff]  ;;  %vm6526_vm6 = vcmp.lt.s32.totalorder %v6506_v57, 16  ;;  %v9743_v17 = vld [vmem:[%s15877_s7 + $0xb0] sm:$0xff] }
 0x636   : > { %6564 = vst.msk [vmem:[#allocation3 + $0x31] sm:$0xff] %vm6559_vm13, %v6543_v7  ;;  %v6433_v6 = vpop.permute.xlu1 %6432  ;;  %11365 = vmatprep.mubr.msk.f32.mxu1 %vm6559_vm13, %v6625_v47  ;;  %v15994_v7 = vld [vmem:[#allocation19_spill] sm:$0xff]  ;;  %vm15078_vm7 = vmand %vm6516_vm5, %vm6526_vm6  ;;  %12576 = vrcp.f32 %v6257_v25  ;;  %v6602_v31 = vld [vmem:[#allocation3 + $0x8] sm:$0xff] }
 0x637   : > { %v6485_v53 = vsel %vm3222_vm4, %v15981_v11, %v6433_v6  ;;  %11366 = vmatmul.mubr.msk.f32.vlgmr.msra.gmra.mrb[20].mxu1 %vm6559_vm13, %v6626_v41  ;;  %12578 = vrcp.f32 %v6256_v16 }
 0x638   : > { %v6546_v39 = vsel %vm14971_vm9, %v6485_v53, 0.0  ;;  %11812 = vmatpush3.bf16.msra.mxu1 %v14909_v51  ;;  %v15001_v55 = vld [vmem:[#allocation3 + $0x21] sm:$0xff]  ;;  %v6505_v51 = vadd.s32 6, %v14930_v56 }
 0x639   : > { %6567 = vst.msk [vmem:[#allocation3 + $0x51] sm:$0xff] %vm6559_vm13, %v6546_v39  ;;  %v6431_v59 = vpop.permute.xlu0 %6430  ;;  %v14995_v33 = vld [vmem:[#allocation3 + $0x19] sm:$0xff]  ;;  %11814 = vmatprep.subr.bf16.mxu1 %v11813_v54  ;;  %v6154_v39 = vmul.f32 0.2, %v14764_v24 }
 0x63a   : > { %v6484_v61 = vsel %vm3222_vm4, %v15984_v36, %v6431_v59  ;;  %v6437_v35 = vpop.permute.xlu1 %6436  ;;  %11368 = vmatprep.mubr.msk.f32.mxu1 %vm6559_vm13, %v14995_v33  ;;  %vm6515_vm0 = vcmp.ge.s32.totalorder %v6505_v51, 0  ;;  %vm6525_vm2 = vcmp.lt.s32.totalorder %v6505_v51, 16  ;;  %v6175_v51 = vsel %vm6135_vm8, %v14760_v23, %v6155_v42  ;;  %v15154_v57 = vld [vmem:[#allocation3 + $0x20] sm:$0xff] }
 0x63b   : > { %v6545_v3 = vsel %vm14971_vm9, %v6484_v61, 0.0  ;;  %v6487_v28 = vsel %vm3222_vm4, %v15985_v5, %v6437_v35  ;;  %11369 = vmatmul.mubr.msk.f32.gmra.mrb[22].mxu1 %vm6559_vm13, %v15001_v55  ;;  %vm15049_vm3 = vmand %vm6515_vm0, %vm6525_vm2  ;;  %vm6134_vm9 = vcmp.gt.f32.partialorder %v14764_v24, 0.0  ;;  %v7036_v42 = vld [vmem:[#allocation3 + $0x2] sm:$0xff] }
 0x63c   : > { %6566 = vst.msk [vmem:[#allocation3 + $0x49] sm:$0xff] %vm6559_vm13, %v6545_v3  ;;  %v6548_v12 = vsel %vm14991_vm10, %v6487_v28, 0.0  ;;  %11816 = vmatpush3.bf16.msra.mxu1 %v11813_v54  ;;  %v15030_v58 = vld [vmem:[#allocation3 + $0x39] sm:$0xff]  ;;  %v6174_v5 = vsel %vm6134_vm9, %v14764_v24, %v6154_v39  ;;  %v9763_v54 = vld [vmem:[%s15877_s7 + $0xd0] sm:$0xff]  ;;  %v9766_v39 = vld [vmem:[%s15877_s7 + $0xe8] sm:$0xff] }
 0x63d   : > { %6569 = vst.msk [vmem:[#allocation3 + $0x69] sm:$0xff] %vm6559_vm13, %v6548_v12  ;;  %v6435_v9 = vpop.permute.xlu0 %6434  ;;  %v15024_v43 = vld [vmem:[#allocation3 + $0x31] sm:$0xff]  ;;  %11818 = vmatprep.subr.bf16.mxu1 %v11817_v40 }
 0x63e   : > { %v6486_v60 = vsel %vm3222_vm4, %v15988_v46, %v6435_v9  ;;  %v6441_v52 = vpop.permute.xlu1 %6440  ;;  %11371 = vmatprep.mubr.msk.f32.mxu1 %vm6559_vm13, %v15024_v43  ;;  %v9739_v46 = vld [vmem:[%s15877_s7 + $0x90] sm:$0xff]  ;;  %v15168_v4 = vld [vmem:[#allocation3 + $0x38] sm:$0xff] }
 0x63f   : > { %v6547_v49 = vsel %vm14991_vm10, %v6486_v60, 0.0  ;;  %v6489_v19 = vsel %vm3222_vm4, %v15989_v14, %v6441_v52  ;;  %11372 = vmatmul.mubr.msk.f32.gmra.mrb[24].mxu1 %vm6559_vm13, %v15030_v58  ;;  %v9740_v60 = vld [vmem:[%s15877_s7 + $0x98] sm:$0xff]  ;;  %v6601_v52 = vld [vmem:[#allocation3] sm:$0xff]  ;;  %v9742_v14 = vld [vmem:[%s15877_s7 + $0xa8] sm:$0xff] }
 0x640   : > { %6568 = vst.msk [vmem:[#allocation3 + $0x61] sm:$0xff] %vm6559_vm13, %v6547_v49  ;;  %v6550_v62 = vsel %vm15020_vm14, %v6489_v19, 0.0  ;;  %11820 = vmatpush3.bf16.msra.mxu1 %v11817_v40  ;;  %v15068_v37 = vld [vmem:[#allocation3 + $0x51] sm:$0xff]  ;;  %v12577_v9 = vpop.eup %12576  ;;  %v11829_v44 = vpack.c.bf16 %v9740_v60, %v9739_v46  ;;  %v9741_v49 = vld [vmem:[%s15877_s7 + $0xa0] sm:$0xff] }
 0x641   : > { %6571 = vst.msk [vmem:[#allocation3 + $0x81] sm:$0xff] %vm6559_vm13, %v6550_v62  ;;  %v6439_v13 = vpop.permute.xlu0 %6438  ;;  %11822 = vmatprep.subr.bf16.mxu1 %v11821_v63  ;;  %v12579_v15 = vpop.eup %12578  ;;  %v15149_v19 = vld [vmem:[#allocation3 + $0x18] sm:$0xff]  ;;  %v11833_v62 = vpack.c.bf16 %v9742_v14, %v9741_v49  ;;  %v15164_v0 = vld [vmem:[#allocation3 + $0x30] sm:$0xff] }
 0x642   : > { %v6488_v32 = vsel %vm3222_vm4, %v15992_v27, %v6439_v13  ;;  %v6445_v10 = vpop.permute.xlu1 %6444  ;;  %v9744_v13 = vld [vmem:[%s15877_s7 + $0xb8] sm:$0xff]  ;;  %v9761_v27 = vld [vmem:[%s15877_s7 + $0xc0] sm:$0xff] }
 0x643   : > { %v6549_v30 = vsel %vm15020_vm14, %v6488_v32, 0.0  ;;  %v6491_v45 = vsel %vm3222_vm4, %v15993_v22, %v6445_v10  ;;  %v15061_v20 = vld [vmem:[#allocation3 + $0x49] sm:$0xff]  ;;  %v15264_v46 = vld [vmem:[#allocation3 + $0x52] sm:$0xff] }
 0x644   : > { %6570 = vst.msk [vmem:[#allocation3 + $0x79] sm:$0xff] %vm6559_vm13, %v6549_v30  ;;  %v6552_v29 = vsel %vm15049_vm3, %v6491_v45, 0.0  ;;  %11374 = vmatprep.mubr.msk.f32.mxu1 %vm6559_vm13, %v15061_v20  ;;  %11824 = vmatpush3.bf16.msra.mxu1 %v11821_v63  ;;  %v15087_v26 = vld [vmem:[#allocation3 + $0x69] sm:$0xff] }
 0x645   : > { %6573 = vst.msk [vmem:[#allocation3 + $0x99] sm:$0xff] %vm6559_vm13, %v6552_v29  ;;  %11375 = vmatmul.mubr.msk.f32.gmra.mrb[26].mxu1 %vm6559_vm13, %v15068_v37  ;;  %v6443_v8 = vpop.permute.xlu0 %6442  ;;  %11826 = vmatprep.subr.bf16.mxu1 %v15053_v50  ;;  %v9762_v32 = vld [vmem:[%s15877_s7 + $0xc8] sm:$0xff]  ;;  %v15182_v22 = vld [vmem:[#allocation3 + $0x50] sm:$0xff] }
 0x646   : > { %v6490_v18 = vsel %vm3222_vm4, %v15994_v7, %v6443_v8  ;;  %v15178_v10 = vld [vmem:[#allocation3 + $0x48] sm:$0xff]  ;;  %v11841_v30 = vpack.c.bf16 %v9762_v32, %v9761_v27  ;;  %v9789_v32 = vld [vmem:[%s15877_s7 + $0x120] sm:$0xff] }
 0x647   : > { %v6551_v47 = vsel %vm15049_vm3, %v6490_v18, 0.0  ;;  %v15082_v6 = vld [vmem:[#allocation3 + $0x61] sm:$0xff] }
 0x648   : > { %6572 = vst.msk [vmem:[#allocation3 + $0x91] sm:$0xff] %vm6559_vm13, %v6551_v47  ;;  %v6449_v41 = vpop.permute.xlu1 %6448  ;;  %11377 = vmatprep.mubr.msk.f32.mxu1 %vm6559_vm13, %v15082_v6  ;;  %v15110_v48 = vld [vmem:[#allocation3 + $0x81] sm:$0xff] }
 0x649   : > { %v6493_v11 = vsel %vm3222_vm4, %v15997_v34, %v6449_v41  ;;  %11378 = vmatmul.mubr.msk.f32.gmra.mrb[28].mxu1 %vm6559_vm13, %v15087_v26  ;;  %v6447_v53 = vpop.permute.xlu0 %6446  ;;  %v15186_v45 = vld [vmem:[#allocation3 + $0x60] sm:$0xff]  ;;  %v15190_v25 = vld [vmem:[#allocation3 + $0x68] sm:$0xff]  ;;  %v9764_v41 = vld [vmem:[%s15877_s7 + $0xd8] sm:$0xff] }
 0x64a   : > { %v6554_v59 = vsel %vm15078_vm7, %v6493_v11, 0.0  ;;  %v6492_v40 = vsel %vm3222_vm4, %v15998_v38, %v6447_v53  ;;  %v11845_v34 = vpack.c.bf16 %v9764_v41, %v9763_v54  ;;  %v7037_v11 = vld [vmem:[#allocation3 + $0xa] sm:$0xff]  ;;  %v9765_v53 = vld [vmem:[%s15877_s7 + $0xe0] sm:$0xff]  ;;  %v9792_v41 = vld [vmem:[%s15877_s7 + $0x138] sm:$0xff] }
 0x64b   : > { %6575 = vst.msk [vmem:[#allocation3 + $0xb1] sm:$0xff] %vm6559_vm13, %v6554_v59  ;;  %v6553_v36 = vsel %vm15078_vm7, %v6492_v40, 0.0  ;;  %v15104_v61 = vld [vmem:[#allocation3 + $0x79] sm:$0xff]  ;;  %v11849_v38 = vpack.c.bf16 %v9766_v39, %v9765_v53  ;;  %v15236_v40 = vld [vmem:[#allocation3 + $0x22] sm:$0xff]  ;;  %v6507_v53 = vadd.s32 8, %v14930_v56 }
 0x64c   : > { %6574 = vst.msk [vmem:[#allocation3 + $0xa9] sm:$0xff] %vm6559_vm13, %v6553_v36  ;;  %11380 = vmatprep.mubr.msk.f32.mxu1 %vm6559_vm13, %v15104_v61  ;;  %v6353_v35 = vpop.permute.xlu1 %6352  ;;  %v15121_v23 = vld [vmem:[#allocation3 + $0x99] sm:$0xff]  ;;  %v9767_v36 = vld [vmem:[%s15877_s7 + $0xf0] sm:$0xff]  ;;  %v15268_v60 = vld [vmem:[#allocation3 + $0x62] sm:$0xff] }
 0x64d   : > { %v6395_v21 = vmul.f32 %v6353_v35, %v6175_v51  ;;  %11381 = vmatmul.mubr.msk.f32.gmra.mrb[30].mxu1 %vm6559_vm13, %v15110_v48  ;;  %v6351_v3 = vpop.permute.xlu0 %6350  ;;  %v15194_v29 = vld [vmem:[#allocation3 + $0x78] sm:$0xff]  ;;  %v15198_v16 = vld [vmem:[#allocation3 + $0x80] sm:$0xff]  ;;  %vm6517_vm15 = vcmp.ge.s32.totalorder %v6507_v53, 0  ;;  %vm6527_vm1 = vcmp.lt.s32.totalorder %v6507_v53, 16 }
 0x64e   : > { %v6394_v28 = vmul.f32 %v6351_v3, %v6174_v5  ;;  %v15232_v59 = vld [vmem:[#allocation3 + $0x1a] sm:$0xff]  ;;  %v15246_v51 = vld [vmem:[#allocation3 + $0x32] sm:$0xff]  ;;  %vm6537_vm10 = vmand %vm6517_vm15, %vm6527_vm1 }
 0x64f   : > { %6452 = vrot.lane.b32.xlu1 %v6395_v21, %s12757_s21  ;;  %v15116_v12 = vld [vmem:[#allocation3 + $0x91] sm:$0xff]  ;;  %v15250_v3 = vld [vmem:[#allocation3 + $0x3a] sm:$0xff] }
 0x650   : > { %11383 = vmatprep.mubr.msk.f32.mxu1 %vm6559_vm13, %v15116_v12  ;;  %6450 = vrot.lane.b32.xlu0 %v6394_v28, %s12757_s21  ;;  %v15202_v8 = vld [vmem:[#allocation3 + $0x90] sm:$0xff]  ;;  %v15206_v7 = vld [vmem:[#allocation3 + $0x98] sm:$0xff]  ;;  %v9785_v5 = vld [vmem:[%s15877_s7 + $0x100] sm:$0xff] }
 0x651   : > { %11384 = vmatmul.mubr.msk.f32.gmra.mrb[32].mxu1 %vm6559_vm13, %v15121_v23  ;;  %v9768_v35 = vld [vmem:[%s15877_s7 + $0xf8] sm:$0xff]  ;;  %v9786_v28 = vld [vmem:[%s15877_s7 + $0x108] sm:$0xff]  ;;  %v9813_v53 = vld [vmem:[%s15877_s7 + $0x160] sm:$0xff] }
 0x652   : > { %v15131_v63 = vld [vmem:[#allocation3 + $0xb1] sm:$0xff]  ;;  %v11853_v21 = vpack.c.bf16 %v9768_v35, %v9767_v36  ;;  %v15288_v14 = vld [vmem:[#allocation3 + $0x9a] sm:$0xff]  ;;  %v15999_v36 = vld [vmem:[#allocation24_spill] sm:$0xff] }
 0x653   : > { %6356 = vrot.lane.b32.xlu1 %v12577_v9, %s12756_s17  ;;  %v15126_v24 = vld [vmem:[#allocation3 + $0xa9] sm:$0xff]  ;;  %v15284_v49 = vld [vmem:[#allocation3 + $0x92] sm:$0xff] }
 0x654   : > { %11386 = vmatprep.mubr.msk.f32.mxu1 %vm6559_vm13, %v15126_v24  ;;  %6354 = vrot.lane.b32.xlu0 %v12579_v15, %s12756_s17  ;;  %v15210_v18 = vld [vmem:[#allocation3 + $0xa8] sm:$0xff]  ;;  %v15214_v47 = vld [vmem:[#allocation3 + $0xb0] sm:$0xff]  ;;  %v11857_v15 = vpack.c.bf16 %v9786_v28, %v9785_v5  ;;  %v6156_v5 = vmul.f32 0.2, %v14774_v1  ;;  %s12758_s17 = smov 64  }
 0x655   : > { %11387 = vmatmul.mubr.msk.f32.gmra.mrb[34].mxu1 %vm6559_vm13, %v15131_v63  ;;  %v15260_v9 = vld [vmem:[#allocation3 + $0x4a] sm:$0xff] }
 0x656   : > { %11405 = vmatprep.mubr.msk.f32.mxu1 %vm6559_vm13, %v6601_v52  ;;  %v15272_v52 = vld [vmem:[#allocation3 + $0x6a] sm:$0xff] }
 0x659   : > { %11406 = vmatmul.mubr.msk.f32.vlgmr.msra.gmra.mrb[20].mxu1 %vm6559_vm13, %v6602_v31  ;;  %v15280_v31 = vld [vmem:[#allocation3 + $0x82] sm:$0xff] }
 0x65a   : > { %11408 = vmatprep.mubr.msk.f32.mxu1 %vm6559_vm13, %v15149_v19  ;;  %11828 = vmatpush3.bf16.msra.mxu1 %v15053_v50  ;;  %v11837_v50 = vpack.c.bf16 %v9744_v13, %v9743_v17  ;;  %v15296_v17 = vld [vmem:[#allocation3 + $0xb2] sm:$0xff] }
 0x65b   : > { %11830 = vmatprep.subr.bf16.mxu1 %v11829_v44  ;;  %v9787_v13 = vld [vmem:[%s15877_s7 + $0x110] sm:$0xff] }
 0x65d   : > { %11409 = vmatmul.mubr.msk.f32.gmra.mrb[22].mxu1 %vm6559_vm13, %v15154_v57 }
 0x65e   : > { %11411 = vmatprep.mubr.msk.f32.mxu1 %vm6559_vm13, %v15164_v0  ;;  %11832 = vmatpush3.bf16.msra.mxu1 %v11829_v44  ;;  %v15276_v44 = vld [vmem:[#allocation3 + $0x7a] sm:$0xff] }
 0x65f   : > { %11834 = vmatprep.subr.bf16.mxu1 %v11833_v62 }
 0x661   : > { %11412 = vmatmul.mubr.msk.f32.gmra.mrb[24].mxu1 %vm6559_vm13, %v15168_v4 }
 0x662   : > { %11414 = vmatprep.mubr.msk.f32.mxu1 %vm6559_vm13, %v15178_v10  ;;  %11836 = vmatpush3.bf16.msra.mxu1 %v11833_v62  ;;  %v15292_v62 = vld [vmem:[#allocation3 + $0xaa] sm:$0xff] }
 0x663   : > { %11838 = vmatprep.subr.bf16.mxu1 %v11837_v50 }
 0x665   : > { %11415 = vmatmul.mubr.msk.f32.gmra.mrb[26].mxu1 %vm6559_vm13, %v15182_v22 }
 0x666   : > { %11417 = vmatprep.mubr.msk.f32.mxu1 %vm6559_vm13, %v15186_v45  ;;  %11840 = vmatpush3.bf16.msra.mxu1 %v11837_v50  ;;  %v9788_v50 = vld [vmem:[%s15877_s7 + $0x118] sm:$0xff] }
 0x667   : > { %11842 = vmatprep.subr.bf16.mxu1 %v11841_v30  ;;  %v11861_v27 = vpack.c.bf16 %v9788_v50, %v9787_v13 }
 0x669   : > { %11418 = vmatmul.mubr.msk.f32.gmra.mrb[28].mxu1 %vm6559_vm13, %v15190_v25 }
 0x66a   : > { %11420 = vmatprep.mubr.msk.f32.mxu1 %vm6559_vm13, %v15194_v29 }
 0x66d   : > { %11421 = vmatmul.mubr.msk.f32.gmra.mrb[30].mxu1 %vm6559_vm13, %v15198_v16 }
 0x66e   : > { %11423 = vmatprep.mubr.msk.f32.mxu1 %vm6559_vm13, %v15202_v8 }
 0x671   : > { %11424 = vmatmul.mubr.msk.f32.gmra.mrb[32].mxu1 %vm6559_vm13, %v15206_v7 }
 0x672   : > { %11426 = vmatprep.mubr.msk.f32.mxu1 %vm6559_vm13, %v15210_v18 }
 0x675   : > { %11427 = vmatmul.mubr.msk.f32.gmra.mrb[34].mxu1 %vm6559_vm13, %v15214_v47 }
 0x676   : > { %11445 = vmatprep.mubr.msk.f32.mxu1 %vm6559_vm13, %v7036_v42  ;;  %v9809_v42 = vld [vmem:[%s15877_s7 + $0x140] sm:$0xff] }
 0x679   : > { %11446 = vmatmul.mubr.msk.f32.vlgmr.msra.gmra.mrb[20].mxu1 %vm6559_vm13, %v7037_v11 }
 0x67a   : > { %11448 = vmatprep.mubr.msk.f32.mxu1 %vm6559_vm13, %v15232_v59  ;;  %11844 = vmatpush3.bf16.msra.mxu1 %v11841_v30  ;;  %v9790_v30 = vld [vmem:[%s15877_s7 + $0x128] sm:$0xff] }
 0x67b   : > { %11846 = vmatprep.subr.bf16.mxu1 %v11845_v34  ;;  %v11865_v54 = vpack.c.bf16 %v9790_v30, %v9789_v32 }
 0x67d   : > { %11449 = vmatmul.mubr.msk.f32.gmra.mrb[22].mxu1 %vm6559_vm13, %v15236_v40 }
 0x67e   : > { %11451 = vmatprep.mubr.msk.f32.mxu1 %vm6559_vm13, %v15246_v51  ;;  %11848 = vmatpush3.bf16.msra.mxu1 %v11845_v34  ;;  %v9810_v34 = vld [vmem:[%s15877_s7 + $0x148] sm:$0xff] }
 0x67f   : > { %11850 = vmatprep.subr.bf16.mxu1 %v11849_v38  ;;  %v11873_v11 = vpack.c.bf16 %v9810_v34, %v9809_v42 }
 0x681   : > { %11452 = vmatmul.mubr.msk.f32.gmra.mrb[24].mxu1 %vm6559_vm13, %v15250_v3 }
 0x682   : > { %11454 = vmatprep.mubr.msk.f32.mxu1 %vm6559_vm13, %v15260_v9  ;;  %11852 = vmatpush3.bf16.msra.mxu1 %v11849_v38  ;;  %v6157_v38 = vmul.f32 0.2, %v14770_v2 }
 0x683   : > { %11854 = vmatprep.subr.bf16.mxu1 %v11853_v21 }
 0x684   : > { %v6177_v32 = vsel %vm6137_vm11, %v14770_v2, %v6157_v38  ;;  %v9811_v2 = vld [vmem:[%s15877_s7 + $0x150] sm:$0xff] }
 0x685   : > { %11455 = vmatmul.mubr.msk.f32.gmra.mrb[26].mxu1 %vm6559_vm13, %v15264_v46 }
 0x686   : > { %11457 = vmatprep.mubr.msk.f32.mxu1 %vm6559_vm13, %v15268_v60  ;;  %11856 = vmatpush3.bf16.msra.mxu1 %v11853_v21 }
 0x687   : > { %11858 = vmatprep.subr.bf16.mxu1 %v11857_v15 }
 0x689   : > { %11458 = vmatmul.mubr.msk.f32.gmra.mrb[28].mxu1 %vm6559_vm13, %v15272_v52 }
 0x68a   : > { %11460 = vmatprep.mubr.msk.f32.mxu1 %vm6559_vm13, %v15276_v44 }
 0x68d   : > { %11461 = vmatmul.mubr.msk.f32.gmra.mrb[30].mxu1 %vm6559_vm13, %v15280_v31 }
 0x68e   : > { %11463 = vmatprep.mubr.msk.f32.mxu1 %vm6559_vm13, %v15284_v49 }
 0x691   : > { %11464 = vmatmul.mubr.msk.f32.gmra.mrb[32].mxu1 %vm6559_vm13, %v15288_v14 }
 0x692   : > { %11466 = vmatprep.mubr.msk.f32.mxu1 %vm6559_vm13, %v15292_v62 }
 0x695   : > { %11467 = vmatmul.mubr.msk.f32.gmra.mrb[34].mxu1 %vm6559_vm13, %v15296_v17 }
 0x696   : > { %11485 = vmatprep.mubr.msk.f32.mxu1 %vm6559_vm13, %v15149_v19  ;;  %v9791_v19 = vld [vmem:[%s15877_s7 + $0x130] sm:$0xff] }
 0x699   : > { %11486 = vmatmul.mubr.msk.f32.vlgmr.msra.gmra.mrb[20].mxu1 %vm6559_vm13, %v15154_v57  ;;  %v11869_v57 = vpack.c.bf16 %v9792_v41, %v9791_v19  ;;  %v6176_v19 = vsel %vm6136_vm12, %v14774_v1, %v6156_v5  ;;  %v9812_v1 = vld [vmem:[%s15877_s7 + $0x158] sm:$0xff] }
 0x69a   : > { %11488 = vmatprep.mubr.msk.f32.mxu1 %vm6559_vm13, %v15164_v0  ;;  %11860 = vmatpush3.bf16.msra.mxu1 %v11857_v15  ;;  %v16000_v15 = vld [vmem:[#allocation23_spill] sm:$0xff]  ;;  %v11877_v34 = vpack.c.bf16 %v9812_v1, %v9811_v2 }
 0x69b   : > { %11862 = vmatprep.subr.bf16.mxu1 %v11861_v27 }
 0x69d   : > { %11489 = vmatmul.mubr.msk.f32.gmra.mrb[22].mxu1 %vm6559_vm13, %v15168_v4 }
 0x69e   : > { %11491 = vmatprep.mubr.msk.f32.mxu1 %vm6559_vm13, %v15178_v10  ;;  %11864 = vmatpush3.bf16.msra.mxu1 %v11861_v27 }
 0x69f   : > { %11866 = vmatprep.subr.bf16.mxu1 %v11865_v54 }
 0x6a1   : > { %11492 = vmatmul.mubr.msk.f32.gmra.mrb[24].mxu1 %vm6559_vm13, %v15182_v22 }
 0x6a2   : > { %11494 = vmatprep.mubr.msk.f32.mxu1 %vm6559_vm13, %v15186_v45  ;;  %11868 = vmatpush3.bf16.msra.mxu1 %v11865_v54 }
 0x6a3   : > { %11870 = vmatprep.subr.bf16.mxu1 %v11869_v57 }
 0x6a5   : > { %11495 = vmatmul.mubr.msk.f32.gmra.mrb[26].mxu1 %vm6559_vm13, %v15190_v25 }
 0x6a6   : > { %11497 = vmatprep.mubr.msk.f32.mxu1 %vm6559_vm13, %v15194_v29  ;;  %11872 = vmatpush3.bf16.msra.mxu1 %v11869_v57 }
 0x6a7   : > { %11874 = vmatprep.subr.bf16.mxu1 %v11873_v11 }
 0x6a9   : > { %11498 = vmatmul.mubr.msk.f32.gmra.mrb[28].mxu1 %vm6559_vm13, %v15198_v16 }
 0x6aa   : > { %11500 = vmatprep.mubr.msk.f32.mxu1 %vm6559_vm13, %v15202_v8 }
 0x6ad   : > { %11501 = vmatmul.mubr.msk.f32.gmra.mrb[30].mxu1 %vm6559_vm13, %v15206_v7 }
 0x6ae   : > { %11503 = vmatprep.mubr.msk.f32.mxu1 %vm6559_vm13, %v15210_v18 }
 0x6b1   : > { %11504 = vmatmul.mubr.msk.f32.gmra.mrb[32].mxu1 %vm6559_vm13, %v15214_v47 }
 0x6c1   : > { %v6453_v39 = vpop.permute.xlu1 %6452 }
 0x6c2   : > { %v6495_v35 = vsel %vm3222_vm4, %v15999_v36, %v6453_v39  ;;  %v6451_v21 = vpop.permute.xlu0 %6450  ;;  %v9814_v39 = vld [vmem:[%s15877_s7 + $0x168] sm:$0xff]  ;;  %v9816_v36 = vld [vmem:[%s15877_s7 + $0x178] sm:$0xff] }
 0x6c3   : > { %v6556_v28 = vsel %vm6537_vm10, %v6495_v35, 0.0  ;;  %v6494_v13 = vsel %vm3222_vm4, %v16000_v15, %v6451_v21  ;;  %v11881_v38 = vpack.c.bf16 %v9814_v39, %v9813_v53  ;;  %v9834_v35 = vld [vmem:[%s15877_s7 + $0x188] sm:$0xff]  ;;  %v9835_v15 = vld [vmem:[%s15877_s7 + $0x190] sm:$0xff]  ;;  %v9860_v39 = vld [vmem:[%s15877_s7 + $0x1d8] sm:$0xff] }
 0x6c4   : > { %6577 = vst.msk [vmem:[#allocation3 + $0xc9] sm:$0xff] %vm6559_vm13, %v6556_v28  ;;  %v6555_v50 = vsel %vm6537_vm10, %v6494_v13, 0.0  ;;  %v9836_v13 = vld [vmem:[%s15877_s7 + $0x198] sm:$0xff]  ;;  %v9859_v53 = vld [vmem:[%s15877_s7 + $0x1d0] sm:$0xff] }
 0x6c5   : > { %6576 = vst.msk [vmem:[#allocation3 + $0xc1] sm:$0xff] %vm6559_vm13, %v6555_v50  ;;  %v6357_v27 = vpop.permute.xlu1 %6356  ;;  %v11893_v50 = vpack.c.bf16 %v9836_v13, %v9835_v15  ;;  %v9884_v15 = vld [vmem:[%s15877_s7 + $0x218] sm:$0xff] }
 0x6c6   : > { %v6397_v30 = vmul.f32 %v6357_v27, %v6177_v32  ;;  %v6355_v54 = vpop.permute.xlu0 %6354  ;;  %v9837_v27 = vld [vmem:[%s15877_s7 + $0x1a0] sm:$0xff]  ;;  %v9838_v32 = vld [vmem:[%s15877_s7 + $0x1a8] sm:$0xff] }
 0x6c7   : > { %v6396_v41 = vmul.f32 %v6355_v54, %v6176_v19  ;;  %v9840_v54 = vld [vmem:[%s15877_s7 + $0x1b8] sm:$0xff]  ;;  %v9857_v19 = vld [vmem:[%s15877_s7 + $0x1c0] sm:$0xff] }
 0x6c8   : > { %6456 = vrot.lane.b32.xlu1 %v6397_v30, %s12757_s21  ;;  %v11897_v30 = vpack.c.bf16 %v9838_v32, %v9837_v27  ;;  %v9886_v27 = vld [vmem:[%s15877_s7 + $0x228] sm:$0xff] }
 0x6c9   : > { %6454 = vrot.lane.b32.xlu0 %v6396_v41, %s12757_s21  ;;  %v9858_v41 = vld [vmem:[%s15877_s7 + $0x1c8] sm:$0xff]  ;;  %s9055_s21 = sshll.u32 %s347_s19, 7 }
 0x6ca   : > { %v11905_v2 = vpack.c.bf16 %v9858_v41, %v9857_v19  ;;  %s15734_s26 = scalar_lea.vmem [#allocation4], %s9055_s21 }
 0x6cb   : > { %v15431_v28 = vld [vmem:[#allocation3 + $0xc9] sm:$0xff]  ;;  %s8972_s28 = sshll.u32 %s15734_s26, 4  ;;  %s15809_s28 = int_to_ptr.vmem [resolvable:$true] %s8972_s28 }
 0x6cc   : > { %v15367_v57 = vld [vmem:[#allocation3 + $0xc0] sm:$0xff]  ;;  %v15369_v42 = vld [vmem:[#allocation3 + $0xc8] sm:$0xff]  ;;  %s12658_s21 = scalar_lea.vmem %s15809_s28, 2048  ;;  %p12665_p2 = scmp.lt.s32.totalorder %s15809_s28, %s12663_s18 }
 0x6cd   : > { %11506 = vmatprep.mubr.msk.f32.mxu1 %vm6559_vm13, %v15367_v57  ;;  %v15427_v5 = vld [vmem:[#allocation3 + $0xc1] sm:$0xff]  ;;  %p12659_p13 = scmp.ne.s32.totalorder %s15809_s28, %s12658_s21  ;;  %p12666_p4 = scmp.lt.s32.totalorder %s12664_s12, %s12658_s21 }
 0x6ce   : > { %11507 = vmatmul.mubr.msk.f32.gmra.mrb[34].mxu1 %vm6559_vm13, %v15369_v42  ;;  %v15487_v1 = vld [vmem:[#allocation3 + $0xc2] sm:$0xff] }
 0x6cf   : > { %11525 = vmatprep.mubr.msk.f32.mxu1 %vm6559_vm13, %v14995_v33  ;;  %v9815_v33 = vld [vmem:[%s15877_s7 + $0x170] sm:$0xff]  ;;  %p12660_p0 = pnand %p12659_p13, %p12863_p3  ;;  %p12667_p5 = por %p12666_p4, %p12665_p2 }
 0x6d1   : > { %p12661_p1 = pneg %p12660_p0 }
 0x6d2   : > { %11526 = vmatmul.mubr.msk.f32.vlgmr.msra.gmra.mrb[20].mxu1 %vm6559_vm13, %v15001_v55  ;;  %v11885_v55 = vpack.c.bf16 %v9816_v36, %v9815_v33  ;;  %v9861_v33 = vld [vmem:[%s15877_s7 + $0x1e0] sm:$0xff]  ;;  %v9862_v36 = vld [vmem:[%s15877_s7 + $0x1e8] sm:$0xff] }
 0x6d3   : > { %11528 = vmatprep.mubr.msk.f32.mxu1 %vm6559_vm13, %v15024_v43  ;;  %11876 = vmatpush3.bf16.msra.mxu1 %v11873_v11  ;;  %v9833_v11 = vld [vmem:[%s15877_s7 + $0x180] sm:$0xff]  ;;  %p12668_p6 = pnand %p12667_p5, %p12661_p1 }
 0x6d4   : > { %11878 = vmatprep.subr.bf16.mxu1 %v11877_v34  ;;  %v11889_v21 = vpack.c.bf16 %v9834_v35, %v9833_v11  ;;  %v9864_v11 = vld [vmem:[%s15877_s7 + $0x1f8] sm:$0xff]  ;;  %v9882_v35 = vld [vmem:[%s15877_s7 + $0x208] sm:$0xff] }
 0x6d6   : > { %11529 = vmatmul.mubr.msk.f32.gmra.mrb[22].mxu1 %vm6559_vm13, %v15030_v58 }
 0x6d7   : > { %11531 = vmatprep.mubr.msk.f32.mxu1 %vm6559_vm13, %v15061_v20  ;;  %11880 = vmatpush3.bf16.msra.mxu1 %v11877_v34  ;;  %v15491_v34 = vld [vmem:[#allocation3 + $0xca] sm:$0xff] }
 0x6d8   : > { %11882 = vmatprep.subr.bf16.mxu1 %v11881_v38 }
 0x6da   : > { %11532 = vmatmul.mubr.msk.f32.gmra.mrb[24].mxu1 %vm6559_vm13, %v15068_v37 }
 0x6db   : > { %11534 = vmatprep.mubr.msk.f32.mxu1 %vm6559_vm13, %v15082_v6  ;;  %11884 = vmatpush3.bf16.msra.mxu1 %v11881_v38  ;;  %v11909_v38 = vpack.c.bf16 %v9860_v39, %v9859_v53 }
 0x6dc   : > { %11886 = vmatprep.subr.bf16.mxu1 %v11885_v55 }
 0x6de   : > { %11535 = vmatmul.mubr.msk.f32.gmra.mrb[26].mxu1 %vm6559_vm13, %v15087_v26 }
 0x6df   : > { %11537 = vmatprep.mubr.msk.f32.mxu1 %vm6559_vm13, %v15104_v61  ;;  %11888 = vmatpush3.bf16.msra.mxu1 %v11885_v55  ;;  %v11913_v55 = vpack.c.bf16 %v9862_v36, %v9861_v33 }
 0x6e0   : > { %11890 = vmatprep.subr.bf16.mxu1 %v11889_v21 }
 0x6e2   : > { %11538 = vmatmul.mubr.msk.f32.gmra.mrb[28].mxu1 %vm6559_vm13, %v15110_v48 }
 0x6e3   : > { %11540 = vmatprep.mubr.msk.f32.mxu1 %vm6559_vm13, %v15116_v12 }
 0x6e6   : > { %11541 = vmatmul.mubr.msk.f32.gmra.mrb[30].mxu1 %vm6559_vm13, %v15121_v23 }
 0x6e7   : > { %11543 = vmatprep.mubr.msk.f32.mxu1 %vm6559_vm13, %v15126_v24 }
 0x6ea   : > { %11544 = vmatmul.mubr.msk.f32.gmra.mrb[32].mxu1 %vm6559_vm13, %v15131_v63 }
 0x6eb   : > { %11546 = vmatprep.mubr.msk.f32.mxu1 %vm6559_vm13, %v15427_v5 }
 0x6ee   : > { %11547 = vmatmul.mubr.msk.f32.gmra.mrb[34].mxu1 %vm6559_vm13, %v15431_v28 }
 0x6ef   : > { %11565 = vmatprep.mubr.msk.f32.mxu1 %vm6559_vm13, %v15232_v59  ;;  %v9839_v59 = vld [vmem:[%s15877_s7 + $0x1b0] sm:$0xff] }
 0x6f2   : > { %11566 = vmatmul.mubr.msk.f32.vlgmr.msra.gmra.mrb[20].mxu1 %vm6559_vm13, %v15236_v40  ;;  %v11901_v40 = vpack.c.bf16 %v9840_v54, %v9839_v59 }
 0x6f3   : > { %11568 = vmatprep.mubr.msk.f32.mxu1 %vm6559_vm13, %v15246_v51  ;;  %11892 = vmatpush3.bf16.msra.mxu1 %v11889_v21 }
 0x6f4   : > { %11894 = vmatprep.subr.bf16.mxu1 %v11893_v50 }
 0x6f6   : > { %11569 = vmatmul.mubr.msk.f32.gmra.mrb[22].mxu1 %vm6559_vm13, %v15250_v3 }
 0x6f7   : > { %11571 = vmatprep.mubr.msk.f32.mxu1 %vm6559_vm13, %v15260_v9  ;;  %11896 = vmatpush3.bf16.msra.mxu1 %v11893_v50  ;;  %v9885_v50 = vld [vmem:[%s15877_s7 + $0x220] sm:$0xff] }
 0x6f8   : > { %11898 = vmatprep.subr.bf16.mxu1 %v11897_v30  ;;  %v11929_v32 = vpack.c.bf16 %v9886_v27, %v9885_v50 }
 0x6fa   : > { %11572 = vmatmul.mubr.msk.f32.gmra.mrb[24].mxu1 %vm6559_vm13, %v15264_v46 }
 0x6fb   : > { %11574 = vmatprep.mubr.msk.f32.mxu1 %vm6559_vm13, %v15268_v60  ;;  %11900 = vmatpush3.bf16.msra.mxu1 %v11897_v30  ;;  %v9888_v30 = vld [vmem:[%s15877_s7 + $0x238] sm:$0xff] }
 0x6fc   : > { %11902 = vmatprep.subr.bf16.mxu1 %v11901_v40 }
 0x6fe   : > { %11575 = vmatmul.mubr.msk.f32.gmra.mrb[26].mxu1 %vm6559_vm13, %v15272_v52 }
 0x6ff   : > { %11577 = vmatprep.mubr.msk.f32.mxu1 %vm6559_vm13, %v15276_v44  ;;  %11904 = vmatpush3.bf16.msra.mxu1 %v11901_v40 }
 0x700   : > { %11906 = vmatprep.subr.bf16.mxu1 %v11905_v2 }
 0x702   : > { %11578 = vmatmul.mubr.msk.f32.gmra.mrb[28].mxu1 %vm6559_vm13, %v15280_v31 }
 0x703   : > { %11580 = vmatprep.mubr.msk.f32.mxu1 %vm6559_vm13, %v15284_v49 }
 0x706   : > { %11581 = vmatmul.mubr.msk.f32.gmra.mrb[30].mxu1 %vm6559_vm13, %v15288_v14 }
 0x707   : > { %11583 = vmatprep.mubr.msk.f32.mxu1 %vm6559_vm13, %v15292_v62 }
 0x70a   : > { %11584 = vmatmul.mubr.msk.f32.gmra.mrb[32].mxu1 %vm6559_vm13, %v15296_v17 }
 0x70b   : > { %11586 = vmatprep.mubr.msk.f32.mxu1 %vm6559_vm13, %v15487_v1 }
 0x70e   : > { %11587 = vmatmul.mubr.msk.f32.gmra.mrb[34].mxu1 %vm6559_vm13, %v15491_v34 }
 0x70f   : > { %11605 = vmatprep.mubr.msk.f32.mxu1 %vm6559_vm13, %v15164_v0  ;;  %v9863_v0 = vld [vmem:[%s15877_s7 + $0x1f0] sm:$0xff] }
 0x712   : > { %11606 = vmatmul.mubr.msk.f32.vlgmr.msra.gmra.mrb[20].mxu1 %vm6559_vm13, %v15168_v4  ;;  %v11917_v4 = vpack.c.bf16 %v9864_v11, %v9863_v0 }
 0x713   : > { %11608 = vmatprep.mubr.msk.f32.mxu1 %vm6559_vm13, %v15178_v10  ;;  %11908 = vmatpush3.bf16.msra.mxu1 %v11905_v2  ;;  %v9881_v10 = vld [vmem:[%s15877_s7 + $0x200] sm:$0xff] }
 0x714   : > { %11910 = vmatprep.subr.bf16.mxu1 %v11909_v38 }
 0x716   : > { %11609 = vmatmul.mubr.msk.f32.gmra.mrb[22].mxu1 %vm6559_vm13, %v15182_v22  ;;  %v11921_v22 = vpack.c.bf16 %v9882_v35, %v9881_v10 }
 0x717   : > { %11611 = vmatprep.mubr.msk.f32.mxu1 %vm6559_vm13, %v15186_v45  ;;  %11912 = vmatpush3.bf16.msra.mxu1 %v11909_v38  ;;  %v6508_v45 = vadd.s32 9, %v14930_v56  ;;  %v9883_v56 = vld [vmem:[%s15877_s7 + $0x210] sm:$0xff] }
 0x718   : > { %11914 = vmatprep.subr.bf16.mxu1 %v11913_v55  ;;  %v11925_v13 = vpack.c.bf16 %v9884_v15, %v9883_v56 }
 0x719   : > { %vm6518_vm14 = vcmp.ge.s32.totalorder %v6508_v45, 0  ;;  %vm6528_vm0 = vcmp.lt.s32.totalorder %v6508_v45, 16 }
 0x71a   : > { %11612 = vmatmul.mubr.msk.f32.gmra.mrb[24].mxu1 %vm6559_vm13, %v15190_v25  ;;  %vm6538_vm2 = vmand %vm6518_vm14, %vm6528_vm0 }
 0x71b   : > { %11614 = vmatprep.mubr.msk.f32.mxu1 %vm6559_vm13, %v15194_v29  ;;  %11916 = vmatpush3.bf16.msra.mxu1 %v11913_v55  ;;  %v16001_v29 = vld [vmem:[#allocation26_spill] sm:$0xff] }
 0x71c   : > { %11918 = vmatprep.subr.bf16.mxu1 %v11917_v4 }
 0x71e   : > { %11615 = vmatmul.mubr.msk.f32.gmra.mrb[26].mxu1 %vm6559_vm13, %v15198_v16 }
 0x71f   : > { %11617 = vmatprep.mubr.msk.f32.mxu1 %vm6559_vm13, %v15202_v8  ;;  %11920 = vmatpush3.bf16.msra.mxu1 %v11917_v4 }
 0x720   : > { %11922 = vmatprep.subr.bf16.mxu1 %v11921_v22 }
 0x722   : > { %11618 = vmatmul.mubr.msk.f32.gmra.mrb[28].mxu1 %vm6559_vm13, %v15206_v7 }
 0x723   : > { %11620 = vmatprep.mubr.msk.f32.mxu1 %vm6559_vm13, %v15210_v18  ;;  %v16002_v18 = vld [vmem:[#allocation25_spill] sm:$0xff] }
 0x726   : > { %11621 = vmatmul.mubr.msk.f32.gmra.mrb[30].mxu1 %vm6559_vm13, %v15214_v47 }
 0x727   : > { %11623 = vmatprep.mubr.msk.f32.mxu1 %vm6559_vm13, %v15367_v57 }
 0x72a   : > { %11624 = vmatmul.mubr.msk.f32.gmra.mrb[32].mxu1 %vm6559_vm13, %v15369_v42 }
 0x73a   : > { %v6457_v25 = vpop.permute.xlu1 %6456 }
 0x73b   : > { %v6497_v16 = vsel %vm3222_vm4, %v16001_v29, %v6457_v25  ;;  %v6455_v8 = vpop.permute.xlu0 %6454 }
 0x73c   : > { %v6558_v7 = vsel %vm6538_vm2, %v6497_v16, 0.0  ;;  %v6496_v47 = vsel %vm3222_vm4, %v16002_v18, %v6455_v8 }
 0x73d   : > { %6579 = vst.msk [vmem:[#allocation3 + $0xe1] sm:$0xff] %vm6559_vm13, %v6558_v7  ;;  %v6557_v57 = vsel %vm6538_vm2, %v6496_v47, 0.0 }
 0x73e   : > { %6578 = vst.msk [vmem:[#allocation3 + $0xd9] sm:$0xff] %vm6559_vm13, %v6557_v57 }
 0x745   : > { %v7988_v42 = vld [vmem:[#allocation3 + $0xd8] sm:$0xff]  ;;  %v7989_v21 = vld [vmem:[#allocation3 + $0xe0] sm:$0xff] }
 0x746   : > { %11626 = vmatprep.mubr.msk.f32.mxu1 %vm6559_vm13, %v7988_v42 }
 0x747   : > { %11627 = vmatmul.mubr.msk.f32.gmra.mrb[34].mxu1 %vm6559_vm13, %v7989_v21 }
 0x748   : > { %11645 = vmatprep.mubr.msk.f32.mxu1 %vm6559_vm13, %v15024_v43  ;;  %v9887_v43 = vld [vmem:[%s15877_s7 + $0x230] sm:$0xff] }
 0x74b   : > { %11646 = vmatmul.mubr.msk.f32.vlgmr.msra.gmra.mrb[20].mxu1 %vm6559_vm13, %v15030_v58  ;;  %v11933_v58 = vpack.c.bf16 %v9888_v30, %v9887_v43 }
 0x74c   : > { %11924 = vmatpush3.bf16.msra.mxu1 %v11921_v22  ;;  %11648 = vmatprep.mubr.msk.f32.mxu1 %vm6559_vm13, %v15061_v20  ;;  %v8222_v20 = vld [vmem:[#allocation3 + $0xd9] sm:$0xff] }
 0x74d   : > { %11926 = vmatprep.subr.bf16.mxu1 %v11925_v13 }
 0x74f   : > { %11649 = vmatmul.mubr.msk.f32.gmra.mrb[22].mxu1 %vm6559_vm13, %v15068_v37  ;;  %v8223_v37 = vld [vmem:[#allocation3 + $0xe1] sm:$0xff] }
 0x750   : > { %11651 = vmatprep.mubr.msk.f32.mxu1 %vm6559_vm13, %v15082_v6  ;;  %11928 = vmatpush3.bf16.msra.mxu1 %v11925_v13  ;;  %v8456_v6 = vld [vmem:[#allocation3 + $0xda] sm:$0xff] }
 0x751   : > { %11930 = vmatprep.subr.bf16.mxu1 %v11929_v32 }
 0x753   : > { %11652 = vmatmul.mubr.msk.f32.gmra.mrb[24].mxu1 %vm6559_vm13, %v15087_v26  ;;  %v8457_v26 = vld [vmem:[#allocation3 + $0xe2] sm:$0xff] }
 0x754   : > { %11654 = vmatprep.mubr.msk.f32.mxu1 %vm6559_vm13, %v15104_v61  ;;  %11932 = vmatpush3.bf16.msra.mxu1 %v11929_v32  ;;  %v15637_v61 = vld [vmem:[%s15878_s8] ss:$0 sm:$0xff] }
 0x755   : > { %11934 = vmatprep.subr.bf16.mxu1 %v11933_v58 }
 0x757   : > { %11655 = vmatmul.mubr.msk.f32.gmra.mrb[26].mxu1 %vm6559_vm13, %v15110_v48 }
 0x758   : > { %11657 = vmatprep.mubr.msk.f32.mxu1 %vm6559_vm13, %v15116_v12  ;;  %11936 = vmatpush3.bf16.msra.mxu1 %v11933_v58 }
 0x75b   : > { %11658 = vmatmul.mubr.msk.f32.gmra.mrb[28].mxu1 %vm6559_vm13, %v15121_v23 }
 0x75c   : > { %11660 = vmatprep.mubr.msk.f32.mxu1 %vm6559_vm13, %v15126_v24 }
 0x75f   : > { %11661 = vmatmul.mubr.msk.f32.gmra.mrb[30].mxu1 %vm6559_vm13, %v15131_v63 }
 0x760   : > { %11663 = vmatprep.mubr.msk.f32.mxu1 %vm6559_vm13, %v15427_v5 }
 0x763   : > { %11664 = vmatmul.mubr.msk.f32.gmra.mrb[32].mxu1 %vm6559_vm13, %v15431_v28 }
 0x764   : > { %11666 = vmatprep.mubr.msk.f32.mxu1 %vm6559_vm13, %v8222_v20 }
 0x767   : > { %11667 = vmatmul.mubr.msk.f32.gmra.mrb[34].mxu1 %vm6559_vm13, %v8223_v37 }
 0x768   : > { %11685 = vmatprep.mubr.msk.f32.mxu1 %vm6559_vm13, %v15246_v51 }
 0x76b   : > { %11686 = vmatmul.mubr.msk.f32.vlgmr.msra.gmra.mrb[20].mxu1 %vm6559_vm13, %v15250_v3 }
 0x76c   : > { %11688 = vmatprep.mubr.msk.f32.mxu1 %vm6559_vm13, %v15260_v9 }
 0x76f   : > { %11689 = vmatmul.mubr.msk.f32.gmra.mrb[22].mxu1 %vm6559_vm13, %v15264_v46 }
 0x770   : > { %11691 = vmatprep.mubr.msk.f32.mxu1 %vm6559_vm13, %v15268_v60 }
 0x773   : > { %11692 = vmatmul.mubr.msk.f32.gmra.mrb[24].mxu1 %vm6559_vm13, %v15272_v52 }
 0x774   : > { %11694 = vmatprep.mubr.msk.f32.mxu1 %vm6559_vm13, %v15276_v44 }
 0x777   : > { %11695 = vmatmul.mubr.msk.f32.gmra.mrb[26].mxu1 %vm6559_vm13, %v15280_v31 }
 0x778   : > { %11697 = vmatprep.mubr.msk.f32.mxu1 %vm6559_vm13, %v15284_v49 }
 0x77b   : > { %11698 = vmatmul.mubr.msk.f32.gmra.mrb[28].mxu1 %vm6559_vm13, %v15288_v14 }
 0x77c   : > { %11700 = vmatprep.mubr.msk.f32.mxu1 %vm6559_vm13, %v15292_v62 }
 0x77f   : > { %11701 = vmatmul.mubr.msk.f32.gmra.mrb[30].mxu1 %vm6559_vm13, %v15296_v17 }
 0x780   : > { %11703 = vmatprep.mubr.msk.f32.mxu1 %vm6559_vm13, %v15487_v1 }
 0x783   : > { %11704 = vmatmul.mubr.msk.f32.gmra.mrb[32].mxu1 %vm6559_vm13, %v15491_v34 }
 0x784   : > { %11706 = vmatprep.mubr.msk.f32.mxu1 %vm6559_vm13, %v8456_v6 }
 0x787   : > { %11707 = vmatmul.mubr.msk.f32.gmra.mrb[34].mxu1 %vm6559_vm13, %v8457_v26 }
 0x83e   : > { %v11687_v48 = vpop.f32.mrb[20].mxu1 }
 0x83f   : > { %v15640_v12 = vadd.f32 %v11687_v48, %v15637_v61  ;;  %v8581_v23 = vpop.f32.mrb[21].mxu1 }
 0x840   : > { %v15643_v24 = vadd.f32 %v15637_v61, %v8581_v23 }
 0x841   : > { %v9907_v63 = vmul.f32 -1.442695, %v15640_v12  ;;  %vm8700_vm4 = vcmp.gt.f32.partialorder %v15640_v12, 0.0 }
 0x842   : > { %v9906_v51 = vmul.f32 -1.442695, %v15643_v24  ;;  %v11690_v3 = vpop.f32.mrb[22].mxu1  ;;  %vm8699_vm3 = vcmp.gt.f32.partialorder %v15643_v24, 0.0 }
 0x843   : > { %12580 = vpow2.f32 %v9907_v63  ;;  %v15648_v9 = vadd.f32 %v11690_v3, %v15637_v61  ;;  %v8591_v46 = vpop.f32.mrb[23].mxu1 }
 0x844   : > { %12582 = vpow2.f32 %v9906_v51  ;;  %v15651_v60 = vadd.f32 %v15637_v61, %v8591_v46 }
 0x845   : > { %v9909_v52 = vmul.f32 -1.442695, %v15648_v9  ;;  %vm8702_vm5 = vcmp.gt.f32.partialorder %v15648_v9, 0.0 }
 0x846   : > { %v9908_v44 = vmul.f32 -1.442695, %v15651_v60  ;;  %v11693_v31 = vpop.f32.mrb[24].mxu1  ;;  %vm8701_vm6 = vcmp.gt.f32.partialorder %v15651_v60, 0.0 }
 0x847   : > { %12584 = vpow2.f32 %v9909_v52  ;;  %v15656_v49 = vadd.f32 %v11693_v31, %v15637_v61  ;;  %v8601_v14 = vpop.f32.mrb[25].mxu1 }
 0x848   : > { %12586 = vpow2.f32 %v9908_v44  ;;  %v15659_v62 = vadd.f32 %v15637_v61, %v8601_v14 }
 0x849   : > { %v9911_v17 = vmul.f32 -1.442695, %v15656_v49  ;;  %vm8704_vm7 = vcmp.gt.f32.partialorder %v15656_v49, 0.0 }
 0x84a   : > { %v9910_v59 = vmul.f32 -1.442695, %v15659_v62  ;;  %v11696_v54 = vpop.f32.mrb[26].mxu1  ;;  %vm8703_vm8 = vcmp.gt.f32.partialorder %v15659_v62, 0.0 }
 0x84b   : > { %12588 = vpow2.f32 %v9911_v17  ;;  %v15664_v40 = vadd.f32 %v11696_v54, %v15637_v61  ;;  %v8611_v19 = vpop.f32.mrb[27].mxu1 }
 0x84c   : > { %12590 = vpow2.f32 %v9910_v59  ;;  %v15667_v41 = vadd.f32 %v15637_v61, %v8611_v19 }
 0x84d   : > { %v12581_v2 = vpop.eup %12580  ;;  %v9913_v1 = vmul.f32 -1.442695, %v15664_v40  ;;  %vm8706_vm9 = vcmp.gt.f32.partialorder %v15664_v40, 0.0 }
 0x84e   : > { %v12583_v34 = vpop.eup %12582  ;;  %v8796_v53 = vadd.f32 1.0, %v12581_v2  ;;  %v9912_v39 = vmul.f32 -1.442695, %v15667_v41  ;;  %v11699_v38 = vpop.f32.mrb[28].mxu1  ;;  %vm8705_vm15 = vcmp.gt.f32.partialorder %v15667_v41, 0.0 }
 0x84f   : > { %v8795_v33 = vadd.f32 1.0, %v12583_v34  ;;  %12592 = vpow2.f32 %v9913_v1  ;;  %v15672_v36 = vadd.f32 %v11699_v38, %v15637_v61  ;;  %v8621_v55 = vpop.f32.mrb[29].mxu1 }
 0x850   : > { %12594 = vrcp.f32 %v8796_v53  ;;  %v15675_v0 = vadd.f32 %v15637_v61, %v8621_v55 }
 0x851   : > { %v12585_v11 = vpop.eup %12584  ;;  %12596 = vrcp.f32 %v8795_v33  ;;  %v9915_v4 = vmul.f32 -1.442695, %v15672_v36  ;;  %vm8708_vm1 = vcmp.gt.f32.partialorder %v15672_v36, 0.0 }
 0x852   : > { %v12587_v10 = vpop.eup %12586  ;;  %v8798_v35 = vadd.f32 1.0, %v12585_v11  ;;  %12598 = vpow2.f32 %v9912_v39  ;;  %v9914_v22 = vmul.f32 -1.442695, %v15675_v0  ;;  %v11702_v45 = vpop.f32.mrb[30].mxu1  ;;  %vm8707_vm10 = vcmp.gt.f32.partialorder %v15675_v0, 0.0 }
 0x853   : > { %v8797_v25 = vadd.f32 1.0, %v12587_v10  ;;  %12600 = vpow2.f32 %v9915_v4  ;;  %v15680_v29 = vadd.f32 %v11702_v45, %v15637_v61  ;;  %v8631_v16 = vpop.f32.mrb[31].mxu1 }
 0x854   : > { %12602 = vrcp.f32 %v8798_v35  ;;  %v15683_v8 = vadd.f32 %v15637_v61, %v8631_v16 }
 0x855   : > { %v12589_v7 = vpop.eup %12588  ;;  %12604 = vrcp.f32 %v8797_v25  ;;  %v9917_v18 = vmul.f32 -1.442695, %v15680_v29  ;;  %vm8710_vm11 = vcmp.gt.f32.partialorder %v15680_v29, 0.0 }
 0x856   : > { %v12591_v47 = vpop.eup %12590  ;;  %v8800_v57 = vadd.f32 1.0, %v12589_v7  ;;  %12606 = vpow2.f32 %v9914_v22  ;;  %v9916_v42 = vmul.f32 -1.442695, %v15683_v8  ;;  %v11705_v21 = vpop.f32.mrb[32].mxu1  ;;  %vm8709_vm12 = vcmp.gt.f32.partialorder %v15683_v8, 0.0 }
 0x857   : > { %v8799_v56 = vadd.f32 1.0, %v12591_v47  ;;  %12608 = vpow2.f32 %v9917_v18  ;;  %v15688_v15 = vadd.f32 %v11705_v21, %v15637_v61  ;;  %v8641_v13 = vpop.f32.mrb[33].mxu1  ;;  %v8715_v21 = vmul.f32 0.2, %v15643_v24 }
 0x858   : > { %12610 = vrcp.f32 %v8800_v57  ;;  %v15691_v50 = vadd.f32 %v15637_v61, %v8641_v13 }
 0x859   : > { %v12593_v27 = vpop.eup %12592  ;;  %12612 = vrcp.f32 %v8799_v56  ;;  %v9919_v32 = vmul.f32 -1.442695, %v15688_v15  ;;  %vm8712_vm14 = vcmp.gt.f32.partialorder %v15688_v15, 0.0 }
 0x85a   : > { %v12595_v43 = vpop.eup %12594  ;;  %v8802_v30 = vadd.f32 1.0, %v12593_v27  ;;  %12614 = vpow2.f32 %v9916_v42  ;;  %v9918_v58 = vmul.f32 -1.442695, %v15691_v50  ;;  %v11708_v20 = vpop.f32.mrb[34].mxu1  ;;  %v8716_v42 = vmul.f32 0.2, %v15640_v12 }
 0x85b   : > { %v12597_v37 = vpop.eup %12596  ;;  %12616 = vpow2.f32 %v9919_v32  ;;  %v15696_v6 = vadd.f32 %v11708_v20, %v15637_v61  ;;  %8861 = vrot.lane.b32.xlu1 %v12595_v43, %s12758_s17  ;;  %v8651_v26 = vpop.f32.mrb[35].mxu1  ;;  %v8718_v27 = vmul.f32 0.2, %v15648_v9  ;;  %vm8711_vm0 = vcmp.gt.f32.partialorder %v15691_v50, 0.0 }
 0x85c   : > { %v12599_v48 = vpop.eup %12598  ;;  %12618 = vrcp.f32 %v8802_v30  ;;  %v15700_v23 = vadd.f32 %v15637_v61, %v8651_v26  ;;  %8859 = vrot.lane.b32.xlu0 %v12597_v37, %s12758_s17  ;;  %v8732_v13 = vsel %vm8700_vm4, %v15640_v12, %v8716_v42  ;;  %v8731_v30 = vsel %vm8699_vm3, %v15643_v24, %v8715_v21  ;;  %v12644_v37 = vld [vmem:[#allocation3 + $0x21] sm:$0xff] }
 0x85d   : > { %v12601_v63 = vpop.eup %12600  ;;  %v8801_v51 = vadd.f32 1.0, %v12599_v48  ;;  %12620 = vpow2.f32 %v9918_v58  ;;  %v9921_v3 = vmul.f32 -1.442695, %v15696_v6  ;;  %v8717_v58 = vmul.f32 0.2, %v15651_v60  ;;  %v12645_v48 = vld [vmem:[#allocation3 + $0x19] sm:$0xff] }
 0x85e   : > { %v12603_v46 = vpop.eup %12602  ;;  %v8804_v52 = vadd.f32 1.0, %v12601_v63  ;;  %v9920_v44 = vmul.f32 -1.442695, %v15700_v23  ;;  %v8734_v12 = vsel %vm8702_vm5, %v15648_v9, %v8718_v27  ;;  %v8725_v27 = vmul.f32 0.2, %v15683_v8 }
 0x85f   : > { %v12605_v31 = vpop.eup %12604  ;;  %12622 = vrcp.f32 %v8801_v51  ;;  %8865 = vrot.lane.b32.xlu1 %v12603_v46, %s12758_s17  ;;  %vm8714_vm2 = vcmp.gt.f32.partialorder %v15696_v6, 0.0  ;;  %vm8713_vm4 = vcmp.gt.f32.partialorder %v15700_v23, 0.0 }
 0x860   : > { %v12607_v14 = vpop.eup %12606  ;;  %12624 = vrcp.f32 %v8804_v52  ;;  %8863 = vrot.lane.b32.xlu0 %v12605_v31, %s12758_s17  ;;  %v8733_v52 = vsel %vm8701_vm6, %v15651_v60, %v8717_v58  ;;  %v12646_v31 = vld [vmem:[#allocation3 + $0x39] sm:$0xff] }
 0x861   : > { %v12609_v61 = vpop.eup %12608  ;;  %v8803_v17 = vadd.f32 1.0, %v12607_v14  ;;  %12626 = vpow2.f32 %v9921_v3  ;;  %v8720_v3 = vmul.f32 0.2, %v15656_v49 }
 0x862   : > { %v12611_v59 = vpop.eup %12610  ;;  %v8806_v54 = vadd.f32 1.0, %v12609_v61  ;;  %12628 = vpow2.f32 %v9920_v44  ;;  %v8719_v44 = vmul.f32 0.2, %v15659_v62  ;;  %v12647_v61 = vld [vmem:[#allocation3 + $0x31] sm:$0xff] }
 0x863   : > { %v12613_v19 = vpop.eup %12612  ;;  %12630 = vrcp.f32 %v8803_v17  ;;  %8869 = vrot.lane.b32.xlu1 %v12611_v59, %s12758_s17 }
 0x864   : > { %v12615_v2 = vpop.eup %12614  ;;  %12632 = vrcp.f32 %v8806_v54  ;;  %8867 = vrot.lane.b32.xlu0 %v12613_v19, %s12758_s17  ;;  %v8736_v54 = vsel %vm8704_vm7, %v15656_v49, %v8720_v3  ;;  %v8722_v19 = vmul.f32 0.2, %v15664_v40  ;;  %v12649_v49 = vld [vmem:[#allocation3 + $0x49] sm:$0xff] }
 0x865   : > { %v12617_v1 = vpop.eup %12616  ;;  %v8805_v34 = vadd.f32 1.0, %v12615_v2 }
 0x866   : > { %v12619_v53 = vpop.eup %12618  ;;  %v8808_v39 = vadd.f32 1.0, %v12617_v1  ;;  %v8735_v1 = vsel %vm8703_vm8, %v15659_v62, %v8719_v44  ;;  %v8724_v62 = vmul.f32 0.2, %v15672_v36  ;;  %v12656_v44 = vld [vmem:[#allocation3 + $0xb1] sm:$0xff] }
 0x867   : > { %v12621_v38 = vpop.eup %12620  ;;  %12634 = vrcp.f32 %v8805_v34  ;;  %8873 = vrot.lane.b32.xlu1 %v12619_v53, %s12758_s17  ;;  %v12648_v53 = vld [vmem:[#allocation3 + $0x51] sm:$0xff] }
 0x868   : > { %12636 = vrcp.f32 %v8808_v39  ;;  %v8807_v33 = vadd.f32 1.0, %v12621_v38  ;;  %v8721_v38 = vmul.f32 0.2, %v15667_v41 }
 0x869   : > { %v12623_v55 = vpop.eup %12622 }
 0x86a   : > { %v12625_v11 = vpop.eup %12624  ;;  %12638 = vrcp.f32 %v8807_v33  ;;  %8871 = vrot.lane.b32.xlu0 %v12623_v55, %s12758_s17 }
 0x86b   : > { %v12627_v4 = vpop.eup %12626  ;;  %8877 = vrot.lane.b32.xlu1 %v12625_v11, %s12758_s17  ;;  %v8738_v11 = vsel %vm8706_vm9, %v15664_v40, %v8722_v19 }
 0x86c   : > { %v12629_v10 = vpop.eup %12628  ;;  %v8810_v35 = vadd.f32 1.0, %v12627_v4 }
 0x86d   : > { %v12631_v22 = vpop.eup %12630  ;;  %v8809_v45 = vadd.f32 1.0, %v12629_v10  ;;  %v12650_v10 = vld [vmem:[#allocation3 + $0x69] sm:$0xff] }
 0x86e   : > { %v12633_v25 = vpop.eup %12632  ;;  %12640 = vrcp.f32 %v8810_v35  ;;  %8875 = vrot.lane.b32.xlu0 %v12631_v22, %s12758_s17 }
 0x86f   : > { %12642 = vrcp.f32 %v8809_v45  ;;  %8881 = vrot.lane.b32.xlu1 %v12633_v25, %s12758_s17  ;;  %v8737_v45 = vsel %vm8705_vm15, %v15667_v41, %v8721_v38  ;;  %v8723_v25 = vmul.f32 0.2, %v15675_v0  ;;  %v12652_v41 = vld [vmem:[#allocation3 + $0x81] sm:$0xff] }
 0x871   : > { %v12635_v16 = vpop.eup %12634 }
 0x872   : > { %v12637_v7 = vpop.eup %12636  ;;  %8879 = vrot.lane.b32.xlu0 %v12635_v16, %s12758_s17 }
 0x873   : > { %8885 = vrot.lane.b32.xlu1 %v12637_v7, %s12758_s17  ;;  %v8740_v7 = vsel %vm8708_vm1, %v15672_v36, %v8724_v62 }
 0x874   : > { %v12639_v18 = vpop.eup %12638 }
 0x876   : > { %8883 = vrot.lane.b32.xlu0 %v12639_v18, %s12758_s17  ;;  %v8726_v18 = vmul.f32 0.2, %v15680_v29 }
 0x878   : > { %v12641_v47 = vpop.eup %12640 }
 0x879   : > { %v12643_v57 = vpop.eup %12642  ;;  %8889 = vrot.lane.b32.xlu1 %v12641_v47, %s12758_s17 }
 0x87a   : > { %8887 = vrot.lane.b32.xlu0 %v12643_v57, %s12758_s17  ;;  %v12651_v57 = vld [vmem:[#allocation3 + $0x61] sm:$0xff]  ;;  %s15818_s17 = scalar_lea.sflag [#allocation5], %s347_s19 }
 0x8cd   : > { %v8862_v56 = vpop.permute.xlu1 %8861 }
 0x8ce   : > { %v8908_v32 = vmul.f32 %v8862_v56, %v8732_v13  ;;  %v8860_v43 = vpop.permute.xlu0 %8859  ;;  %v8739_v13 = vsel %vm8707_vm10, %v15675_v0, %v8723_v25  ;;  %v12653_v0 = vld [vmem:[#allocation3 + $0x79] sm:$0xff] }
 0x8cf   : > { %v8907_v20 = vmul.f32 %v8860_v43, %v8731_v30  ;;  %v8742_v43 = vsel %vm8710_vm11, %v15680_v29, %v8726_v18  ;;  %v8728_v30 = vmul.f32 0.2, %v15688_v15  ;;  %v8727_v29 = vmul.f32 0.2, %v15691_v50 }
 0x8d0   : > { %v8924_v26 = vadd.f32 %v12644_v37, %v8908_v32  ;;  %v12654_v37 = vld [vmem:[#allocation3 + $0x99] sm:$0xff] }
 0x8d1   : > { %v8923_v63 = vadd.f32 %v12645_v48, %v8907_v20  ;;  %v8866_v51 = vpop.permute.xlu1 %8865  ;;  %v8744_v3 = vsel %vm8712_vm14, %v15688_v15, %v8728_v30  ;;  %v8729_v15 = vmul.f32 0.2, %v15700_v23 }
 0x8d2   : > { %8940 = vst.msk [vmem:[%s15734_s26 + $0x8] sm:$0xff] %vm6559_vm13, %v8924_v26  ;;  %v8910_v24 = vmul.f32 %v8866_v51, %v8734_v12  ;;  %v8864_v46 = vpop.permute.xlu0 %8863 }
 0x8d3   : > { %8939 = vst.msk [vmem:[%s15734_s26] sm:$0xff] %vm6559_vm13, %v8923_v63  ;;  %v8909_v9 = vmul.f32 %v8864_v46, %v8733_v52  ;;  %v8741_v63 = vsel %vm8709_vm12, %v15683_v8, %v8725_v27  ;;  %v12655_v46 = vld [vmem:[#allocation3 + $0x91] sm:$0xff]  ;;  %v8730_v8 = vmul.f32 0.2, %v15696_v6 }
 0x8d4   : > { %v8926_v14 = vadd.f32 %v12646_v31, %v8910_v24 }
 0x8d5   : > { %v8925_v17 = vadd.f32 %v12647_v61, %v8909_v9  ;;  %v8870_v59 = vpop.permute.xlu1 %8869 }
 0x8d6   : > { %8942 = vst.msk [vmem:[%s15734_s26 + $0x18] sm:$0xff] %vm6559_vm13, %v8926_v14  ;;  %v8912_v60 = vmul.f32 %v8870_v59, %v8736_v54  ;;  %v8868_v2 = vpop.permute.xlu0 %8867  ;;  %v8743_v14 = vsel %vm8711_vm0, %v15691_v50, %v8727_v29  ;;  %v8746_v50 = vsel %vm8714_vm2, %v15696_v6, %v8730_v8 }
 0x8d7   : > { %8941 = vst.msk [vmem:[%s15734_s26 + $0x10] sm:$0xff] %vm6559_vm13, %v8925_v17  ;;  %v8911_v34 = vmul.f32 %v8868_v2, %v8735_v1  ;;  %v12657_v17 = vld [vmem:[#allocation3 + $0xa9] sm:$0xff]  ;;  %v8745_v2 = vsel %vm8713_vm4, %v15700_v23, %v8729_v15 }
 0x8d8   : > { %v8928_v39 = vadd.f32 %v12648_v53, %v8912_v60 }
 0x8d9   : > { %v8927_v33 = vadd.f32 %v12649_v49, %v8911_v34  ;;  %v8874_v55 = vpop.permute.xlu1 %8873 }
 0x8da   : > { %8944 = vst.msk [vmem:[%s15734_s26 + $0x28] sm:$0xff] %vm6559_vm13, %v8928_v39  ;;  %v8914_v4 = vmul.f32 %v8874_v55, %v8738_v11 }
 0x8db   : > { %8943 = vst.msk [vmem:[%s15734_s26 + $0x20] sm:$0xff] %vm6559_vm13, %v8927_v33 }
 0x8dc   : > { %v8930_v35 = vadd.f32 %v12650_v10, %v8914_v4  ;;  %v8872_v22 = vpop.permute.xlu0 %8871 }
 0x8dd   : > { %v8913_v40 = vmul.f32 %v8872_v22, %v8737_v45  ;;  %v8878_v16 = vpop.permute.xlu1 %8877 }
 0x8de   : > { %8946 = vst.msk [vmem:[%s15734_s26 + $0x38] sm:$0xff] %vm6559_vm13, %v8930_v35  ;;  %v8916_v47 = vmul.f32 %v8878_v16, %v8740_v7 }
 0x8df   : > { %v8929_v42 = vadd.f32 %v12651_v57, %v8913_v40 }
 0x8e0   : > { %v8932_v21 = vadd.f32 %v12652_v41, %v8916_v47  ;;  %v8876_v56 = vpop.permute.xlu0 %8875 }
 0x8e1   : > { %8945 = vst.msk [vmem:[%s15734_s26 + $0x30] sm:$0xff] %vm6559_vm13, %v8929_v42  ;;  %v8915_v36 = vmul.f32 %v8876_v56, %v8739_v13  ;;  %v8882_v32 = vpop.permute.xlu1 %8881 }
 0x8e2   : > { %8948 = vst.msk [vmem:[%s15734_s26 + $0x48] sm:$0xff] %vm6559_vm13, %v8932_v21  ;;  %v8918_v58 = vmul.f32 %v8882_v32, %v8742_v43 }
 0x8e3   : > { %v8931_v20 = vadd.f32 %v12653_v0, %v8915_v36 }
 0x8e4   : > { %v8934_v26 = vadd.f32 %v12654_v37, %v8918_v58  ;;  %v8880_v48 = vpop.permute.xlu0 %8879 }
 0x8e5   : > { %8947 = vst.msk [vmem:[%s15734_s26 + $0x40] sm:$0xff] %vm6559_vm13, %v8931_v20  ;;  %v8917_v51 = vmul.f32 %v8880_v48, %v8741_v63  ;;  %v8886_v12 = vpop.permute.xlu1 %8885 }
 0x8e6   : > { %8950 = vst.msk [vmem:[%s15734_s26 + $0x58] sm:$0xff] %vm6559_vm13, %v8934_v26  ;;  %v8920_v24 = vmul.f32 %v8886_v12, %v8744_v3 }
 0x8e7   : > { %v8933_v52 = vadd.f32 %v12655_v46, %v8917_v51 }
 0x8e8   : > { %v8936_v9 = vadd.f32 %v12656_v44, %v8920_v24  ;;  %v8884_v31 = vpop.permute.xlu0 %8883 }
 0x8e9   : > { %8949 = vst.msk [vmem:[%s15734_s26 + $0x50] sm:$0xff] %vm6559_vm13, %v8933_v52  ;;  %v8919_v61 = vmul.f32 %v8884_v31, %v8743_v14 }
 0x8ea   : > { %8952 = vst.msk [vmem:[%s15734_s26 + $0x68] sm:$0xff] %vm6559_vm13, %v8936_v9 }
 0x8eb   : > { %v8935_v59 = vadd.f32 %v12657_v17, %v8919_v61  ;;  %v8890_v54 = vpop.permute.xlu1 %8889 }
 0x8ec   : > { %v8922_v19 = vmul.f32 %v8890_v54, %v8746_v50  ;;  %v8888_v60 = vpop.permute.xlu0 %8887 }
 0x8ed   : > { %8951 = vst.msk [vmem:[%s15734_s26 + $0x60] sm:$0xff] %vm6559_vm13, %v8935_v59  ;;  %v8921_v1 = vmul.f32 %v8888_v60, %v8745_v2 }
 0x8ee   : > { %v8938_v34 = vadd.f32 %v8922_v19, %v15431_v28 }
 0x8ef   : > { %v8937_v6 = vadd.f32 %v8921_v1, %v15427_v5 }
 0x8f0   : > { %8954 = vst.msk [vmem:[%s15734_s26 + $0x78] sm:$0xff] %vm6559_vm13, %v8938_v34 }
 0x8f1   : > { %8953 = vst.msk [vmem:[%s15734_s26 + $0x70] sm:$0xff] %vm6559_vm13, %v8937_v6 }
 0x8f2   : > { %12671 = shalt.err (!%p12668_p6)
}
 0x8f3   : > { %s12672_s19 = scalar_lea.hbm %s15807_s25, 2048  ;;  %s12676_s29 = scalar_lea.hbm %s15879_s9, 8192 }
 0x8f4   : > { %p12673_p7 = scmp.ne.s32.totalorder %s15807_s25, %s12672_s19  ;;  %p12677_p11 = scmp.lt.u32.totalorder %s15807_s25, %s15879_s9 }
 0x8f5   : > { %p12678_p12 = scmp.lt.u32.totalorder %s12676_s29, %s12672_s19  ;;  %p12680_p0 = scmp.lt.u32.totalorder %s12672_s19, %s15807_s25 }
 0x8f6   : > { %p12674_p9 = pnand %p12673_p7, %p12863_p3 }
 0x8f7   : > { %p12679_p13 = por %p12678_p12, %p12677_p11 }
 0x8f8   : > { %p12675_p10 = pneg %p12674_p9 }
 0x8f9   : > { %p12681_p1 = por %p12680_p0, %p12679_p13 }
 0x8fb   : > { %p12682_p2 = pnand %p12681_p1, %p12675_p10 }
 0x8fd   : > { %12685 = shalt.err (!%p12682_p2)
}
 0x8fe   : > { %s12760_s21 = smov 128   ;;  %s12761_s18 = smov 8  }
 0x8ff   : > { %12422 = dma.vmem_to_hbm [thread:$0]  (%p12863_p3), %s15809_s28, 2048, %s15807_s25, %s15818_s17, %s12760_s21, %s12760_s21, %s12761_s18  }
 0x900 PF: > { %p12428_p4 = scmp.ge.s32.totalorder %s12752_s16, 2  ;;  %s8987_s12 = sand.u32 1, %s12724_s30  }
 0x901   : > { %s8988_s19 = scalar_lea.sflag [#allocation5], %s8987_s12 }
 0x902   : > { %p12425_p5 = pnand %p12428_p4, %p12872_p8 }
 0x904   : > { %12719 = dma.done.wait (!%p12425_p5), %s8988_s19, 2048  }
 0x905   : > { %12721 = vsyncadd (!%p12425_p5), %s8988_s19, 4294965248  ;;  %s22_s16 = sadd.s32 1, %s12752_s16   ;;  %s16003_s22 = sld [smem:[#allocation7_spill]] }
 0x906   : > { %p19_p6 = scmp.ge.s32.totalorder %s22_s16, 6   ;;  %s16004_s28 = sld [smem:[#allocation8_spill]] }
 0x907   : > { %s16005_s30 = smov %s12728_s10  ;;  %s16006_s10 = smov %s12732_s11 }
 0x908   : > { %s16007_s11 = smov %s12881_s27  ;;  %s16008_s12 = smov %s12744_s14 }
 0x909   : > { %s16009_s13 = smov %s12748_s15  ;;  %21 = sbr.rel (!%p19_p6) target bundleno = 5 (0x5), region = 121 }
 0x90b   : > { %s16010_s14 = smov %s16003_s22 }
 0x90c   : > { %s16011_s15 = smov %s16004_s28 }
 0x910   :  { %8993 = vsyncpa [#allocation5], 1 }
 0x911   :  { %8995 = vsyncpa [#allocation5 + $0x1], 1 }

</bundles_post_ra>
